<compile_context>
chip_gen: v6e
topology: v6e:2x2x1
jax: 0.10.0
libtpu: 0.0.40
codegen_flags: <defaults>
</compile_context>

<pallas_src>
import functools

import jax
import jax.numpy as jnp
from jax import lax
from jax.experimental import pallas as pl
from jax.experimental.pallas import tpu as pltpu

F32 = jnp.float32
BF16 = jnp.bfloat16
ACT_DTYPE = BF16          # inter-kernel activation dtype in HBM (math stays f32 in-kernel)
LN_EPS = 1e-5
_APPROX_RECIP = True      # EUP approx reciprocal in softmax; set False for strict validation


# --------------------------------------------------------------------------
# Per-generation tiling / VMEM budget
# --------------------------------------------------------------------------
def _detect_vmem_capacity_bytes():
    try:
        cap = int(getattr(pltpu.get_tpu_info(), "vmem_capacity_bytes", 0))
        if cap > 0:
            return cap
    except Exception:
        pass
    return 64 * 1024 * 1024  # conservative fallback (v7x per-core VMEM)


_VMEM_CAP = _detect_vmem_capacity_bytes()
_VMEM_LIMIT = int(min(0.75 * _VMEM_CAP, 100 * 1024 * 1024))  # 96 MiB on v5e/v6e, 48 MiB on v7x
_BIG_VMEM = _VMEM_CAP >= 100 * 1024 * 1024                   # 128-MiB parts (v5e / v6e)
_ROW_TILE = 1024 if _BIG_VMEM else 512                       # (B*T)-row tiles
_TIME_TILE = 512 if _BIG_VMEM else 256                       # time tile for QKV projection
_Q_TILE = 256                                                # query tile for attention


def _cparams(semantics):
    return pltpu.CompilerParams(dimension_semantics=semantics,
                                vmem_limit_bytes=_VMEM_LIMIT)


def _row_tiling(M):
    tm = min(_ROW_TILE, M)
    return tm, pl.cdiv(M, tm)


def _layernorm_f32(x, g, b):
    mu = jnp.mean(x, axis=-1, keepdims=True)
    var = jnp.mean(jnp.square(x - mu), axis=-1, keepdims=True)
    return (x - mu) * lax.rsqrt(var + LN_EPS) * g + b


# --------------------------------------------------------------------------
# Pallas kernels
# --------------------------------------------------------------------------
def _matmul_bias_kernel(x_ref, w_ref, b_ref, o_ref, *, activation):
    acc = jnp.dot(x_ref[...].astype(BF16), w_ref[...],
                  preferred_element_type=jnp.float32) + b_ref[...]
    if activation == "relu":
        acc = jnp.maximum(acc, 0.0)
    o_ref[...] = acc.astype(o_ref.dtype)


def matmul_bias(x, w, b, activation=None, out_dtype=ACT_DTYPE):
    """y = act(x @ w + b); x:(M,K), w:(K,N) bf16, b:(N,) f32. Row-tiled grid."""
    M, K = x.shape
    N = w.shape[1]
    tm, gm = _row_tiling(M)
    return pl.pallas_call(
        functools.partial(_matmul_bias_kernel, activation=activation),
        grid=(gm,),
        in_specs=[pl.BlockSpec((tm, K), lambda i: (i, 0)),
                  pl.BlockSpec((K, N), lambda i: (0, 0)),
                  pl.BlockSpec((1, N), lambda i: (0, 0))],
        out_specs=pl.BlockSpec((tm, N), lambda i: (i, 0)),
        out_shape=jax.ShapeDtypeStruct((M, N), out_dtype),
        compiler_params=_cparams(("parallel",)),
    )(x, w, b.reshape(1, N))


def _ffn_kernel(x_ref, g_ref, bln_ref, w1_ref, b1_ref, w2_ref, b2_ref, *rest):
    # Fused half-FFN: LN -> w1 -> Swish -> w2 -> x + 0.5*(...) [-> final LayerNorm].
    # The (tm, ff) hidden stays in VMEM/vregs; it is never written to HBM.
    if len(rest) == 3:
        g2_ref, bln2_ref, o_ref = rest
    else:
        (o_ref,) = rest
        g2_ref = bln2_ref = None
    x = x_ref[...].astype(jnp.float32)
    z = _layernorm_f32(x, g_ref[...], bln_ref[...])
    hid = jnp.dot(z.astype(BF16), w1_ref[...],
                  preferred_element_type=jnp.float32) + b1_ref[...]
    hid = hid * jax.nn.sigmoid(hid)                       # Swish (f32, VPU/EUP)
    down = jnp.dot(hid.astype(BF16), w2_ref[...],
                   preferred_element_type=jnp.float32) + b2_ref[...]
    y = x + 0.5 * down
    if g2_ref is not None:                                # fused block-final LayerNorm
        y = _layernorm_f32(y, g2_ref[...], bln2_ref[...])
    o_ref[...] = y.astype(o_ref.dtype)


def ffn_fused(x, g, bln, w1, b1, w2, b2, final_ln=None):
    """x + 0.5*(Swish(LN(x) @ w1 + b1) @ w2 + b2); optional trailing LayerNorm."""
    M, D = x.shape
    ff = w1.shape[1]
    tm, gm = _row_tiling(M)
    in_specs = [pl.BlockSpec((tm, D), lambda i: (i, 0)),
                pl.BlockSpec((1, D), lambda i: (0, 0)),
                pl.BlockSpec((1, D), lambda i: (0, 0)),
                pl.BlockSpec((D, ff), lambda i: (0, 0)),
                pl.BlockSpec((1, ff), lambda i: (0, 0)),
                pl.BlockSpec((ff, D), lambda i: (0, 0)),
                pl.BlockSpec((1, D), lambda i: (0, 0))]
    args = [x, g.reshape(1, D), bln.reshape(1, D), w1, b1.reshape(1, ff),
            w2, b2.reshape(1, D)]
    if final_ln is not None:
        g2, b2ln = final_ln
        in_specs += [pl.BlockSpec((1, D), lambda i: (0, 0)),
                     pl.BlockSpec((1, D), lambda i: (0, 0))]
        args += [g2.reshape(1, D), b2ln.reshape(1, D)]
    cost = pl.CostEstimate(flops=int(4 * M * D * ff),
                           transcendentals=int(M * ff),
                           bytes_accessed=int(4 * M * D + 4 * D * ff))
    return pl.pallas_call(
        _ffn_kernel,
        grid=(gm,),
        in_specs=in_specs,
        out_specs=pl.BlockSpec((tm, D), lambda i: (i, 0)),
        out_shape=jax.ShapeDtypeStruct((M, D), ACT_DTYPE),
        compiler_params=_cparams(("parallel",)),
        cost_estimate=cost,
    )(*args)


def _ln_qkv_kernel(x_ref, pos_ref, g_ref, bln_ref, wq_ref, bq_ref, wkv_ref, bkv_ref,
                   q_ref, kv_ref):
    # (LN(x) + pos) @ [Wq | Wkv]; lane-dense (time, D)/(time, 2D) output blocks.
    z = _layernorm_f32(x_ref[0].astype(jnp.float32), g_ref[...], bln_ref[...])
    z = (z + pos_ref[...]).astype(BF16)
    q = jnp.dot(z, wq_ref[...], preferred_element_type=jnp.float32) + bq_ref[...]
    kv = jnp.dot(z, wkv_ref[...], preferred_element_type=jnp.float32) + bkv_ref[...]
    q_ref[0] = q.astype(q_ref.dtype)
    kv_ref[0] = kv.astype(kv_ref.dtype)


def ln_qkv(x, pos, g, bln, wq, bq, wkv, bkv):
    """x:(B,T,D) -> q:(B,T,D), kv:(B,T,2D); pos index_map ignores the batch grid axis."""
    B, T, D = x.shape
    tt = min(_TIME_TILE, T)
    gt = pl.cdiv(T, tt)
    return pl.pallas_call(
        _ln_qkv_kernel,
        grid=(B, gt),
        in_specs=[pl.BlockSpec((1, tt, D), lambda b, t: (b, t, 0)),
                  pl.BlockSpec((tt, D), lambda b, t: (t, 0)),
                  pl.BlockSpec((1, D), lambda b, t: (0, 0)),
                  pl.BlockSpec((1, D), lambda b, t: (0, 0)),
                  pl.BlockSpec((D, D), lambda b, t: (0, 0)),
                  pl.BlockSpec((1, D), lambda b, t: (0, 0)),
                  pl.BlockSpec((D, 2 * D), lambda b, t: (0, 0)),
                  pl.BlockSpec((1, 2 * D), lambda b, t: (0, 0))],
        out_specs=[pl.BlockSpec((1, tt, D), lambda b, t: (b, t, 0)),
                   pl.BlockSpec((1, tt, 2 * D), lambda b, t: (b, t, 0))],
        out_shape=(jax.ShapeDtypeStruct((B, T, D), ACT_DTYPE),
                   jax.ShapeDtypeStruct((B, T, 2 * D), ACT_DTYPE)),
        compiler_params=_cparams(("parallel", "parallel")),
    )(x, pos, g.reshape(1, D), bln.reshape(1, D),
      wq, bq.reshape(1, D), wkv, bkv.reshape(1, 2 * D))


def _attention_kernel(q_ref, kv_ref, res_ref, wo_ref, bo_ref, o_ref, *, num_heads, scale):
    # q-tiled attention: scores are only (tq, T) per head; each head's output is folded
    # into the (tq, D) accumulator through its slice of the output projection, so only
    # the accumulator stays live across the (static) head loop.  Output projection,
    # bias and residual are fused as the epilogue.
    # TODO(synk): per-head slices are lane-misaligned when head_dim < 128; pad head_dim
    #             to 128 (or stage heads head-major) for production shapes if profiling
    #             shows relayout cost.  For very long T, additionally stream KV tiles
    #             with an online softmax.
    D = o_ref.shape[-1]
    tq = o_ref.shape[1]
    dh = D // num_heads
    acc = jnp.zeros((tq, D), jnp.float32)
    for h in range(num_heads):
        lo, hi = h * dh, (h + 1) * dh
        q = q_ref[0, :, lo:hi]                     # (tq, dh) bf16, straight from VMEM
        k = kv_ref[0, :, lo:hi]                    # (T, dh)  bf16
        v = kv_ref[0, :, D + lo:D + hi]            # (T, dh)  bf16
        s = lax.dot_general(q, k, (((1,), (1,)), ((), ())),
                            preferred_element_type=jnp.float32) * scale   # (tq, T)
        s = s - jnp.max(s, axis=-1, keepdims=True)
        p = jnp.exp(s)
        p = p * pl.reciprocal(jnp.sum(p, axis=-1, keepdims=True), approx=_APPROX_RECIP)
        o_h = jnp.dot(p.astype(BF16), v, preferred_element_type=jnp.float32)  # (tq, dh)
        acc = acc + jnp.dot(o_h.astype(BF16), wo_ref[lo:hi, :],
                            preferred_element_type=jnp.float32)
    acc = acc + bo_ref[...]
    o_ref[0] = (res_ref[0].astype(jnp.float32) + acc).astype(o_ref.dtype)


def attention(q, kv, res, wo, bo, num_heads):
    """softmax(q k^T / sqrt(dh)) v per head, fused output projection + residual."""
    B, T, D = q.shape
    dh = D // num_heads
    scale = 1.0 / (dh ** 0.5)
    tq = min(_Q_TILE, T)
    gq = pl.cdiv(T, tq)
    cost = pl.CostEstimate(flops=int(4 * B * T * T * D + 2 * B * T * D * D),
                           transcendentals=int(B * T * T),
                           bytes_accessed=int(10 * B * T * D + 2 * D * D))
    return pl.pallas_call(
        functools.partial(_attention_kernel, num_heads=num_heads, scale=scale),
        grid=(B, gq),
        in_specs=[pl.BlockSpec((1, tq, D), lambda b, i: (b, i, 0)),
                  pl.BlockSpec((1, T, 2 * D), lambda b, i: (b, 0, 0)),
                  pl.BlockSpec((1, tq, D), lambda b, i: (b, i, 0)),
                  pl.BlockSpec((D, D), lambda b, i: (0, 0)),
                  pl.BlockSpec((1, D), lambda b, i: (0, 0))],
        out_specs=pl.BlockSpec((1, tq, D), lambda b, i: (b, i, 0)),
        out_shape=jax.ShapeDtypeStruct((B, T, D), ACT_DTYPE),
        compiler_params=_cparams(("parallel", "parallel")),
        cost_estimate=cost,
    )(q, kv, res, wo, bo.reshape(1, D))


def _ln_glu_kernel(x_ref, g_ref, bln_ref, wa_ref, ba_ref, wb_ref, bb_ref, o_ref):
    # GLU via two pre-split weight halves -> no non-aligned lane split of the acc.
    z = _layernorm_f32(x_ref[...].astype(jnp.float32), g_ref[...], bln_ref[...])
    zb = z.astype(BF16)
    val = jnp.dot(zb, wa_ref[...], preferred_element_type=jnp.float32) + ba_ref[...]
    gate = jnp.dot(zb, wb_ref[...], preferred_element_type=jnp.float32) + bb_ref[...]
    o_ref[...] = (val * jax.nn.sigmoid(gate)).astype(o_ref.dtype)


def ln_glu(x, g, bln, wa, ba, wb, bb):
    M, D = x.shape
    N = wa.shape[1]
    tm, gm = _row_tiling(M)
    return pl.pallas_call(
        _ln_glu_kernel,
        grid=(gm,),
        in_specs=[pl.BlockSpec((tm, D), lambda i: (i, 0)),
                  pl.BlockSpec((1, D), lambda i: (0, 0)),
                  pl.BlockSpec((1, D), lambda i: (0, 0)),
                  pl.BlockSpec((D, N), lambda i: (0, 0)),
                  pl.BlockSpec((1, N), lambda i: (0, 0)),
                  pl.BlockSpec((D, N), lambda i: (0, 0)),
                  pl.BlockSpec((1, N), lambda i: (0, 0))],
        out_specs=pl.BlockSpec((tm, N), lambda i: (i, 0)),
        out_shape=jax.ShapeDtypeStruct((M, N), ACT_DTYPE),
        compiler_params=_cparams(("parallel",)),
    )(x, g.reshape(1, D), bln.reshape(1, D), wa, ba.reshape(1, N), wb, bb.reshape(1, N))


def _conv_tail_kernel(y_ref, res_ref, dw_ref, scale_ref, shift_ref, w2_ref, b2_ref,
                      o_ref, *, pad):
    # depthwise 'same' conv (padded in-kernel) + folded eval BatchNorm + Swish
    # + pointwise conv2 + residual, all in one kernel (no HBM round trips).
    T, D = o_ref.shape[1], o_ref.shape[2]
    K = dw_ref.shape[0]
    y = y_ref[0].astype(jnp.float32)                       # (T, D)
    if pad > 0:
        zeros = jnp.zeros((pad, D), jnp.float32)
        yp = jnp.concatenate([zeros, y, zeros], axis=0)    # in-kernel 'same' padding
    else:
        yp = y
    w = dw_ref[...].astype(jnp.float32)                    # (K, D)
    acc = yp[0:T, :] * w[0:1, :]
    for k in range(1, K):                                  # static unrolled depthwise taps
        acc = acc + yp[k:k + T, :] * w[k:k + 1, :]
    z = acc * scale_ref[...] + shift_ref[...]              # folded eval-mode BatchNorm
    z = z * jax.nn.sigmoid(z)                              # Swish
    out = jnp.dot(z.astype(BF16), w2_ref[...],
                  preferred_element_type=jnp.float32) + b2_ref[...]
    o_ref[0] = (res_ref[0].astype(jnp.float32) + out).astype(o_ref.dtype)


def conv_module_tail(y, res, dw_w, bn_scale, bn_shift, w2, b2):
    """y:(B,T,D) GLU output; returns res + pw2(Swish(BN(dwconv(y))))."""
    B, T, D = y.shape
    K = dw_w.shape[0]
    pad = (K - 1) // 2
    # TODO(synk): for very long T, tile time with halo blocks instead of one (T,D) block.
    return pl.pallas_call(
        functools.partial(_conv_tail_kernel, pad=pad),
        grid=(B,),
        in_specs=[pl.BlockSpec((1, T, D), lambda b: (b, 0, 0)),
                  pl.BlockSpec((1, T, D), lambda b: (b, 0, 0)),
                  pl.BlockSpec((K, D), lambda b: (0, 0)),
                  pl.BlockSpec((1, D), lambda b: (0, 0)),
                  pl.BlockSpec((1, D), lambda b: (0, 0)),
                  pl.BlockSpec((D, D), lambda b: (0, 0)),
                  pl.BlockSpec((1, D), lambda b: (0, 0))],
        out_specs=pl.BlockSpec((1, T, D), lambda b: (b, 0, 0)),
        out_shape=jax.ShapeDtypeStruct((B, T, D), ACT_DTYPE),
        compiler_params=_cparams(("parallel",)),
    )(y, res, dw_w, bn_scale.reshape(1, D), bn_shift.reshape(1, D), w2, b2.reshape(1, D))


# --------------------------------------------------------------------------
# Parameters (deterministic synthetic init); matmul weights stored in bf16.
# --------------------------------------------------------------------------
def init_params(key, *, in_channels, encoder_dim, num_blocks, ff_expansion,
                sub_stride, sub_kernel, dw_kernel, pos_max_len):
    D = encoder_dim
    sub_dim = sub_stride * D
    ff = ff_expansion * D

    def nrm(k, shape, scale=0.02, dtype=BF16):
        return (scale * jax.random.normal(k, shape, F32)).astype(dtype)

    keys = iter(jax.random.split(key, 256))
    p = {
        # Conv1d(Cin -> sub_dim, K) already reshaped to im2col layout (K*Cin, sub_dim)
        "sub_w": nrm(next(keys), (sub_kernel * in_channels, sub_dim)),
        "sub_b": jnp.zeros((sub_dim,), F32),
        "lin_w": nrm(next(keys), (sub_dim, D)),
        "lin_b": jnp.zeros((D,), F32),
    }
    blocks = []
    for _ in range(num_blocks):
        blk = {
            "ff1_ln_g": jnp.ones((D,), F32), "ff1_ln_b": jnp.zeros((D,), F32),
            "ff1_w1": nrm(next(keys), (D, ff)), "ff1_b1": jnp.zeros((ff,), F32),
            "ff1_w2": nrm(next(keys), (ff, D)), "ff1_b2": jnp.zeros((D,), F32),
            "att_ln_g": jnp.ones((D,), F32), "att_ln_b": jnp.zeros((D,), F32),
            # QKV projection split into Q and KV slabs (head-major columns)
            "wq": nrm(next(keys), (D, D)), "bq": jnp.zeros((D,), F32),
            "wkv": nrm(next(keys), (D, 2 * D)), "bkv": jnp.zeros((2 * D,), F32),
            "wo": nrm(next(keys), (D, D)), "bo": jnp.zeros((D,), F32),
            "conv_ln_g": jnp.ones((D,), F32), "conv_ln_b": jnp.zeros((D,), F32),
            # pointwise-1 GLU weight pre-split into value / gate halves
            "pw1_wa": nrm(next(keys), (D, D)), "pw1_ba": jnp.zeros((D,), F32),
            "pw1_wb": nrm(next(keys), (D, D)), "pw1_bb": jnp.zeros((D,), F32),
            "dw_w": nrm(next(keys), (dw_kernel, D), dtype=F32),
            "dw_b": jnp.zeros((D,), F32),
            "bn_g": jnp.ones((D,), F32), "bn_b": jnp.zeros((D,), F32),
            "pw2_w": nrm(next(keys), (D, D)), "pw2_b": jnp.zeros((D,), F32),
            "ff2_ln_g": jnp.ones((D,), F32), "ff2_ln_b": jnp.zeros((D,), F32),
            "ff2_w1": nrm(next(keys), (D, ff)), "ff2_b1": jnp.zeros((ff,), F32),
            "ff2_w2": nrm(next(keys), (ff, D)), "ff2_b2": jnp.zeros((D,), F32),
            "final_ln_g": jnp.ones((D,), F32), "final_ln_b": jnp.zeros((D,), F32),
        }
        blocks.append(blk)
    p["blocks"] = blocks

    # sinusoidal positional table (pos_embed_max_len, D)
    pos = jnp.arange(pos_max_len, dtype=F32)[:, None]
    i = jnp.arange(D // 2, dtype=F32)[None, :]
    ang = pos / jnp.power(10000.0, 2.0 * i / D)
    p["pos_emb"] = jnp.concatenate([jnp.sin(ang), jnp.cos(ang)], axis=-1)
    return p


# --------------------------------------------------------------------------
# Forward pass
# --------------------------------------------------------------------------
def conformer_block(p, h, B, T, D, H, pos):
    # h: (B*T, D) bf16 activation (math is f32 inside the kernels)
    # --- half-step FFN 1 (single fused kernel; 4D hidden never hits HBM) ---
    h = ffn_fused(h, p["ff1_ln_g"], p["ff1_ln_b"],
                  p["ff1_w1"], p["ff1_b1"], p["ff1_w2"], p["ff1_b2"])

    # --- MHSA: fused LN + pos + Q/KV projection; attention fuses out-proj + residual ---
    q, kv = ln_qkv(h.reshape(B, T, D), pos, p["att_ln_g"], p["att_ln_b"],
                   p["wq"], p["bq"], p["wkv"], p["bkv"])
    h = attention(q, kv, h.reshape(B, T, D), p["wo"], p["bo"], H).reshape(B * T, D)

    # --- Convolution module: LN+GLU, then dwconv/BN/Swish/pw2/residual in one kernel ---
    y = ln_glu(h, p["conv_ln_g"], p["conv_ln_b"],
               p["pw1_wa"], p["pw1_ba"], p["pw1_wb"], p["pw1_bb"])
    # eval-mode BatchNorm folding (running mean=0, var=1 for this synthetic init)
    # TODO(synk): fold real running stats from a checkpoint into bn_scale / bn_shift.
    bn_scale = p["bn_g"] * lax.rsqrt(jnp.float32(1.0) + LN_EPS)
    bn_shift = p["dw_b"] * bn_scale + p["bn_b"]              # depthwise bias folded in
    h = conv_module_tail(y.reshape(B, T, D), h.reshape(B, T, D), p["dw_w"],
                         bn_scale, bn_shift, p["pw2_w"], p["pw2_b"]).reshape(B * T, D)

    # --- half-step FFN 2 with the block-final LayerNorm fused as epilogue ---
    h = ffn_fused(h, p["ff2_ln_g"], p["ff2_ln_b"],
                  p["ff2_w1"], p["ff2_b1"], p["ff2_w2"], p["ff2_b2"],
                  final_ln=(p["final_ln_g"], p["final_ln_b"]))
    return h


def conformer_encoder_forward(params, x, num_heads, sub_stride, sub_kernel):
    # x: (B, T, in_channels) f32
    B, T, Cin = x.shape
    K, S = sub_kernel, sub_stride

    # ConvolutionSubsampling: Conv1d(Cin -> S*D, K, S) + ReLU via im2col + Pallas matmul.
    Tp = (T - K) // S + 1
    idx = jnp.arange(Tp)[:, None] * S + jnp.arange(K)[None, :]     # (Tp, K)
    patches = x[:, idx, :].reshape(B * Tp, K * Cin)                # (B*Tp, K*Cin)
    h = matmul_bias(patches, params["sub_w"], params["sub_b"], activation="relu")

    # Linear(S*D -> D); dropout is identity at inference.  Activations stay bf16 in HBM.
    h = matmul_bias(h, params["lin_w"], params["lin_b"])
    D = h.shape[-1]

    pos = params["pos_emb"][:Tp]                                   # hoisted: same every block
    for blk in params["blocks"]:
        h = conformer_block(blk, h, B, Tp, D, num_heads, pos)
    return h.reshape(B, Tp, D).astype(F32)


# --------------------------------------------------------------------------
if __name__ == "__main__":
    # small-shape configuration consistent with the module's constructor
    # (note: production encoder_dim >= 128 keeps output stores lane-dense)
    B, T, IN_CH = 2, 16, 16
    ENC_D, HEADS, BLOCKS = 32, 4, 2
    FF_EXP, SUB_S, SUB_K, DW_K = 4, 2, 4, 7

    key = jax.random.PRNGKey(0)
    k_x, k_p = jax.random.split(key)
    x = jax.random.normal(k_x, (B, T, IN_CH), F32)

    params = init_params(
        k_p, in_channels=IN_CH, encoder_dim=ENC_D, num_blocks=BLOCKS,
        ff_expansion=FF_EXP, sub_stride=SUB_S, sub_kernel=SUB_K,
        dw_kernel=DW_K, pos_max_len=64)

    fwd = jax.jit(functools.partial(
        conformer_encoder_forward, num_heads=HEADS, sub_stride=SUB_S, sub_kernel=SUB_K))

    out = fwd(params, x)
    jax.block_until_ready(out)

    expected_T = (T - SUB_K) // SUB_S + 1
    assert out.shape == (B, expected_T, ENC_D), out.shape
    assert jnp.all(jnp.isfinite(out))
    print("KERNEL_OK")
</pallas_src>

<mosaic_0001>
module attributes {stable_mosaic.version = 11 : i64} {
  func.func @_matmul_bias_kernel(%arg0: i32, %arg1: memref<14x64xf32, #tpu.memory_space<vmem>>, %arg2: memref<64x64xbf16, #tpu.memory_space<vmem>>, %arg3: memref<1x64xf32, #tpu.memory_space<vmem>>, %arg4: memref<14x64xbf16, #tpu.memory_space<vmem>>) attributes {dimension_semantics = [#tpu.dimension_semantics<parallel>], iteration_bounds = array<i64: 1>, scalar_prefetch = 0 : i64, scratch_operands = 0 : i64, tpu.core_type = #tpu.core_type<tc>, window_params = [{transform_indices = @transform_0, window_bounds = array<i64: 14, 64>}, {pipeline_mode = #tpu.pipeline_mode<synchronous>, transform_indices = @transform_1, window_bounds = array<i64: 64, 64>}, {pipeline_mode = #tpu.pipeline_mode<synchronous>, transform_indices = @transform_2, window_bounds = array<i64: 1, 64>}, {transform_indices = @transform_3, window_bounds = array<i64: 14, 64>}]} {
    %c0 = arith.constant 0 : index
    %c0_0 = arith.constant 0 : index
    %0 = vector.load %arg1[%c0, %c0_0] : memref<14x64xf32, #tpu.memory_space<vmem>>, vector<14x64xf32>
    %1 = arith.truncf %0 : vector<14x64xf32> to vector<14x64xbf16>
    %c0_1 = arith.constant 0 : index
    %c0_2 = arith.constant 0 : index
    %2 = vector.load %arg2[%c0_1, %c0_2] : memref<64x64xbf16, #tpu.memory_space<vmem>>, vector<64x64xbf16>
    %cst = arith.constant dense<0.000000e+00> : vector<14x64xf32>
    %3 = tpu.matmul %1, %2, %cst {dimension_numbers = #tpu.dot_dimension_numbers<[1], [0], [0], [1], [0, 0, 1, 1], [], []>} : vector<14x64xbf16>, vector<64x64xbf16>, vector<14x64xf32> -> vector<14x64xf32>
    %c0_3 = arith.constant 0 : index
    %c0_4 = arith.constant 0 : index
    %4 = vector.load %arg3[%c0_3, %c0_4] : memref<1x64xf32, #tpu.memory_space<vmem>>, vector<1x64xf32>
    %5 = vector.broadcast %4 : vector<1x64xf32> to vector<14x64xf32>
    %6 = arith.addf %3, %5 : vector<14x64xf32>
    %cst_5 = arith.constant 0.000000e+00 : f32
    %7 = vector.broadcast %cst_5 : f32 to vector<14x64xf32>
    %8 = arith.maximumf %6, %7 : vector<14x64xf32>
    %9 = arith.truncf %8 : vector<14x64xf32> to vector<14x64xbf16>
    %c0_6 = arith.constant 0 : index
    %c0_7 = arith.constant 0 : index
    %10 = vector.load %arg4[%c0_6, %c0_7] : memref<14x64xbf16, #tpu.memory_space<vmem>>, vector<14x64xbf16>
    tpu.vector_store %arg4[%c0_6, %c0_7], %9 {strides = array<i32>} : memref<14x64xbf16, #tpu.memory_space<vmem>>, vector<14x64xbf16>,
    return
  }
  func.func @transform_0(%arg0: i32) -> (i32, i32) {
    %c0_i32 = arith.constant 0 : i32
    %c0_i32_0 = arith.constant 0 : i32
    return %arg0, %c0_i32 : i32, i32
  }
  func.func @transform_1(%arg0: i32) -> (i32, i32) {
    %c0_i32 = arith.constant 0 : i32
    %c0_i32_0 = arith.constant 0 : i32
    %c0_i32_1 = arith.constant 0 : i32
    return %c0_i32, %c0_i32_0 : i32, i32
  }
  func.func @transform_2(%arg0: i32) -> (i32, i32) {
    %c0_i32 = arith.constant 0 : i32
    %c0_i32_0 = arith.constant 0 : i32
    %c0_i32_1 = arith.constant 0 : i32
    return %c0_i32, %c0_i32_0 : i32, i32
  }
  func.func @transform_3(%arg0: i32) -> (i32, i32) {
    %c0_i32 = arith.constant 0 : i32
    %c0_i32_0 = arith.constant 0 : i32
    return %arg0, %c0_i32 : i32, i32
  }
}

module attributes {stable_mosaic.version = 11 : i64} {
  func.func @_matmul_bias_kernel(%arg0: i32, %arg1: memref<14x64xbf16, #tpu.memory_space<vmem>>, %arg2: memref<64x32xbf16, #tpu.memory_space<vmem>>, %arg3: memref<1x32xf32, #tpu.memory_space<vmem>>, %arg4: memref<14x32xbf16, #tpu.memory_space<vmem>>) attributes {dimension_semantics = [#tpu.dimension_semantics<parallel>], iteration_bounds = array<i64: 1>, scalar_prefetch = 0 : i64, scratch_operands = 0 : i64, tpu.core_type = #tpu.core_type<tc>, window_params = [{transform_indices = @transform_0, window_bounds = array<i64: 14, 64>}, {pipeline_mode = #tpu.pipeline_mode<synchronous>, transform_indices = @transform_1, window_bounds = array<i64: 64, 32>}, {pipeline_mode = #tpu.pipeline_mode<synchronous>, transform_indices = @transform_2, window_bounds = array<i64: 1, 32>}, {transform_indices = @transform_3, window_bounds = array<i64: 14, 32>}]} {
    %c0 = arith.constant 0 : index
    %c0_0 = arith.constant 0 : index
    %0 = vector.load %arg1[%c0, %c0_0] : memref<14x64xbf16, #tpu.memory_space<vmem>>, vector<14x64xbf16>
    %c0_1 = arith.constant 0 : index
    %c0_2 = arith.constant 0 : index
    %1 = vector.load %arg2[%c0_1, %c0_2] : memref<64x32xbf16, #tpu.memory_space<vmem>>, vector<64x32xbf16>
    %cst = arith.constant dense<0.000000e+00> : vector<14x32xf32>
    %2 = tpu.matmul %0, %1, %cst {dimension_numbers = #tpu.dot_dimension_numbers<[1], [0], [0], [1], [0, 0, 1, 1], [], []>} : vector<14x64xbf16>, vector<64x32xbf16>, vector<14x32xf32> -> vector<14x32xf32>
    %c0_3 = arith.constant 0 : index
    %c0_4 = arith.constant 0 : index
    %3 = vector.load %arg3[%c0_3, %c0_4] : memref<1x32xf32, #tpu.memory_space<vmem>>, vector<1x32xf32>
    %4 = vector.broadcast %3 : vector<1x32xf32> to vector<14x32xf32>
    %5 = arith.addf %2, %4 : vector<14x32xf32>
    %6 = arith.truncf %5 : vector<14x32xf32> to vector<14x32xbf16>
    %c0_5 = arith.constant 0 : index
    %c0_6 = arith.constant 0 : index
    %7 = vector.load %arg4[%c0_5, %c0_6] : memref<14x32xbf16, #tpu.memory_space<vmem>>, vector<14x32xbf16>
    tpu.vector_store %arg4[%c0_5, %c0_6], %6 {strides = array<i32>} : memref<14x32xbf16, #tpu.memory_space<vmem>>, vector<14x32xbf16>,
    return
  }
  func.func @transform_0(%arg0: i32) -> (i32, i32) {
    %c0_i32 = arith.constant 0 : i32
    %c0_i32_0 = arith.constant 0 : i32
    return %arg0, %c0_i32 : i32, i32
  }
  func.func @transform_1(%arg0: i32) -> (i32, i32) {
    %c0_i32 = arith.constant 0 : i32
    %c0_i32_0 = arith.constant 0 : i32
    %c0_i32_1 = arith.constant 0 : i32
    return %c0_i32, %c0_i32_0 : i32, i32
  }
  func.func @transform_2(%arg0: i32) -> (i32, i32) {
    %c0_i32 = arith.constant 0 : i32
    %c0_i32_0 = arith.constant 0 : i32
    %c0_i32_1 = arith.constant 0 : i32
    return %c0_i32, %c0_i32_0 : i32, i32
  }
  func.func @transform_3(%arg0: i32) -> (i32, i32) {
    %c0_i32 = arith.constant 0 : i32
    %c0_i32_0 = arith.constant 0 : i32
    return %arg0, %c0_i32 : i32, i32
  }
}

module attributes {stable_mosaic.version = 11 : i64} {
  func.func @_ffn_kernel(%arg0: i32, %arg1: memref<14x32xbf16, #tpu.memory_space<vmem>>, %arg2: memref<1x32xf32, #tpu.memory_space<vmem>>, %arg3: memref<1x32xf32, #tpu.memory_space<vmem>>, %arg4: memref<32x128xbf16, #tpu.memory_space<vmem>>, %arg5: memref<1x128xf32, #tpu.memory_space<vmem>>, %arg6: memref<128x32xbf16, #tpu.memory_space<vmem>>, %arg7: memref<1x32xf32, #tpu.memory_space<vmem>>, %arg8: memref<14x32xbf16, #tpu.memory_space<vmem>>) attributes {dimension_semantics = [#tpu.dimension_semantics<parallel>], iteration_bounds = array<i64: 1>, scalar_prefetch = 0 : i64, scratch_operands = 0 : i64, tpu.core_type = #tpu.core_type<tc>, window_params = [{transform_indices = @transform_0, window_bounds = array<i64: 14, 32>}, {pipeline_mode = #tpu.pipeline_mode<synchronous>, transform_indices = @transform_1, window_bounds = array<i64: 1, 32>}, {pipeline_mode = #tpu.pipeline_mode<synchronous>, transform_indices = @transform_2, window_bounds = array<i64: 1, 32>}, {pipeline_mode = #tpu.pipeline_mode<synchronous>, transform_indices = @transform_3, window_bounds = array<i64: 32, 128>}, {pipeline_mode = #tpu.pipeline_mode<synchronous>, transform_indices = @transform_4, window_bounds = array<i64: 1, 128>}, {pipeline_mode = #tpu.pipeline_mode<synchronous>, transform_indices = @transform_5, window_bounds = array<i64: 128, 32>}, {pipeline_mode = #tpu.pipeline_mode<synchronous>, transform_indices = @transform_6, window_bounds = array<i64: 1, 32>}, {transform_indices = @transform_7, window_bounds = array<i64: 14, 32>}]} {
    %c0 = arith.constant 0 : index
    %c0_0 = arith.constant 0 : index
    %0 = vector.load %arg1[%c0, %c0_0] : memref<14x32xbf16, #tpu.memory_space<vmem>>, vector<14x32xbf16>
    %1 = arith.extf %0 : vector<14x32xbf16> to vector<14x32xf32>
    %c0_1 = arith.constant 0 : index
    %c0_2 = arith.constant 0 : index
    %2 = vector.load %arg2[%c0_1, %c0_2] : memref<1x32xf32, #tpu.memory_space<vmem>>, vector<1x32xf32>
    %c0_3 = arith.constant 0 : index
    %c0_4 = arith.constant 0 : index
    %3 = vector.load %arg3[%c0_3, %c0_4] : memref<1x32xf32, #tpu.memory_space<vmem>>, vector<1x32xf32>
    %cst = arith.constant dense<0.000000e+00> : vector<14xf32>
    %4 = vector.multi_reduction <add>, %1, %cst [1] : vector<14x32xf32> to vector<14xf32>
    %5 = vector.shape_cast %4 : vector<14xf32> to vector<14x1xf32>
    %cst_5 = arith.constant 3.200000e+01 : f32
    %6 = vector.broadcast %cst_5 : f32 to vector<14x1xf32>
    %7 = arith.divf %5, %6 : vector<14x1xf32>
    %8 = vector.broadcast %7 : vector<14x1xf32> to vector<14x32xf32>
    %9 = arith.subf %1, %8 : vector<14x32xf32>
    %10 = arith.mulf %9, %9 : vector<14x32xf32>
    %cst_6 = arith.constant dense<0.000000e+00> : vector<14xf32>
    %11 = vector.multi_reduction <add>, %10, %cst_6 [1] : vector<14x32xf32> to vector<14xf32>
    %12 = vector.shape_cast %11 : vector<14xf32> to vector<14x1xf32>
    %cst_7 = arith.constant 3.200000e+01 : f32
    %13 = vector.broadcast %cst_7 : f32 to vector<14x1xf32>
    %14 = arith.divf %12, %13 : vector<14x1xf32>
    %15 = vector.broadcast %7 : vector<14x1xf32> to vector<14x32xf32>
    %16 = arith.subf %1, %15 : vector<14x32xf32>
    %cst_8 = arith.constant 9.99999974E-6 : f32
    %17 = vector.broadcast %cst_8 : f32 to vector<14x1xf32>
    %18 = arith.addf %14, %17 : vector<14x1xf32>
    %19 = math.rsqrt %18 : vector<14x1xf32>
    %20 = vector.broadcast %19 : vector<14x1xf32> to vector<14x32xf32>
    %21 = arith.mulf %16, %20 : vector<14x32xf32>
    %22 = vector.broadcast %2 : vector<1x32xf32> to vector<14x32xf32>
    %23 = arith.mulf %21, %22 : vector<14x32xf32>
    %24 = vector.broadcast %3 : vector<1x32xf32> to vector<14x32xf32>
    %25 = arith.addf %23, %24 : vector<14x32xf32>
    %26 = arith.truncf %25 : vector<14x32xf32> to vector<14x32xbf16>
    %c0_9 = arith.constant 0 : index
    %c0_10 = arith.constant 0 : index
    %27 = vector.load %arg4[%c0_9, %c0_10] : memref<32x128xbf16, #tpu.memory_space<vmem>>, vector<32x128xbf16>
    %cst_11 = arith.constant dense<0.000000e+00> : vector<14x128xf32>
    %28 = tpu.matmul %26, %27, %cst_11 {dimension_numbers = #tpu.dot_dimension_numbers<[1], [0], [0], [1], [0, 0, 1, 1], [], []>} : vector<14x32xbf16>, vector<32x128xbf16>, vector<14x128xf32> -> vector<14x128xf32>
    %c0_12 = arith.constant 0 : index
    %c0_13 = arith.constant 0 : index
    %29 = vector.load %arg5[%c0_12, %c0_13] : memref<1x128xf32, #tpu.memory_space<vmem>>, vector<1x128xf32>
    %30 = vector.broadcast %29 : vector<1x128xf32> to vector<14x128xf32>
    %31 = arith.addf %28, %30 : vector<14x128xf32>
    %32 = arith.negf %31 : vector<14x128xf32>
    %33 = math.exp %32 : vector<14x128xf32>
    %cst_14 = arith.constant 1.000000e+00 : f32
    %34 = vector.broadcast %cst_14 : f32 to vector<14x128xf32>
    %35 = arith.addf %34, %33 : vector<14x128xf32>
    %36 = arith.divf %34, %35 : vector<14x128xf32>
    %37 = arith.mulf %31, %36 : vector<14x128xf32>
    %38 = arith.truncf %37 : vector<14x128xf32> to vector<14x128xbf16>
    %c0_15 = arith.constant 0 : index
    %c0_16 = arith.constant 0 : index
    %39 = vector.load %arg6[%c0_15, %c0_16] : memref<128x32xbf16, #tpu.memory_space<vmem>>, vector<128x32xbf16>
    %cst_17 = arith.constant dense<0.000000e+00> : vector<14x32xf32>
    %40 = tpu.matmul %38, %39, %cst_17 {dimension_numbers = #tpu.dot_dimension_numbers<[1], [0], [0], [1], [0, 0, 1, 1], [], []>} : vector<14x128xbf16>, vector<128x32xbf16>, vector<14x32xf32> -> vector<14x32xf32>
    %c0_18 = arith.constant 0 : index
    %c0_19 = arith.constant 0 : index
    %41 = vector.load %arg7[%c0_18, %c0_19] : memref<1x32xf32, #tpu.memory_space<vmem>>, vector<1x32xf32>
    %42 = vector.broadcast %41 : vector<1x32xf32> to vector<14x32xf32>
    %43 = arith.addf %40, %42 : vector<14x32xf32>
    %cst_20 = arith.constant 5.000000e-01 : f32
    %44 = vector.broadcast %cst_20 : f32 to vector<14x32xf32>
    %45 = arith.mulf %44, %43 : vector<14x32xf32>
    %46 = arith.addf %1, %45 : vector<14x32xf32>
    %47 = arith.truncf %46 : vector<14x32xf32> to vector<14x32xbf16>
    %c0_21 = arith.constant 0 : index
    %c0_22 = arith.constant 0 : index
    %48 = vector.load %arg8[%c0_21, %c0_22] : memref<14x32xbf16, #tpu.memory_space<vmem>>, vector<14x32xbf16>
    tpu.vector_store %arg8[%c0_21, %c0_22], %47 {strides = array<i32>} : memref<14x32xbf16, #tpu.memory_space<vmem>>, vector<14x32xbf16>,
    return
  }
  func.func @transform_0(%arg0: i32) -> (i32, i32) {
    %c0_i32 = arith.constant 0 : i32
    %c0_i32_0 = arith.constant 0 : i32
    return %arg0, %c0_i32 : i32, i32
  }
  func.func @transform_1(%arg0: i32) -> (i32, i32) {
    %c0_i32 = arith.constant 0 : i32
    %c0_i32_0 = arith.constant 0 : i32
    %c0_i32_1 = arith.constant 0 : i32
    return %c0_i32, %c0_i32_0 : i32, i32
  }
  func.func @transform_2(%arg0: i32) -> (i32, i32) {
    %c0_i32 = arith.constant 0 : i32
    %c0_i32_0 = arith.constant 0 : i32
    %c0_i32_1 = arith.constant 0 : i32
    return %c0_i32, %c0_i32_0 : i32, i32
  }
  func.func @transform_3(%arg0: i32) -> (i32, i32) {
    %c0_i32 = arith.constant 0 : i32
    %c0_i32_0 = arith.constant 0 : i32
    %c0_i32_1 = arith.constant 0 : i32
    return %c0_i32, %c0_i32_0 : i32, i32
  }
  func.func @transform_4(%arg0: i32) -> (i32, i32) {
    %c0_i32 = arith.constant 0 : i32
    %c0_i32_0 = arith.constant 0 : i32
    %c0_i32_1 = arith.constant 0 : i32
    return %c0_i32, %c0_i32_0 : i32, i32
  }
  func.func @transform_5(%arg0: i32) -> (i32, i32) {
    %c0_i32 = arith.constant 0 : i32
    %c0_i32_0 = arith.constant 0 : i32
    %c0_i32_1 = arith.constant 0 : i32
    return %c0_i32, %c0_i32_0 : i32, i32
  }
  func.func @transform_6(%arg0: i32) -> (i32, i32) {
    %c0_i32 = arith.constant 0 : i32
    %c0_i32_0 = arith.constant 0 : i32
    %c0_i32_1 = arith.constant 0 : i32
    return %c0_i32, %c0_i32_0 : i32, i32
  }
  func.func @transform_7(%arg0: i32) -> (i32, i32) {
    %c0_i32 = arith.constant 0 : i32
    %c0_i32_0 = arith.constant 0 : i32
    return %arg0, %c0_i32 : i32, i32
  }
}

module attributes {stable_mosaic.version = 11 : i64} {
  func.func @_ln_qkv_kernel(%arg0: i32, %arg1: i32, %arg2: memref<1x7x32xbf16, #tpu.memory_space<vmem>>, %arg3: memref<7x32xf32, #tpu.memory_space<vmem>>, %arg4: memref<1x32xf32, #tpu.memory_space<vmem>>, %arg5: memref<1x32xf32, #tpu.memory_space<vmem>>, %arg6: memref<32x32xbf16, #tpu.memory_space<vmem>>, %arg7: memref<1x32xf32, #tpu.memory_space<vmem>>, %arg8: memref<32x64xbf16, #tpu.memory_space<vmem>>, %arg9: memref<1x64xf32, #tpu.memory_space<vmem>>, %arg10: memref<1x7x32xbf16, #tpu.memory_space<vmem>>, %arg11: memref<1x7x64xbf16, #tpu.memory_space<vmem>>) attributes {dimension_semantics = [#tpu.dimension_semantics<parallel>, #tpu.dimension_semantics<parallel>], iteration_bounds = array<i64: 2, 1>, scalar_prefetch = 0 : i64, scratch_operands = 0 : i64, tpu.core_type = #tpu.core_type<tc>, window_params = [{transform_indices = @transform_0, window_bounds = array<i64: 1, 7, 32>}, {transform_indices = @transform_1, window_bounds = array<i64: 7, 32>}, {pipeline_mode = #tpu.pipeline_mode<synchronous>, transform_indices = @transform_2, window_bounds = array<i64: 1, 32>}, {pipeline_mode = #tpu.pipeline_mode<synchronous>, transform_indices = @transform_3, window_bounds = array<i64: 1, 32>}, {pipeline_mode = #tpu.pipeline_mode<synchronous>, transform_indices = @transform_4, window_bounds = array<i64: 32, 32>}, {pipeline_mode = #tpu.pipeline_mode<synchronous>, transform_indices = @transform_5, window_bounds = array<i64: 1, 32>}, {pipeline_mode = #tpu.pipeline_mode<synchronous>, transform_indices = @transform_6, window_bounds = array<i64: 32, 64>}, {pipeline_mode = #tpu.pipeline_mode<synchronous>, transform_indices = @transform_7, window_bounds = array<i64: 1, 64>}, {transform_indices = @transform_8, window_bounds = array<i64: 1, 7, 32>}, {transform_indices = @transform_9, window_bounds = array<i64: 1, 7, 64>}]} {
    %c0 = arith.constant 0 : index
    %c0_0 = arith.constant 0 : index
    %c0_1 = arith.constant 0 : index
    %0 = vector.load %arg2[%c0, %c0_0, %c0_1] : memref<1x7x32xbf16, #tpu.memory_space<vmem>>, vector<1x7x32xbf16>
    %1 = vector.shape_cast %0 : vector<1x7x32xbf16> to vector<7x32xbf16>
    %2 = arith.extf %1 : vector<7x32xbf16> to vector<7x32xf32>
    %c0_2 = arith.constant 0 : index
    %c0_3 = arith.constant 0 : index
    %3 = vector.load %arg4[%c0_2, %c0_3] : memref<1x32xf32, #tpu.memory_space<vmem>>, vector<1x32xf32>
    %c0_4 = arith.constant 0 : index
    %c0_5 = arith.constant 0 : index
    %4 = vector.load %arg5[%c0_4, %c0_5] : memref<1x32xf32, #tpu.memory_space<vmem>>, vector<1x32xf32>
    %cst = arith.constant dense<0.000000e+00> : vector<7xf32>
    %5 = vector.multi_reduction <add>, %2, %cst [1] : vector<7x32xf32> to vector<7xf32>
    %6 = vector.shape_cast %5 : vector<7xf32> to vector<7x1xf32>
    %cst_6 = arith.constant 3.200000e+01 : f32
    %7 = vector.broadcast %cst_6 : f32 to vector<7x1xf32>
    %8 = arith.divf %6, %7 : vector<7x1xf32>
    %9 = vector.broadcast %8 : vector<7x1xf32> to vector<7x32xf32>
    %10 = arith.subf %2, %9 : vector<7x32xf32>
    %11 = arith.mulf %10, %10 : vector<7x32xf32>
    %cst_7 = arith.constant dense<0.000000e+00> : vector<7xf32>
    %12 = vector.multi_reduction <add>, %11, %cst_7 [1] : vector<7x32xf32> to vector<7xf32>
    %13 = vector.shape_cast %12 : vector<7xf32> to vector<7x1xf32>
    %cst_8 = arith.constant 3.200000e+01 : f32
    %14 = vector.broadcast %cst_8 : f32 to vector<7x1xf32>
    %15 = arith.divf %13, %14 : vector<7x1xf32>
    %16 = vector.broadcast %8 : vector<7x1xf32> to vector<7x32xf32>
    %17 = arith.subf %2, %16 : vector<7x32xf32>
    %cst_9 = arith.constant 9.99999974E-6 : f32
    %18 = vector.broadcast %cst_9 : f32 to vector<7x1xf32>
    %19 = arith.addf %15, %18 : vector<7x1xf32>
    %20 = math.rsqrt %19 : vector<7x1xf32>
    %21 = vector.broadcast %20 : vector<7x1xf32> to vector<7x32xf32>
    %22 = arith.mulf %17, %21 : vector<7x32xf32>
    %23 = vector.broadcast %3 : vector<1x32xf32> to vector<7x32xf32>
    %24 = arith.mulf %22, %23 : vector<7x32xf32>
    %25 = vector.broadcast %4 : vector<1x32xf32> to vector<7x32xf32>
    %26 = arith.addf %24, %25 : vector<7x32xf32>
    %c0_10 = arith.constant 0 : index
    %c0_11 = arith.constant 0 : index
    %27 = vector.load %arg3[%c0_10, %c0_11] : memref<7x32xf32, #tpu.memory_space<vmem>>, vector<7x32xf32>
    %28 = arith.addf %26, %27 : vector<7x32xf32>
    %29 = arith.truncf %28 : vector<7x32xf32> to vector<7x32xbf16>
    %c0_12 = arith.constant 0 : index
    %c0_13 = arith.constant 0 : index
    %30 = vector.load %arg6[%c0_12, %c0_13] : memref<32x32xbf16, #tpu.memory_space<vmem>>, vector<32x32xbf16>
    %cst_14 = arith.constant dense<0.000000e+00> : vector<7x32xf32>
    %31 = tpu.matmul %29, %30, %cst_14 {dimension_numbers = #tpu.dot_dimension_numbers<[1], [0], [0], [1], [0, 0, 1, 1], [], []>} : vector<7x32xbf16>, vector<32x32xbf16>, vector<7x32xf32> -> vector<7x32xf32>
    %c0_15 = arith.constant 0 : index
    %c0_16 = arith.constant 0 : index
    %32 = vector.load %arg7[%c0_15, %c0_16] : memref<1x32xf32, #tpu.memory_space<vmem>>, vector<1x32xf32>
    %33 = vector.broadcast %32 : vector<1x32xf32> to vector<7x32xf32>
    %34 = arith.addf %31, %33 : vector<7x32xf32>
    %c0_17 = arith.constant 0 : index
    %c0_18 = arith.constant 0 : index
    %35 = vector.load %arg8[%c0_17, %c0_18] : memref<32x64xbf16, #tpu.memory_space<vmem>>, vector<32x64xbf16>
    %cst_19 = arith.constant dense<0.000000e+00> : vector<7x64xf32>
    %36 = tpu.matmul %29, %35, %cst_19 {dimension_numbers = #tpu.dot_dimension_numbers<[1], [0], [0], [1], [0, 0, 1, 1], [], []>} : vector<7x32xbf16>, vector<32x64xbf16>, vector<7x64xf32> -> vector<7x64xf32>
    %c0_20 = arith.constant 0 : index
    %c0_21 = arith.constant 0 : index
    %37 = vector.load %arg9[%c0_20, %c0_21] : memref<1x64xf32, #tpu.memory_space<vmem>>, vector<1x64xf32>
    %38 = vector.broadcast %37 : vector<1x64xf32> to vector<7x64xf32>
    %39 = arith.addf %36, %38 : vector<7x64xf32>
    %40 = arith.truncf %34 : vector<7x32xf32> to vector<7x32xbf16>
    %c0_22 = arith.constant 0 : index
    %c0_23 = arith.constant 0 : index
    %c0_24 = arith.constant 0 : index
    %41 = vector.load %arg10[%c0_22, %c0_23, %c0_24] : memref<1x7x32xbf16, #tpu.memory_space<vmem>>, vector<1x7x32xbf16>
    %42 = vector.shape_cast %41 : vector<1x7x32xbf16> to vector<7x32xbf16>
    %43 = vector.shape_cast %40 : vector<7x32xbf16> to vector<1x7x32xbf16>
    tpu.vector_store %arg10[%c0_22, %c0_23, %c0_24], %43 {strides = array<i32>} : memref<1x7x32xbf16, #tpu.memory_space<vmem>>, vector<1x7x32xbf16>,
    %44 = arith.truncf %39 : vector<7x64xf32> to vector<7x64xbf16>
    %c0_25 = arith.constant 0 : index
    %c0_26 = arith.constant 0 : index
    %c0_27 = arith.constant 0 : index
    %45 = vector.load %arg11[%c0_25, %c0_26, %c0_27] : memref<1x7x64xbf16, #tpu.memory_space<vmem>>, vector<1x7x64xbf16>
    %46 = vector.shape_cast %45 : vector<1x7x64xbf16> to vector<7x64xbf16>
    %47 = vector.shape_cast %44 : vector<7x64xbf16> to vector<1x7x64xbf16>
    tpu.vector_store %arg11[%c0_25, %c0_26, %c0_27], %47 {strides = array<i32>} : memref<1x7x64xbf16, #tpu.memory_space<vmem>>, vector<1x7x64xbf16>,
    return
  }
  func.func @transform_0(%arg0: i32, %arg1: i32) -> (i32, i32, i32) {
    %c0_i32 = arith.constant 0 : i32
    %c0_i32_0 = arith.constant 0 : i32
    return %arg0, %arg1, %c0_i32 : i32, i32, i32
  }
  func.func @transform_1(%arg0: i32, %arg1: i32) -> (i32, i32) {
    %c0_i32 = arith.constant 0 : i32
    %c0_i32_0 = arith.constant 0 : i32
    return %arg1, %c0_i32 : i32, i32
  }
  func.func @transform_2(%arg0: i32, %arg1: i32) -> (i32, i32) {
    %c0_i32 = arith.constant 0 : i32
    %c0_i32_0 = arith.constant 0 : i32
    %c0_i32_1 = arith.constant 0 : i32
    return %c0_i32, %c0_i32_0 : i32, i32
  }
  func.func @transform_3(%arg0: i32, %arg1: i32) -> (i32, i32) {
    %c0_i32 = arith.constant 0 : i32
    %c0_i32_0 = arith.constant 0 : i32
    %c0_i32_1 = arith.constant 0 : i32
    return %c0_i32, %c0_i32_0 : i32, i32
  }
  func.func @transform_4(%arg0: i32, %arg1: i32) -> (i32, i32) {
    %c0_i32 = arith.constant 0 : i32
    %c0_i32_0 = arith.constant 0 : i32
    %c0_i32_1 = arith.constant 0 : i32
    return %c0_i32, %c0_i32_0 : i32, i32
  }
  func.func @transform_5(%arg0: i32, %arg1: i32) -> (i32, i32) {
    %c0_i32 = arith.constant 0 : i32
    %c0_i32_0 = arith.constant 0 : i32
    %c0_i32_1 = arith.constant 0 : i32
    return %c0_i32, %c0_i32_0 : i32, i32
  }
  func.func @transform_6(%arg0: i32, %arg1: i32) -> (i32, i32) {
    %c0_i32 = arith.constant 0 : i32
    %c0_i32_0 = arith.constant 0 : i32
    %c0_i32_1 = arith.constant 0 : i32
    return %c0_i32, %c0_i32_0 : i32, i32
  }
  func.func @transform_7(%arg0: i32, %arg1: i32) -> (i32, i32) {
    %c0_i32 = arith.constant 0 : i32
    %c0_i32_0 = arith.constant 0 : i32
    %c0_i32_1 = arith.constant 0 : i32
    return %c0_i32, %c0_i32_0 : i32, i32
  }
  func.func @transform_8(%arg0: i32, %arg1: i32) -> (i32, i32, i32) {
    %c0_i32 = arith.constant 0 : i32
    %c0_i32_0 = arith.constant 0 : i32
    return %arg0, %arg1, %c0_i32 : i32, i32, i32
  }
  func.func @transform_9(%arg0: i32, %arg1: i32) -> (i32, i32, i32) {
    %c0_i32 = arith.constant 0 : i32
    %c0_i32_0 = arith.constant 0 : i32
    return %arg0, %arg1, %c0_i32 : i32, i32, i32
  }
}

module attributes {stable_mosaic.version = 11 : i64} {
  func.func @_attention_kernel(%arg0: i32, %arg1: i32, %arg2: memref<1x7x32xbf16, #tpu.memory_space<vmem>>, %arg3: memref<1x7x64xbf16, #tpu.memory_space<vmem>>, %arg4: memref<1x7x32xbf16, #tpu.memory_space<vmem>>, %arg5: memref<32x32xbf16, #tpu.memory_space<vmem>>, %arg6: memref<1x32xf32, #tpu.memory_space<vmem>>, %arg7: memref<1x7x32xbf16, #tpu.memory_space<vmem>>) attributes {dimension_semantics = [#tpu.dimension_semantics<parallel>, #tpu.dimension_semantics<parallel>], iteration_bounds = array<i64: 2, 1>, scalar_prefetch = 0 : i64, scratch_operands = 0 : i64, tpu.core_type = #tpu.core_type<tc>, window_params = [{transform_indices = @transform_0, window_bounds = array<i64: 1, 7, 32>}, {transform_indices = @transform_1, window_bounds = array<i64: 1, 7, 64>}, {transform_indices = @transform_2, window_bounds = array<i64: 1, 7, 32>}, {pipeline_mode = #tpu.pipeline_mode<synchronous>, transform_indices = @transform_3, window_bounds = array<i64: 32, 32>}, {pipeline_mode = #tpu.pipeline_mode<synchronous>, transform_indices = @transform_4, window_bounds = array<i64: 1, 32>}, {transform_indices = @transform_5, window_bounds = array<i64: 1, 7, 32>}]} {
    %cst = arith.constant 0.000000e+00 : f32
    %0 = vector.broadcast %cst : f32 to vector<7x32xf32>
    %c0 = arith.constant 0 : index
    %c0_0 = arith.constant 0 : index
    %c0_1 = arith.constant 0 : index
    %1 = vector.load %arg2[%c0, %c0_0, %c0_1] : memref<1x7x32xbf16, #tpu.memory_space<vmem>>, vector<1x7x8xbf16>
    %2 = vector.shape_cast %1 : vector<1x7x8xbf16> to vector<7x8xbf16>
    %c0_2 = arith.constant 0 : index
    %c0_3 = arith.constant 0 : index
    %c0_4 = arith.constant 0 : index
    %3 = vector.load %arg3[%c0_2, %c0_3, %c0_4] : memref<1x7x64xbf16, #tpu.memory_space<vmem>>, vector<1x7x8xbf16>
    %4 = vector.shape_cast %3 : vector<1x7x8xbf16> to vector<7x8xbf16>
    %c0_5 = arith.constant 0 : index
    %c0_6 = arith.constant 0 : index
    %c32 = arith.constant 32 : index
    %5 = vector.load %arg3[%c0_5, %c0_6, %c32] : memref<1x7x64xbf16, #tpu.memory_space<vmem>>, vector<1x7x8xbf16>
    %6 = vector.shape_cast %5 : vector<1x7x8xbf16> to vector<7x8xbf16>
    %cst_7 = arith.constant dense<0.000000e+00> : vector<7x7xf32>
    %7 = tpu.matmul %2, %4, %cst_7 {dimension_numbers = #tpu.dot_dimension_numbers<[1], [1], [0], [0], [0, 0, 1, 0], [], []>} : vector<7x8xbf16>, vector<7x8xbf16>, vector<7x7xf32> -> vector<7x7xf32>
    %cst_8 = arith.constant 0.353553385 : f32
    %8 = vector.broadcast %cst_8 : f32 to vector<7x7xf32>
    %9 = arith.mulf %7, %8 : vector<7x7xf32>
    %cst_9 = arith.constant dense<0xFF800000> : vector<7xf32>
    %10 = vector.multi_reduction <maximumf>, %9, %cst_9 [1] : vector<7x7xf32> to vector<7xf32>
    %11 = vector.shape_cast %10 : vector<7xf32> to vector<7x1xf32>
    %12 = vector.broadcast %11 : vector<7x1xf32> to vector<7x7xf32>
    %13 = arith.subf %9, %12 : vector<7x7xf32>
    %14 = math.exp %13 : vector<7x7xf32>
    %cst_10 = arith.constant dense<0.000000e+00> : vector<7xf32>
    %15 = vector.multi_reduction <add>, %14, %cst_10 [1] : vector<7x7xf32> to vector<7xf32>
    %16 = vector.shape_cast %15 : vector<7xf32> to vector<7x1xf32>
    %17 = tpu.reciprocal %16 {approx = true} : vector<7x1xf32> -> vector<7x1xf32>
    %18 = vector.broadcast %17 : vector<7x1xf32> to vector<7x7xf32>
    %19 = arith.mulf %14, %18 : vector<7x7xf32>
    %20 = arith.truncf %19 : vector<7x7xf32> to vector<7x7xbf16>
    %cst_11 = arith.constant dense<0.000000e+00> : vector<7x8xf32>
    %21 = tpu.matmul %20, %6, %cst_11 {dimension_numbers = #tpu.dot_dimension_numbers<[1], [0], [0], [1], [0, 0, 1, 1], [], []>} : vector<7x7xbf16>, vector<7x8xbf16>, vector<7x8xf32> -> vector<7x8xf32>
    %22 = arith.truncf %21 : vector<7x8xf32> to vector<7x8xbf16>
    %c0_12 = arith.constant 0 : index
    %c0_13 = arith.constant 0 : index
    %23 = vector.load %arg5[%c0_12, %c0_13] : memref<32x32xbf16, #tpu.memory_space<vmem>>, vector<8x32xbf16>
    %cst_14 = arith.constant dense<0.000000e+00> : vector<7x32xf32>
    %24 = tpu.matmul %22, %23, %cst_14 {dimension_numbers = #tpu.dot_dimension_numbers<[1], [0], [0], [1], [0, 0, 1, 1], [], []>} : vector<7x8xbf16>, vector<8x32xbf16>, vector<7x32xf32> -> vector<7x32xf32>
    %25 = arith.addf %0, %24 : vector<7x32xf32>
    %c0_15 = arith.constant 0 : index
    %c0_16 = arith.constant 0 : index
    %c8 = arith.constant 8 : index
    %26 = vector.load %arg2[%c0_15, %c0_16, %c8] : memref<1x7x32xbf16, #tpu.memory_space<vmem>>, vector<1x7x8xbf16>
    %27 = vector.shape_cast %26 : vector<1x7x8xbf16> to vector<7x8xbf16>
    %c0_17 = arith.constant 0 : index
    %c0_18 = arith.constant 0 : index
    %c8_19 = arith.constant 8 : index
    %28 = vector.load %arg3[%c0_17, %c0_18, %c8_19] : memref<1x7x64xbf16, #tpu.memory_space<vmem>>, vector<1x7x8xbf16>
    %29 = vector.shape_cast %28 : vector<1x7x8xbf16> to vector<7x8xbf16>
    %c0_20 = arith.constant 0 : index
    %c0_21 = arith.constant 0 : index
    %c40 = arith.constant 40 : index
    %30 = vector.load %arg3[%c0_20, %c0_21, %c40] : memref<1x7x64xbf16, #tpu.memory_space<vmem>>, vector<1x7x8xbf16>
    %31 = vector.shape_cast %30 : vector<1x7x8xbf16> to vector<7x8xbf16>
    %cst_22 = arith.constant dense<0.000000e+00> : vector<7x7xf32>
    %32 = tpu.matmul %27, %29, %cst_22 {dimension_numbers = #tpu.dot_dimension_numbers<[1], [1], [0], [0], [0, 0, 1, 0], [], []>} : vector<7x8xbf16>, vector<7x8xbf16>, vector<7x7xf32> -> vector<7x7xf32>
    %cst_23 = arith.constant 0.353553385 : f32
    %33 = vector.broadcast %cst_23 : f32 to vector<7x7xf32>
    %34 = arith.mulf %32, %33 : vector<7x7xf32>
    %cst_24 = arith.constant dense<0xFF800000> : vector<7xf32>
    %35 = vector.multi_reduction <maximumf>, %34, %cst_24 [1] : vector<7x7xf32> to vector<7xf32>
    %36 = vector.shape_cast %35 : vector<7xf32> to vector<7x1xf32>
    %37 = vector.broadcast %36 : vector<7x1xf32> to vector<7x7xf32>
    %38 = arith.subf %34, %37 : vector<7x7xf32>
    %39 = math.exp %38 : vector<7x7xf32>
    %cst_25 = arith.constant dense<0.000000e+00> : vector<7xf32>
    %40 = vector.multi_reduction <add>, %39, %cst_25 [1] : vector<7x7xf32> to vector<7xf32>
    %41 = vector.shape_cast %40 : vector<7xf32> to vector<7x1xf32>
    %42 = tpu.reciprocal %41 {approx = true} : vector<7x1xf32> -> vector<7x1xf32>
    %43 = vector.broadcast %42 : vector<7x1xf32> to vector<7x7xf32>
    %44 = arith.mulf %39, %43 : vector<7x7xf32>
    %45 = arith.truncf %44 : vector<7x7xf32> to vector<7x7xbf16>
    %cst_26 = arith.constant dense<0.000000e+00> : vector<7x8xf32>
    %46 = tpu.matmul %45, %31, %cst_26 {dimension_numbers = #tpu.dot_dimension_numbers<[1], [0], [0], [1], [0, 0, 1, 1], [], []>} : vector<7x7xbf16>, vector<7x8xbf16>, vector<7x8xf32> -> vector<7x8xf32>
    %47 = arith.truncf %46 : vector<7x8xf32> to vector<7x8xbf16>
    %c8_27 = arith.constant 8 : index
    %c0_28 = arith.constant 0 : index
    %48 = vector.load %arg5[%c8_27, %c0_28] : memref<32x32xbf16, #tpu.memory_space<vmem>>, vector<8x32xbf16>
    %cst_29 = arith.constant dense<0.000000e+00> : vector<7x32xf32>
    %49 = tpu.matmul %47, %48, %cst_29 {dimension_numbers = #tpu.dot_dimension_numbers<[1], [0], [0], [1], [0, 0, 1, 1], [], []>} : vector<7x8xbf16>, vector<8x32xbf16>, vector<7x32xf32> -> vector<7x32xf32>
    %50 = arith.addf %25, %49 : vector<7x32xf32>
    %c0_30 = arith.constant 0 : index
    %c0_31 = arith.constant 0 : index
    %c16 = arith.constant 16 : index
    %51 = vector.load %arg2[%c0_30, %c0_31, %c16] : memref<1x7x32xbf16, #tpu.memory_space<vmem>>, vector<1x7x8xbf16>
    %52 = vector.shape_cast %51 : vector<1x7x8xbf16> to vector<7x8xbf16>
    %c0_32 = arith.constant 0 : index
    %c0_33 = arith.constant 0 : index
    %c16_34 = arith.constant 16 : index
    %53 = vector.load %arg3[%c0_32, %c0_33, %c16_34] : memref<1x7x64xbf16, #tpu.memory_space<vmem>>, vector<1x7x8xbf16>
    %54 = vector.shape_cast %53 : vector<1x7x8xbf16> to vector<7x8xbf16>
    %c0_35 = arith.constant 0 : index
    %c0_36 = arith.constant 0 : index
    %c48 = arith.constant 48 : index
    %55 = vector.load %arg3[%c0_35, %c0_36, %c48] : memref<1x7x64xbf16, #tpu.memory_space<vmem>>, vector<1x7x8xbf16>
    %56 = vector.shape_cast %55 : vector<1x7x8xbf16> to vector<7x8xbf16>
    %cst_37 = arith.constant dense<0.000000e+00> : vector<7x7xf32>
    %57 = tpu.matmul %52, %54, %cst_37 {dimension_numbers = #tpu.dot_dimension_numbers<[1], [1], [0], [0], [0, 0, 1, 0], [], []>} : vector<7x8xbf16>, vector<7x8xbf16>, vector<7x7xf32> -> vector<7x7xf32>
    %cst_38 = arith.constant 0.353553385 : f32
    %58 = vector.broadcast %cst_38 : f32 to vector<7x7xf32>
    %59 = arith.mulf %57, %58 : vector<7x7xf32>
    %cst_39 = arith.constant dense<0xFF800000> : vector<7xf32>
    %60 = vector.multi_reduction <maximumf>, %59, %cst_39 [1] : vector<7x7xf32> to vector<7xf32>
    %61 = vector.shape_cast %60 : vector<7xf32> to vector<7x1xf32>
    %62 = vector.broadcast %61 : vector<7x1xf32> to vector<7x7xf32>
    %63 = arith.subf %59, %62 : vector<7x7xf32>
    %64 = math.exp %63 : vector<7x7xf32>
    %cst_40 = arith.constant dense<0.000000e+00> : vector<7xf32>
    %65 = vector.multi_reduction <add>, %64, %cst_40 [1] : vector<7x7xf32> to vector<7xf32>
    %66 = vector.shape_cast %65 : vector<7xf32> to vector<7x1xf32>
    %67 = tpu.reciprocal %66 {approx = true} : vector<7x1xf32> -> vector<7x1xf32>
    %68 = vector.broadcast %67 : vector<7x1xf32> to vector<7x7xf32>
    %69 = arith.mulf %64, %68 : vector<7x7xf32>
    %70 = arith.truncf %69 : vector<7x7xf32> to vector<7x7xbf16>
    %cst_41 = arith.constant dense<0.000000e+00> : vector<7x8xf32>
    %71 = tpu.matmul %70, %56, %cst_41 {dimension_numbers = #tpu.dot_dimension_numbers<[1], [0], [0], [1], [0, 0, 1, 1], [], []>} : vector<7x7xbf16>, vector<7x8xbf16>, vector<7x8xf32> -> vector<7x8xf32>
    %72 = arith.truncf %71 : vector<7x8xf32> to vector<7x8xbf16>
    %c16_42 = arith.constant 16 : index
    %c0_43 = arith.constant 0 : index
    %73 = vector.load %arg5[%c16_42, %c0_43] : memref<32x32xbf16, #tpu.memory_space<vmem>>, vector<8x32xbf16>
    %cst_44 = arith.constant dense<0.000000e+00> : vector<7x32xf32>
    %74 = tpu.matmul %72, %73, %cst_44 {dimension_numbers = #tpu.dot_dimension_numbers<[1], [0], [0], [1], [0, 0, 1, 1], [], []>} : vector<7x8xbf16>, vector<8x32xbf16>, vector<7x32xf32> -> vector<7x32xf32>
    %75 = arith.addf %50, %74 : vector<7x32xf32>
    %c0_45 = arith.constant 0 : index
    %c0_46 = arith.constant 0 : index
    %c24 = arith.constant 24 : index
    %76 = vector.load %arg2[%c0_45, %c0_46, %c24] : memref<1x7x32xbf16, #tpu.memory_space<vmem>>, vector<1x7x8xbf16>
    %77 = vector.shape_cast %76 : vector<1x7x8xbf16> to vector<7x8xbf16>
    %c0_47 = arith.constant 0 : index
    %c0_48 = arith.constant 0 : index
    %c24_49 = arith.constant 24 : index
    %78 = vector.load %arg3[%c0_47, %c0_48, %c24_49] : memref<1x7x64xbf16, #tpu.memory_space<vmem>>, vector<1x7x8xbf16>
    %79 = vector.shape_cast %78 : vector<1x7x8xbf16> to vector<7x8xbf16>
    %c0_50 = arith.constant 0 : index
    %c0_51 = arith.constant 0 : index
    %c56 = arith.constant 56 : index
    %80 = vector.load %arg3[%c0_50, %c0_51, %c56] : memref<1x7x64xbf16, #tpu.memory_space<vmem>>, vector<1x7x8xbf16>
    %81 = vector.shape_cast %80 : vector<1x7x8xbf16> to vector<7x8xbf16>
    %cst_52 = arith.constant dense<0.000000e+00> : vector<7x7xf32>
    %82 = tpu.matmul %77, %79, %cst_52 {dimension_numbers = #tpu.dot_dimension_numbers<[1], [1], [0], [0], [0, 0, 1, 0], [], []>} : vector<7x8xbf16>, vector<7x8xbf16>, vector<7x7xf32> -> vector<7x7xf32>
    %cst_53 = arith.constant 0.353553385 : f32
    %83 = vector.broadcast %cst_53 : f32 to vector<7x7xf32>
    %84 = arith.mulf %82, %83 : vector<7x7xf32>
    %cst_54 = arith.constant dense<0xFF800000> : vector<7xf32>
    %85 = vector.multi_reduction <maximumf>, %84, %cst_54 [1] : vector<7x7xf32> to vector<7xf32>
    %86 = vector.shape_cast %85 : vector<7xf32> to vector<7x1xf32>
    %87 = vector.broadcast %86 : vector<7x1xf32> to vector<7x7xf32>
    %88 = arith.subf %84, %87 : vector<7x7xf32>
    %89 = math.exp %88 : vector<7x7xf32>
    %cst_55 = arith.constant dense<0.000000e+00> : vector<7xf32>
    %90 = vector.multi_reduction <add>, %89, %cst_55 [1] : vector<7x7xf32> to vector<7xf32>
    %91 = vector.shape_cast %90 : vector<7xf32> to vector<7x1xf32>
    %92 = tpu.reciprocal %91 {approx = true} : vector<7x1xf32> -> vector<7x1xf32>
    %93 = vector.broadcast %92 : vector<7x1xf32> to vector<7x7xf32>
    %94 = arith.mulf %89, %93 : vector<7x7xf32>
    %95 = arith.truncf %94 : vector<7x7xf32> to vector<7x7xbf16>
    %cst_56 = arith.constant dense<0.000000e+00> : vector<7x8xf32>
    %96 = tpu.matmul %95, %81, %cst_56 {dimension_numbers = #tpu.dot_dimension_numbers<[1], [0], [0], [1], [0, 0, 1, 1], [], []>} : vector<7x7xbf16>, vector<7x8xbf16>, vector<7x8xf32> -> vector<7x8xf32>
    %97 = arith.truncf %96 : vector<7x8xf32> to vector<7x8xbf16>
    %c24_57 = arith.constant 24 : index
    %c0_58 = arith.constant 0 : index
    %98 = vector.load %arg5[%c24_57, %c0_58] : memref<32x32xbf16, #tpu.memory_space<vmem>>, vector<8x32xbf16>
    %cst_59 = arith.constant dense<0.000000e+00> : vector<7x32xf32>
    %99 = tpu.matmul %97, %98, %cst_59 {dimension_numbers = #tpu.dot_dimension_numbers<[1], [0], [0], [1], [0, 0, 1, 1], [], []>} : vector<7x8xbf16>, vector<8x32xbf16>, vector<7x32xf32> -> vector<7x32xf32>
    %100 = arith.addf %75, %99 : vector<7x32xf32>
    %c0_60 = arith.constant 0 : index
    %c0_61 = arith.constant 0 : index
    %101 = vector.load %arg6[%c0_60, %c0_61] : memref<1x32xf32, #tpu.memory_space<vmem>>, vector<1x32xf32>
    %102 = vector.broadcast %101 : vector<1x32xf32> to vector<7x32xf32>
    %103 = arith.addf %100, %102 : vector<7x32xf32>
    %c0_62 = arith.constant 0 : index
    %c0_63 = arith.constant 0 : index
    %c0_64 = arith.constant 0 : index
    %104 = vector.load %arg4[%c0_62, %c0_63, %c0_64] : memref<1x7x32xbf16, #tpu.memory_space<vmem>>, vector<1x7x32xbf16>
    %105 = vector.shape_cast %104 : vector<1x7x32xbf16> to vector<7x32xbf16>
    %106 = arith.extf %105 : vector<7x32xbf16> to vector<7x32xf32>
    %107 = arith.addf %106, %103 : vector<7x32xf32>
    %108 = arith.truncf %107 : vector<7x32xf32> to vector<7x32xbf16>
    %c0_65 = arith.constant 0 : index
    %c0_66 = arith.constant 0 : index
    %c0_67 = arith.constant 0 : index
    %109 = vector.load %arg7[%c0_65, %c0_66, %c0_67] : memref<1x7x32xbf16, #tpu.memory_space<vmem>>, vector<1x7x32xbf16>
    %110 = vector.shape_cast %109 : vector<1x7x32xbf16> to vector<7x32xbf16>
    %111 = vector.shape_cast %108 : vector<7x32xbf16> to vector<1x7x32xbf16>
    tpu.vector_store %arg7[%c0_65, %c0_66, %c0_67], %111 {strides = array<i32>} : memref<1x7x32xbf16, #tpu.memory_space<vmem>>, vector<1x7x32xbf16>,
    return
  }
  func.func @transform_0(%arg0: i32, %arg1: i32) -> (i32, i32, i32) {
    %c0_i32 = arith.constant 0 : i32
    %c0_i32_0 = arith.constant 0 : i32
    return %arg0, %arg1, %c0_i32 : i32, i32, i32
  }
  func.func @transform_1(%arg0: i32, %arg1: i32) -> (i32, i32, i32) {
    %c0_i32 = arith.constant 0 : i32
    %c0_i32_0 = arith.constant 0 : i32
    %c0_i32_1 = arith.constant 0 : i32
    return %arg0, %c0_i32, %c0_i32_0 : i32, i32, i32
  }
  func.func @transform_2(%arg0: i32, %arg1: i32) -> (i32, i32, i32) {
    %c0_i32 = arith.constant 0 : i32
    %c0_i32_0 = arith.constant 0 : i32
    return %arg0, %arg1, %c0_i32 : i32, i32, i32
  }
  func.func @transform_3(%arg0: i32, %arg1: i32) -> (i32, i32) {
    %c0_i32 = arith.constant 0 : i32
    %c0_i32_0 = arith.constant 0 : i32
    %c0_i32_1 = arith.constant 0 : i32
    return %c0_i32, %c0_i32_0 : i32, i32
  }
  func.func @transform_4(%arg0: i32, %arg1: i32) -> (i32, i32) {
    %c0_i32 = arith.constant 0 : i32
    %c0_i32_0 = arith.constant 0 : i32
    %c0_i32_1 = arith.constant 0 : i32
    return %c0_i32, %c0_i32_0 : i32, i32
  }
  func.func @transform_5(%arg0: i32, %arg1: i32) -> (i32, i32, i32) {
    %c0_i32 = arith.constant 0 : i32
    %c0_i32_0 = arith.constant 0 : i32
    return %arg0, %arg1, %c0_i32 : i32, i32, i32
  }
}

module attributes {stable_mosaic.version = 11 : i64} {
  func.func @_ln_glu_kernel(%arg0: i32, %arg1: memref<14x32xbf16, #tpu.memory_space<vmem>>, %arg2: memref<1x32xf32, #tpu.memory_space<vmem>>, %arg3: memref<1x32xf32, #tpu.memory_space<vmem>>, %arg4: memref<32x32xbf16, #tpu.memory_space<vmem>>, %arg5: memref<1x32xf32, #tpu.memory_space<vmem>>, %arg6: memref<32x32xbf16, #tpu.memory_space<vmem>>, %arg7: memref<1x32xf32, #tpu.memory_space<vmem>>, %arg8: memref<14x32xbf16, #tpu.memory_space<vmem>>) attributes {dimension_semantics = [#tpu.dimension_semantics<parallel>], iteration_bounds = array<i64: 1>, scalar_prefetch = 0 : i64, scratch_operands = 0 : i64, tpu.core_type = #tpu.core_type<tc>, window_params = [{transform_indices = @transform_0, window_bounds = array<i64: 14, 32>}, {pipeline_mode = #tpu.pipeline_mode<synchronous>, transform_indices = @transform_1, window_bounds = array<i64: 1, 32>}, {pipeline_mode = #tpu.pipeline_mode<synchronous>, transform_indices = @transform_2, window_bounds = array<i64: 1, 32>}, {pipeline_mode = #tpu.pipeline_mode<synchronous>, transform_indices = @transform_3, window_bounds = array<i64: 32, 32>}, {pipeline_mode = #tpu.pipeline_mode<synchronous>, transform_indices = @transform_4, window_bounds = array<i64: 1, 32>}, {pipeline_mode = #tpu.pipeline_mode<synchronous>, transform_indices = @transform_5, window_bounds = array<i64: 32, 32>}, {pipeline_mode = #tpu.pipeline_mode<synchronous>, transform_indices = @transform_6, window_bounds = array<i64: 1, 32>}, {transform_indices = @transform_7, window_bounds = array<i64: 14, 32>}]} {
    %c0 = arith.constant 0 : index
    %c0_0 = arith.constant 0 : index
    %0 = vector.load %arg1[%c0, %c0_0] : memref<14x32xbf16, #tpu.memory_space<vmem>>, vector<14x32xbf16>
    %1 = arith.extf %0 : vector<14x32xbf16> to vector<14x32xf32>
    %c0_1 = arith.constant 0 : index
    %c0_2 = arith.constant 0 : index
    %2 = vector.load %arg2[%c0_1, %c0_2] : memref<1x32xf32, #tpu.memory_space<vmem>>, vector<1x32xf32>
    %c0_3 = arith.constant 0 : index
    %c0_4 = arith.constant 0 : index
    %3 = vector.load %arg3[%c0_3, %c0_4] : memref<1x32xf32, #tpu.memory_space<vmem>>, vector<1x32xf32>
    %cst = arith.constant dense<0.000000e+00> : vector<14xf32>
    %4 = vector.multi_reduction <add>, %1, %cst [1] : vector<14x32xf32> to vector<14xf32>
    %5 = vector.shape_cast %4 : vector<14xf32> to vector<14x1xf32>
    %cst_5 = arith.constant 3.200000e+01 : f32
    %6 = vector.broadcast %cst_5 : f32 to vector<14x1xf32>
    %7 = arith.divf %5, %6 : vector<14x1xf32>
    %8 = vector.broadcast %7 : vector<14x1xf32> to vector<14x32xf32>
    %9 = arith.subf %1, %8 : vector<14x32xf32>
    %10 = arith.mulf %9, %9 : vector<14x32xf32>
    %cst_6 = arith.constant dense<0.000000e+00> : vector<14xf32>
    %11 = vector.multi_reduction <add>, %10, %cst_6 [1] : vector<14x32xf32> to vector<14xf32>
    %12 = vector.shape_cast %11 : vector<14xf32> to vector<14x1xf32>
    %cst_7 = arith.constant 3.200000e+01 : f32
    %13 = vector.broadcast %cst_7 : f32 to vector<14x1xf32>
    %14 = arith.divf %12, %13 : vector<14x1xf32>
    %15 = vector.broadcast %7 : vector<14x1xf32> to vector<14x32xf32>
    %16 = arith.subf %1, %15 : vector<14x32xf32>
    %cst_8 = arith.constant 9.99999974E-6 : f32
    %17 = vector.broadcast %cst_8 : f32 to vector<14x1xf32>
    %18 = arith.addf %14, %17 : vector<14x1xf32>
    %19 = math.rsqrt %18 : vector<14x1xf32>
    %20 = vector.broadcast %19 : vector<14x1xf32> to vector<14x32xf32>
    %21 = arith.mulf %16, %20 : vector<14x32xf32>
    %22 = vector.broadcast %2 : vector<1x32xf32> to vector<14x32xf32>
    %23 = arith.mulf %21, %22 : vector<14x32xf32>
    %24 = vector.broadcast %3 : vector<1x32xf32> to vector<14x32xf32>
    %25 = arith.addf %23, %24 : vector<14x32xf32>
    %26 = arith.truncf %25 : vector<14x32xf32> to vector<14x32xbf16>
    %c0_9 = arith.constant 0 : index
    %c0_10 = arith.constant 0 : index
    %27 = vector.load %arg4[%c0_9, %c0_10] : memref<32x32xbf16, #tpu.memory_space<vmem>>, vector<32x32xbf16>
    %cst_11 = arith.constant dense<0.000000e+00> : vector<14x32xf32>
    %28 = tpu.matmul %26, %27, %cst_11 {dimension_numbers = #tpu.dot_dimension_numbers<[1], [0], [0], [1], [0, 0, 1, 1], [], []>} : vector<14x32xbf16>, vector<32x32xbf16>, vector<14x32xf32> -> vector<14x32xf32>
    %c0_12 = arith.constant 0 : index
    %c0_13 = arith.constant 0 : index
    %29 = vector.load %arg5[%c0_12, %c0_13] : memref<1x32xf32, #tpu.memory_space<vmem>>, vector<1x32xf32>
    %30 = vector.broadcast %29 : vector<1x32xf32> to vector<14x32xf32>
    %31 = arith.addf %28, %30 : vector<14x32xf32>
    %c0_14 = arith.constant 0 : index
    %c0_15 = arith.constant 0 : index
    %32 = vector.load %arg6[%c0_14, %c0_15] : memref<32x32xbf16, #tpu.memory_space<vmem>>, vector<32x32xbf16>
    %cst_16 = arith.constant dense<0.000000e+00> : vector<14x32xf32>
    %33 = tpu.matmul %26, %32, %cst_16 {dimension_numbers = #tpu.dot_dimension_numbers<[1], [0], [0], [1], [0, 0, 1, 1], [], []>} : vector<14x32xbf16>, vector<32x32xbf16>, vector<14x32xf32> -> vector<14x32xf32>
    %c0_17 = arith.constant 0 : index
    %c0_18 = arith.constant 0 : index
    %34 = vector.load %arg7[%c0_17, %c0_18] : memref<1x32xf32, #tpu.memory_space<vmem>>, vector<1x32xf32>
    %35 = vector.broadcast %34 : vector<1x32xf32> to vector<14x32xf32>
    %36 = arith.addf %33, %35 : vector<14x32xf32>
    %37 = arith.negf %36 : vector<14x32xf32>
    %38 = math.exp %37 : vector<14x32xf32>
    %cst_19 = arith.constant 1.000000e+00 : f32
    %39 = vector.broadcast %cst_19 : f32 to vector<14x32xf32>
    %40 = arith.addf %39, %38 : vector<14x32xf32>
    %41 = arith.divf %39, %40 : vector<14x32xf32>
    %42 = arith.mulf %31, %41 : vector<14x32xf32>
    %43 = arith.truncf %42 : vector<14x32xf32> to vector<14x32xbf16>
    %c0_20 = arith.constant 0 : index
    %c0_21 = arith.constant 0 : index
    %44 = vector.load %arg8[%c0_20, %c0_21] : memref<14x32xbf16, #tpu.memory_space<vmem>>, vector<14x32xbf16>
    tpu.vector_store %arg8[%c0_20, %c0_21], %43 {strides = array<i32>} : memref<14x32xbf16, #tpu.memory_space<vmem>>, vector<14x32xbf16>,
    return
  }
  func.func @transform_0(%arg0: i32) -> (i32, i32) {
    %c0_i32 = arith.constant 0 : i32
    %c0_i32_0 = arith.constant 0 : i32
    return %arg0, %c0_i32 : i32, i32
  }
  func.func @transform_1(%arg0: i32) -> (i32, i32) {
    %c0_i32 = arith.constant 0 : i32
    %c0_i32_0 = arith.constant 0 : i32
    %c0_i32_1 = arith.constant 0 : i32
    return %c0_i32, %c0_i32_0 : i32, i32
  }
  func.func @transform_2(%arg0: i32) -> (i32, i32) {
    %c0_i32 = arith.constant 0 : i32
    %c0_i32_0 = arith.constant 0 : i32
    %c0_i32_1 = arith.constant 0 : i32
    return %c0_i32, %c0_i32_0 : i32, i32
  }
  func.func @transform_3(%arg0: i32) -> (i32, i32) {
    %c0_i32 = arith.constant 0 : i32
    %c0_i32_0 = arith.constant 0 : i32
    %c0_i32_1 = arith.constant 0 : i32
    return %c0_i32, %c0_i32_0 : i32, i32
  }
  func.func @transform_4(%arg0: i32) -> (i32, i32) {
    %c0_i32 = arith.constant 0 : i32
    %c0_i32_0 = arith.constant 0 : i32
    %c0_i32_1 = arith.constant 0 : i32
    return %c0_i32, %c0_i32_0 : i32, i32
  }
  func.func @transform_5(%arg0: i32) -> (i32, i32) {
    %c0_i32 = arith.constant 0 : i32
    %c0_i32_0 = arith.constant 0 : i32
    %c0_i32_1 = arith.constant 0 : i32
    return %c0_i32, %c0_i32_0 : i32, i32
  }
  func.func @transform_6(%arg0: i32) -> (i32, i32) {
    %c0_i32 = arith.constant 0 : i32
    %c0_i32_0 = arith.constant 0 : i32
    %c0_i32_1 = arith.constant 0 : i32
    return %c0_i32, %c0_i32_0 : i32, i32
  }
  func.func @transform_7(%arg0: i32) -> (i32, i32) {
    %c0_i32 = arith.constant 0 : i32
    %c0_i32_0 = arith.constant 0 : i32
    return %arg0, %c0_i32 : i32, i32
  }
}

module attributes {stable_mosaic.version = 11 : i64} {
  func.func @_conv_tail_kernel(%arg0: i32, %arg1: memref<1x7x32xbf16, #tpu.memory_space<vmem>>, %arg2: memref<1x7x32xbf16, #tpu.memory_space<vmem>>, %arg3: memref<7x32xf32, #tpu.memory_space<vmem>>, %arg4: memref<1x32xf32, #tpu.memory_space<vmem>>, %arg5: memref<1x32xf32, #tpu.memory_space<vmem>>, %arg6: memref<32x32xbf16, #tpu.memory_space<vmem>>, %arg7: memref<1x32xf32, #tpu.memory_space<vmem>>, %arg8: memref<1x7x32xbf16, #tpu.memory_space<vmem>>) attributes {dimension_semantics = [#tpu.dimension_semantics<parallel>], iteration_bounds = array<i64: 2>, scalar_prefetch = 0 : i64, scratch_operands = 0 : i64, tpu.core_type = #tpu.core_type<tc>, window_params = [{transform_indices = @transform_0, window_bounds = array<i64: 1, 7, 32>}, {transform_indices = @transform_1, window_bounds = array<i64: 1, 7, 32>}, {pipeline_mode = #tpu.pipeline_mode<synchronous>, transform_indices = @transform_2, window_bounds = array<i64: 7, 32>}, {pipeline_mode = #tpu.pipeline_mode<synchronous>, transform_indices = @transform_3, window_bounds = array<i64: 1, 32>}, {pipeline_mode = #tpu.pipeline_mode<synchronous>, transform_indices = @transform_4, window_bounds = array<i64: 1, 32>}, {pipeline_mode = #tpu.pipeline_mode<synchronous>, transform_indices = @transform_5, window_bounds = array<i64: 32, 32>}, {pipeline_mode = #tpu.pipeline_mode<synchronous>, transform_indices = @transform_6, window_bounds = array<i64: 1, 32>}, {transform_indices = @transform_7, window_bounds = array<i64: 1, 7, 32>}]} {
    %c0 = arith.constant 0 : index
    %c0_0 = arith.constant 0 : index
    %c0_1 = arith.constant 0 : index
    %0 = vector.load %arg1[%c0, %c0_0, %c0_1] : memref<1x7x32xbf16, #tpu.memory_space<vmem>>, vector<1x7x32xbf16>
    %1 = vector.shape_cast %0 : vector<1x7x32xbf16> to vector<7x32xbf16>
    %2 = arith.extf %1 : vector<7x32xbf16> to vector<7x32xf32>
    %cst = arith.constant 0.000000e+00 : f32
    %3 = vector.broadcast %cst : f32 to vector<3x32xf32>
    %4 = tpu.concatenate %3, %2, %3 in 0 : vector<3x32xf32>, vector<7x32xf32>, vector<3x32xf32> -> vector<13x32xf32>
    %c0_2 = arith.constant 0 : index
    %c0_3 = arith.constant 0 : index
    %5 = vector.load %arg3[%c0_2, %c0_3] : memref<7x32xf32, #tpu.memory_space<vmem>>, vector<7x32xf32>
    %6 = vector.extract_strided_slice %4 {offsets = [0, 0], sizes = [7, 32], strides = [1, 1]} : vector<13x32xf32> to vector<7x32xf32>
    %7 = vector.extract_strided_slice %5 {offsets = [0, 0], sizes = [1, 32], strides = [1, 1]} : vector<7x32xf32> to vector<1x32xf32>
    %8 = vector.broadcast %7 : vector<1x32xf32> to vector<7x32xf32>
    %9 = arith.mulf %6, %8 : vector<7x32xf32>
    %10 = vector.extract_strided_slice %4 {offsets = [1, 0], sizes = [7, 32], strides = [1, 1]} : vector<13x32xf32> to vector<7x32xf32>
    %11 = vector.extract_strided_slice %5 {offsets = [1, 0], sizes = [1, 32], strides = [1, 1]} : vector<7x32xf32> to vector<1x32xf32>
    %12 = vector.broadcast %11 : vector<1x32xf32> to vector<7x32xf32>
    %13 = arith.mulf %10, %12 : vector<7x32xf32>
    %14 = arith.addf %9, %13 : vector<7x32xf32>
    %15 = vector.extract_strided_slice %4 {offsets = [2, 0], sizes = [7, 32], strides = [1, 1]} : vector<13x32xf32> to vector<7x32xf32>
    %16 = vector.extract_strided_slice %5 {offsets = [2, 0], sizes = [1, 32], strides = [1, 1]} : vector<7x32xf32> to vector<1x32xf32>
    %17 = vector.broadcast %16 : vector<1x32xf32> to vector<7x32xf32>
    %18 = arith.mulf %15, %17 : vector<7x32xf32>
    %19 = arith.addf %14, %18 : vector<7x32xf32>
    %20 = vector.extract_strided_slice %4 {offsets = [3, 0], sizes = [7, 32], strides = [1, 1]} : vector<13x32xf32> to vector<7x32xf32>
    %21 = vector.extract_strided_slice %5 {offsets = [3, 0], sizes = [1, 32], strides = [1, 1]} : vector<7x32xf32> to vector<1x32xf32>
    %22 = vector.broadcast %21 : vector<1x32xf32> to vector<7x32xf32>
    %23 = arith.mulf %20, %22 : vector<7x32xf32>
    %24 = arith.addf %19, %23 : vector<7x32xf32>
    %25 = vector.extract_strided_slice %4 {offsets = [4, 0], sizes = [7, 32], strides = [1, 1]} : vector<13x32xf32> to vector<7x32xf32>
    %26 = vector.extract_strided_slice %5 {offsets = [4, 0], sizes = [1, 32], strides = [1, 1]} : vector<7x32xf32> to vector<1x32xf32>
    %27 = vector.broadcast %26 : vector<1x32xf32> to vector<7x32xf32>
    %28 = arith.mulf %25, %27 : vector<7x32xf32>
    %29 = arith.addf %24, %28 : vector<7x32xf32>
    %30 = vector.extract_strided_slice %4 {offsets = [5, 0], sizes = [7, 32], strides = [1, 1]} : vector<13x32xf32> to vector<7x32xf32>
    %31 = vector.extract_strided_slice %5 {offsets = [5, 0], sizes = [1, 32], strides = [1, 1]} : vector<7x32xf32> to vector<1x32xf32>
    %32 = vector.broadcast %31 : vector<1x32xf32> to vector<7x32xf32>
    %33 = arith.mulf %30, %32 : vector<7x32xf32>
    %34 = arith.addf %29, %33 : vector<7x32xf32>
    %35 = vector.extract_strided_slice %4 {offsets = [6, 0], sizes = [7, 32], strides = [1, 1]} : vector<13x32xf32> to vector<7x32xf32>
    %36 = vector.extract_strided_slice %5 {offsets = [6, 0], sizes = [1, 32], strides = [1, 1]} : vector<7x32xf32> to vector<1x32xf32>
    %37 = vector.broadcast %36 : vector<1x32xf32> to vector<7x32xf32>
    %38 = arith.mulf %35, %37 : vector<7x32xf32>
    %39 = arith.addf %34, %38 : vector<7x32xf32>
    %c0_4 = arith.constant 0 : index
    %c0_5 = arith.constant 0 : index
    %40 = vector.load %arg4[%c0_4, %c0_5] : memref<1x32xf32, #tpu.memory_space<vmem>>, vector<1x32xf32>
    %41 = vector.broadcast %40 : vector<1x32xf32> to vector<7x32xf32>
    %42 = arith.mulf %39, %41 : vector<7x32xf32>
    %c0_6 = arith.constant 0 : index
    %c0_7 = arith.constant 0 : index
    %43 = vector.load %arg5[%c0_6, %c0_7] : memref<1x32xf32, #tpu.memory_space<vmem>>, vector<1x32xf32>
    %44 = vector.broadcast %43 : vector<1x32xf32> to vector<7x32xf32>
    %45 = arith.addf %42, %44 : vector<7x32xf32>
    %46 = arith.negf %45 : vector<7x32xf32>
    %47 = math.exp %46 : vector<7x32xf32>
    %cst_8 = arith.constant 1.000000e+00 : f32
    %48 = vector.broadcast %cst_8 : f32 to vector<7x32xf32>
    %49 = arith.addf %48, %47 : vector<7x32xf32>
    %50 = arith.divf %48, %49 : vector<7x32xf32>
    %51 = arith.mulf %45, %50 : vector<7x32xf32>
    %52 = arith.truncf %51 : vector<7x32xf32> to vector<7x32xbf16>
    %c0_9 = arith.constant 0 : index
    %c0_10 = arith.constant 0 : index
    %53 = vector.load %arg6[%c0_9, %c0_10] : memref<32x32xbf16, #tpu.memory_space<vmem>>, vector<32x32xbf16>
    %cst_11 = arith.constant dense<0.000000e+00> : vector<7x32xf32>
    %54 = tpu.matmul %52, %53, %cst_11 {dimension_numbers = #tpu.dot_dimension_numbers<[1], [0], [0], [1], [0, 0, 1, 1], [], []>} : vector<7x32xbf16>, vector<32x32xbf16>, vector<7x32xf32> -> vector<7x32xf32>
    %c0_12 = arith.constant 0 : index
    %c0_13 = arith.constant 0 : index
    %55 = vector.load %arg7[%c0_12, %c0_13] : memref<1x32xf32, #tpu.memory_space<vmem>>, vector<1x32xf32>
    %56 = vector.broadcast %55 : vector<1x32xf32> to vector<7x32xf32>
    %57 = arith.addf %54, %56 : vector<7x32xf32>
    %c0_14 = arith.constant 0 : index
    %c0_15 = arith.constant 0 : index
    %c0_16 = arith.constant 0 : index
    %58 = vector.load %arg2[%c0_14, %c0_15, %c0_16] : memref<1x7x32xbf16, #tpu.memory_space<vmem>>, vector<1x7x32xbf16>
    %59 = vector.shape_cast %58 : vector<1x7x32xbf16> to vector<7x32xbf16>
    %60 = arith.extf %59 : vector<7x32xbf16> to vector<7x32xf32>
    %61 = arith.addf %60, %57 : vector<7x32xf32>
    %62 = arith.truncf %61 : vector<7x32xf32> to vector<7x32xbf16>
    %c0_17 = arith.constant 0 : index
    %c0_18 = arith.constant 0 : index
    %c0_19 = arith.constant 0 : index
    %63 = vector.load %arg8[%c0_17, %c0_18, %c0_19] : memref<1x7x32xbf16, #tpu.memory_space<vmem>>, vector<1x7x32xbf16>
    %64 = vector.shape_cast %63 : vector<1x7x32xbf16> to vector<7x32xbf16>
    %65 = vector.shape_cast %62 : vector<7x32xbf16> to vector<1x7x32xbf16>
    tpu.vector_store %arg8[%c0_17, %c0_18, %c0_19], %65 {strides = array<i32>} : memref<1x7x32xbf16, #tpu.memory_space<vmem>>, vector<1x7x32xbf16>,
    return
  }
  func.func @transform_0(%arg0: i32) -> (i32, i32, i32) {
    %c0_i32 = arith.constant 0 : i32
    %c0_i32_0 = arith.constant 0 : i32
    %c0_i32_1 = arith.constant 0 : i32
    return %arg0, %c0_i32, %c0_i32_0 : i32, i32, i32
  }
  func.func @transform_1(%arg0: i32) -> (i32, i32, i32) {
    %c0_i32 = arith.constant 0 : i32
    %c0_i32_0 = arith.constant 0 : i32
    %c0_i32_1 = arith.constant 0 : i32
    return %arg0, %c0_i32, %c0_i32_0 : i32, i32, i32
  }
  func.func @transform_2(%arg0: i32) -> (i32, i32) {
    %c0_i32 = arith.constant 0 : i32
    %c0_i32_0 = arith.constant 0 : i32
    %c0_i32_1 = arith.constant 0 : i32
    return %c0_i32, %c0_i32_0 : i32, i32
  }
  func.func @transform_3(%arg0: i32) -> (i32, i32) {
    %c0_i32 = arith.constant 0 : i32
    %c0_i32_0 = arith.constant 0 : i32
    %c0_i32_1 = arith.constant 0 : i32
    return %c0_i32, %c0_i32_0 : i32, i32
  }
  func.func @transform_4(%arg0: i32) -> (i32, i32) {
    %c0_i32 = arith.constant 0 : i32
    %c0_i32_0 = arith.constant 0 : i32
    %c0_i32_1 = arith.constant 0 : i32
    return %c0_i32, %c0_i32_0 : i32, i32
  }
  func.func @transform_5(%arg0: i32) -> (i32, i32) {
    %c0_i32 = arith.constant 0 : i32
    %c0_i32_0 = arith.constant 0 : i32
    %c0_i32_1 = arith.constant 0 : i32
    return %c0_i32, %c0_i32_0 : i32, i32
  }
  func.func @transform_6(%arg0: i32) -> (i32, i32) {
    %c0_i32 = arith.constant 0 : i32
    %c0_i32_0 = arith.constant 0 : i32
    %c0_i32_1 = arith.constant 0 : i32
    return %c0_i32, %c0_i32_0 : i32, i32
  }
  func.func @transform_7(%arg0: i32) -> (i32, i32, i32) {
    %c0_i32 = arith.constant 0 : i32
    %c0_i32_0 = arith.constant 0 : i32
    %c0_i32_1 = arith.constant 0 : i32
    return %arg0, %c0_i32, %c0_i32_0 : i32, i32, i32
  }
}

module attributes {stable_mosaic.version = 11 : i64} {
  func.func @_ffn_kernel(%arg0: i32, %arg1: memref<14x32xbf16, #tpu.memory_space<vmem>>, %arg2: memref<1x32xf32, #tpu.memory_space<vmem>>, %arg3: memref<1x32xf32, #tpu.memory_space<vmem>>, %arg4: memref<32x128xbf16, #tpu.memory_space<vmem>>, %arg5: memref<1x128xf32, #tpu.memory_space<vmem>>, %arg6: memref<128x32xbf16, #tpu.memory_space<vmem>>, %arg7: memref<1x32xf32, #tpu.memory_space<vmem>>, %arg8: memref<1x32xf32, #tpu.memory_space<vmem>>, %arg9: memref<1x32xf32, #tpu.memory_space<vmem>>, %arg10: memref<14x32xbf16, #tpu.memory_space<vmem>>) attributes {dimension_semantics = [#tpu.dimension_semantics<parallel>], iteration_bounds = array<i64: 1>, scalar_prefetch = 0 : i64, scratch_operands = 0 : i64, tpu.core_type = #tpu.core_type<tc>, window_params = [{transform_indices = @transform_0, window_bounds = array<i64: 14, 32>}, {pipeline_mode = #tpu.pipeline_mode<synchronous>, transform_indices = @transform_1, window_bounds = array<i64: 1, 32>}, {pipeline_mode = #tpu.pipeline_mode<synchronous>, transform_indices = @transform_2, window_bounds = array<i64: 1, 32>}, {pipeline_mode = #tpu.pipeline_mode<synchronous>, transform_indices = @transform_3, window_bounds = array<i64: 32, 128>}, {pipeline_mode = #tpu.pipeline_mode<synchronous>, transform_indices = @transform_4, window_bounds = array<i64: 1, 128>}, {pipeline_mode = #tpu.pipeline_mode<synchronous>, transform_indices = @transform_5, window_bounds = array<i64: 128, 32>}, {pipeline_mode = #tpu.pipeline_mode<synchronous>, transform_indices = @transform_6, window_bounds = array<i64: 1, 32>}, {pipeline_mode = #tpu.pipeline_mode<synchronous>, transform_indices = @transform_7, window_bounds = array<i64: 1, 32>}, {pipeline_mode = #tpu.pipeline_mode<synchronous>, transform_indices = @transform_8, window_bounds = array<i64: 1, 32>}, {transform_indices = @transform_9, window_bounds = array<i64: 14, 32>}]} {
    %c0 = arith.constant 0 : index
    %c0_0 = arith.constant 0 : index
    %0 = vector.load %arg1[%c0, %c0_0] : memref<14x32xbf16, #tpu.memory_space<vmem>>, vector<14x32xbf16>
    %1 = arith.extf %0 : vector<14x32xbf16> to vector<14x32xf32>
    %c0_1 = arith.constant 0 : index
    %c0_2 = arith.constant 0 : index
    %2 = vector.load %arg2[%c0_1, %c0_2] : memref<1x32xf32, #tpu.memory_space<vmem>>, vector<1x32xf32>
    %c0_3 = arith.constant 0 : index
    %c0_4 = arith.constant 0 : index
    %3 = vector.load %arg3[%c0_3, %c0_4] : memref<1x32xf32, #tpu.memory_space<vmem>>, vector<1x32xf32>
    %cst = arith.constant dense<0.000000e+00> : vector<14xf32>
    %4 = vector.multi_reduction <add>, %1, %cst [1] : vector<14x32xf32> to vector<14xf32>
    %5 = vector.shape_cast %4 : vector<14xf32> to vector<14x1xf32>
    %cst_5 = arith.constant 3.200000e+01 : f32
    %6 = vector.broadcast %cst_5 : f32 to vector<14x1xf32>
    %7 = arith.divf %5, %6 : vector<14x1xf32>
    %8 = vector.broadcast %7 : vector<14x1xf32> to vector<14x32xf32>
    %9 = arith.subf %1, %8 : vector<14x32xf32>
    %10 = arith.mulf %9, %9 : vector<14x32xf32>
    %cst_6 = arith.constant dense<0.000000e+00> : vector<14xf32>
    %11 = vector.multi_reduction <add>, %10, %cst_6 [1] : vector<14x32xf32> to vector<14xf32>
    %12 = vector.shape_cast %11 : vector<14xf32> to vector<14x1xf32>
    %cst_7 = arith.constant 3.200000e+01 : f32
    %13 = vector.broadcast %cst_7 : f32 to vector<14x1xf32>
    %14 = arith.divf %12, %13 : vector<14x1xf32>
    %15 = vector.broadcast %7 : vector<14x1xf32> to vector<14x32xf32>
    %16 = arith.subf %1, %15 : vector<14x32xf32>
    %cst_8 = arith.constant 9.99999974E-6 : f32
    %17 = vector.broadcast %cst_8 : f32 to vector<14x1xf32>
    %18 = arith.addf %14, %17 : vector<14x1xf32>
    %19 = math.rsqrt %18 : vector<14x1xf32>
    %20 = vector.broadcast %19 : vector<14x1xf32> to vector<14x32xf32>
    %21 = arith.mulf %16, %20 : vector<14x32xf32>
    %22 = vector.broadcast %2 : vector<1x32xf32> to vector<14x32xf32>
    %23 = arith.mulf %21, %22 : vector<14x32xf32>
    %24 = vector.broadcast %3 : vector<1x32xf32> to vector<14x32xf32>
    %25 = arith.addf %23, %24 : vector<14x32xf32>
    %26 = arith.truncf %25 : vector<14x32xf32> to vector<14x32xbf16>
    %c0_9 = arith.constant 0 : index
    %c0_10 = arith.constant 0 : index
    %27 = vector.load %arg4[%c0_9, %c0_10] : memref<32x128xbf16, #tpu.memory_space<vmem>>, vector<32x128xbf16>
    %cst_11 = arith.constant dense<0.000000e+00> : vector<14x128xf32>
    %28 = tpu.matmul %26, %27, %cst_11 {dimension_numbers = #tpu.dot_dimension_numbers<[1], [0], [0], [1], [0, 0, 1, 1], [], []>} : vector<14x32xbf16>, vector<32x128xbf16>, vector<14x128xf32> -> vector<14x128xf32>
    %c0_12 = arith.constant 0 : index
    %c0_13 = arith.constant 0 : index
    %29 = vector.load %arg5[%c0_12, %c0_13] : memref<1x128xf32, #tpu.memory_space<vmem>>, vector<1x128xf32>
    %30 = vector.broadcast %29 : vector<1x128xf32> to vector<14x128xf32>
    %31 = arith.addf %28, %30 : vector<14x128xf32>
    %32 = arith.negf %31 : vector<14x128xf32>
    %33 = math.exp %32 : vector<14x128xf32>
    %cst_14 = arith.constant 1.000000e+00 : f32
    %34 = vector.broadcast %cst_14 : f32 to vector<14x128xf32>
    %35 = arith.addf %34, %33 : vector<14x128xf32>
    %36 = arith.divf %34, %35 : vector<14x128xf32>
    %37 = arith.mulf %31, %36 : vector<14x128xf32>
    %38 = arith.truncf %37 : vector<14x128xf32> to vector<14x128xbf16>
    %c0_15 = arith.constant 0 : index
    %c0_16 = arith.constant 0 : index
    %39 = vector.load %arg6[%c0_15, %c0_16] : memref<128x32xbf16, #tpu.memory_space<vmem>>, vector<128x32xbf16>
    %cst_17 = arith.constant dense<0.000000e+00> : vector<14x32xf32>
    %40 = tpu.matmul %38, %39, %cst_17 {dimension_numbers = #tpu.dot_dimension_numbers<[1], [0], [0], [1], [0, 0, 1, 1], [], []>} : vector<14x128xbf16>, vector<128x32xbf16>, vector<14x32xf32> -> vector<14x32xf32>
    %c0_18 = arith.constant 0 : index
    %c0_19 = arith.constant 0 : index
    %41 = vector.load %arg7[%c0_18, %c0_19] : memref<1x32xf32, #tpu.memory_space<vmem>>, vector<1x32xf32>
    %42 = vector.broadcast %41 : vector<1x32xf32> to vector<14x32xf32>
    %43 = arith.addf %40, %42 : vector<14x32xf32>
    %cst_20 = arith.constant 5.000000e-01 : f32
    %44 = vector.broadcast %cst_20 : f32 to vector<14x32xf32>
    %45 = arith.mulf %44, %43 : vector<14x32xf32>
    %46 = arith.addf %1, %45 : vector<14x32xf32>
    %c0_21 = arith.constant 0 : index
    %c0_22 = arith.constant 0 : index
    %47 = vector.load %arg8[%c0_21, %c0_22] : memref<1x32xf32, #tpu.memory_space<vmem>>, vector<1x32xf32>
    %c0_23 = arith.constant 0 : index
    %c0_24 = arith.constant 0 : index
    %48 = vector.load %arg9[%c0_23, %c0_24] : memref<1x32xf32, #tpu.memory_space<vmem>>, vector<1x32xf32>
    %cst_25 = arith.constant dense<0.000000e+00> : vector<14xf32>
    %49 = vector.multi_reduction <add>, %46, %cst_25 [1] : vector<14x32xf32> to vector<14xf32>
    %50 = vector.shape_cast %49 : vector<14xf32> to vector<14x1xf32>
    %cst_26 = arith.constant 3.200000e+01 : f32
    %51 = vector.broadcast %cst_26 : f32 to vector<14x1xf32>
    %52 = arith.divf %50, %51 : vector<14x1xf32>
    %53 = vector.broadcast %52 : vector<14x1xf32> to vector<14x32xf32>
    %54 = arith.subf %46, %53 : vector<14x32xf32>
    %55 = arith.mulf %54, %54 : vector<14x32xf32>
    %cst_27 = arith.constant dense<0.000000e+00> : vector<14xf32>
    %56 = vector.multi_reduction <add>, %55, %cst_27 [1] : vector<14x32xf32> to vector<14xf32>
    %57 = vector.shape_cast %56 : vector<14xf32> to vector<14x1xf32>
    %cst_28 = arith.constant 3.200000e+01 : f32
    %58 = vector.broadcast %cst_28 : f32 to vector<14x1xf32>
    %59 = arith.divf %57, %58 : vector<14x1xf32>
    %60 = vector.broadcast %52 : vector<14x1xf32> to vector<14x32xf32>
    %61 = arith.subf %46, %60 : vector<14x32xf32>
    %cst_29 = arith.constant 9.99999974E-6 : f32
    %62 = vector.broadcast %cst_29 : f32 to vector<14x1xf32>
    %63 = arith.addf %59, %62 : vector<14x1xf32>
    %64 = math.rsqrt %63 : vector<14x1xf32>
    %65 = vector.broadcast %64 : vector<14x1xf32> to vector<14x32xf32>
    %66 = arith.mulf %61, %65 : vector<14x32xf32>
    %67 = vector.broadcast %47 : vector<1x32xf32> to vector<14x32xf32>
    %68 = arith.mulf %66, %67 : vector<14x32xf32>
    %69 = vector.broadcast %48 : vector<1x32xf32> to vector<14x32xf32>
    %70 = arith.addf %68, %69 : vector<14x32xf32>
    %71 = arith.truncf %70 : vector<14x32xf32> to vector<14x32xbf16>
    %c0_30 = arith.constant 0 : index
    %c0_31 = arith.constant 0 : index
    %72 = vector.load %arg10[%c0_30, %c0_31] : memref<14x32xbf16, #tpu.memory_space<vmem>>, vector<14x32xbf16>
    tpu.vector_store %arg10[%c0_30, %c0_31], %71 {strides = array<i32>} : memref<14x32xbf16, #tpu.memory_space<vmem>>, vector<14x32xbf16>,
    return
  }
  func.func @transform_0(%arg0: i32) -> (i32, i32) {
    %c0_i32 = arith.constant 0 : i32
    %c0_i32_0 = arith.constant 0 : i32
    return %arg0, %c0_i32 : i32, i32
  }
  func.func @transform_1(%arg0: i32) -> (i32, i32) {
    %c0_i32 = arith.constant 0 : i32
    %c0_i32_0 = arith.constant 0 : i32
    %c0_i32_1 = arith.constant 0 : i32
    return %c0_i32, %c0_i32_0 : i32, i32
  }
  func.func @transform_2(%arg0: i32) -> (i32, i32) {
    %c0_i32 = arith.constant 0 : i32
    %c0_i32_0 = arith.constant 0 : i32
    %c0_i32_1 = arith.constant 0 : i32
    return %c0_i32, %c0_i32_0 : i32, i32
  }
  func.func @transform_3(%arg0: i32) -> (i32, i32) {
    %c0_i32 = arith.constant 0 : i32
    %c0_i32_0 = arith.constant 0 : i32
    %c0_i32_1 = arith.constant 0 : i32
    return %c0_i32, %c0_i32_0 : i32, i32
  }
  func.func @transform_4(%arg0: i32) -> (i32, i32) {
    %c0_i32 = arith.constant 0 : i32
    %c0_i32_0 = arith.constant 0 : i32
    %c0_i32_1 = arith.constant 0 : i32
    return %c0_i32, %c0_i32_0 : i32, i32
  }
  func.func @transform_5(%arg0: i32) -> (i32, i32) {
    %c0_i32 = arith.constant 0 : i32
    %c0_i32_0 = arith.constant 0 : i32
    %c0_i32_1 = arith.constant 0 : i32
    return %c0_i32, %c0_i32_0 : i32, i32
  }
  func.func @transform_6(%arg0: i32) -> (i32, i32) {
    %c0_i32 = arith.constant 0 : i32
    %c0_i32_0 = arith.constant 0 : i32
    %c0_i32_1 = arith.constant 0 : i32
    return %c0_i32, %c0_i32_0 : i32, i32
  }
  func.func @transform_7(%arg0: i32) -> (i32, i32) {
    %c0_i32 = arith.constant 0 : i32
    %c0_i32_0 = arith.constant 0 : i32
    %c0_i32_1 = arith.constant 0 : i32
    return %c0_i32, %c0_i32_0 : i32, i32
  }
  func.func @transform_8(%arg0: i32) -> (i32, i32) {
    %c0_i32 = arith.constant 0 : i32
    %c0_i32_0 = arith.constant 0 : i32
    %c0_i32_1 = arith.constant 0 : i32
    return %c0_i32, %c0_i32_0 : i32, i32
  }
  func.func @transform_9(%arg0: i32) -> (i32, i32) {
    %c0_i32 = arith.constant 0 : i32
    %c0_i32_0 = arith.constant 0 : i32
    return %arg0, %c0_i32 : i32, i32
  }
}

</mosaic_0001>

<bundles_post_ra>
// kernel: conformer_encoder_forward.14
= control target key start
LH: loop header
LB: loop body
LE: loop exit
PB: predicated region body
PF: predicated region fallthrough
CT: control target
= control target key end

     0   :  { %v153_v0 = vmov 0.0   ;;  %vm154_vm0 = vmmov 0   ;;  %vm57_vm1 = vcmask 523264   ;;  %vm112_vm2 = vcmask 519168   ;;  %s202_s1 = inlined_call_operand.vmem [shape: bf16[64,64], index: 1, kind: input, shape index: {}]   ;;  %s203_s0 = inlined_call_operand.vmem [shape: f32[14,64], index: 0, kind: input, shape index: {}]   ;;  %s204_s2 = inlined_call_operand.vmem [shape: f32[1,64], index: 2, kind: input, shape index: {}]   ;;  %s205_s3 = inlined_call_operand.vmem [shape: bf16[14,64], index: 3, kind: output, shape index: {}]  }
   0x1   :  { %135 = vmatprep.subr.bf16.mxu0 %v153_v0  ;;  %v149_v1 = vld [vmem:[%s202_s1 + $0x18] sm:$0xff]   ;;  %143 = vmatprep.mubr.msk.bf16.mxu0 %vm154_vm0, %v153_v0  ;;  %v150_v2 = vld [vmem:[%s202_s1 + $0x10] sm:$0xff]   ;;  %v151_v3 = vld [vmem:[%s202_s1 + $0x8] sm:$0xff]   ;;  %vm114_vm3 = vcmask 518144  }
   0x2   :  { %136 = vmatpush3.bf16.msra.mxu0 %v149_v1  ;;  %v152_v4 = vld [vmem:[%s202_s1] sm:$0xff]   ;;  %v16_v6 = vld [vmem:[%s203_s0 + $0x8] sm:$0x3f] }
   0x3   :  { %137 = vmatprep.subr.bf16.mxu0 %v153_v0  ;;  %v15_v5 = vld [vmem:[%s203_s0] sm:$0xff] }
   0x4   :  { %v17_v7 = vpack.c.bf16 %v16_v6, %v15_v5  ;;  %v120_v8 = vld [vmem:[%s204_s2] ss:$0 sm:$0xff] }
   0x6   :  { %138 = vmatpush3.bf16.msra.mxu0 %v150_v2 }
   0x7   :  { %139 = vmatprep.subr.bf16.mxu0 %v153_v0 }
   0xa   :  { %140 = vmatpush3.bf16.msra.mxu0 %v151_v3 }
   0xb   :  { %141 = vmatprep.subr.bf16.mxu0 %v153_v0 }
   0xe   :  { %142 = vmatpush3.bf16.msra.mxu0 %v152_v4 }
  0x11   :  { %144 = vmatmul.mubr.msk.bf16.vlgmr.msra.gmra.mxu0 %vm57_vm1, %v17_v7 }
  0xd1   :  { %v95_v9 = vpop.f32.mrf.mxu0 }
  0xd2   :  { %v96_v10 = vadd.f32 %v120_v8, %v95_v9 }
  0xd3   :  { %v145_v11 = vpop.f32.mrf.mxu0 }
  0xd4   :  { %v102_v12 = vmax.f32 %v96_v10, 0.0 }
  0xd5   :  { %v98_v13 = vpop.f32.mrf.mxu0 }
  0xd6   :  { %v128_v14 = vpack.c.bf16 %v102_v12, %v102_v12  ;;  %v99_v15 = vadd.f32 %v120_v8, %v98_v13 }
  0xd7   :  { %v146_v16 = vpop.f32.mrf.mxu0 }
  0xd8   :  { %113 = vst.msk [vmem:[%s205_s3] sm:$0xf] %vm112_vm2, %v128_v14  ;;  %v103_v17 = vmax.f32 %v99_v15, 0.0 }
  0xda   :  { %v129_v18 = vpack.c.bf16 %v103_v17, %v103_v17 }
  0xdc   :  { %115 = vst.msk [vmem:[%s205_s3 + $0x4] sm:$0x7] %vm114_vm3, %v129_v18 }

// kernel: conformer_encoder_forward.15
= control target key start
LH: loop header
LB: loop body
LE: loop exit
PB: predicated region body
PF: predicated region fallthrough
CT: control target
= control target key end

     0   :  { %v157_v0 = vmov 0.0   ;;  %vm158_vm0 = vmmov 0   ;;  %vm61_vm1 = vcmask 523264   ;;  %vm114_vm2 = vcmask 257024   ;;  %s203_s1 = inlined_call_operand.vmem [shape: bf16[64,32], index: 1, kind: input, shape index: {}]   ;;  %s204_s0 = inlined_call_operand.vmem [shape: bf16[14,64], index: 0, kind: input, shape index: {}]   ;;  %s205_s2 = inlined_call_operand.vmem [shape: f32[1,32], index: 2, kind: input, shape index: {}]   ;;  %s206_s3 = inlined_call_operand.vmem [shape: bf16[14,32], index: 3, kind: output, shape index: {}]  }
   0x1   :  { %138 = vmatprep.subr.bf16.mxu0 %v157_v0  ;;  %v152_v1 = vld [vmem:[%s203_s1 + $0x18] sm:$0xff]   ;;  %146 = vmatprep.mubr.msk.bf16.mxu0 %vm158_vm0, %v157_v0  ;;  %v153_v2 = vld [vmem:[%s203_s1 + $0x10] sm:$0xff]   ;;  %v154_v3 = vld [vmem:[%s203_s1 + $0x8] sm:$0xff]   ;;  %vm116_vm3 = vcmask 256000  }
   0x2   :  { %139 = vmatpush3.bf16.msra.mxu0 %v152_v1  ;;  %v155_v4 = vld [vmem:[%s203_s1] sm:$0xff]  }
   0x3   :  { %140 = vmatprep.subr.bf16.mxu0 %v157_v0  ;;  %v156_v5 = vld [vmem:[%s204_s0] sm:$0x7f]  }
   0x4   :  { %v122_v6 = vld [vmem:[%s205_s2] ss:$0 sm:$0xff] }
   0x6   :  { %141 = vmatpush3.bf16.msra.mxu0 %v153_v2 }
   0x7   :  { %142 = vmatprep.subr.bf16.mxu0 %v157_v0 }
   0xa   :  { %143 = vmatpush3.bf16.msra.mxu0 %v154_v3 }
   0xb   :  { %144 = vmatprep.subr.bf16.mxu0 %v157_v0 }
   0xe   :  { %145 = vmatpush3.bf16.msra.mxu0 %v155_v4 }
  0x11   :  { %147 = vmatmul.mubr.msk.bf16.vlgmr.msra.gmra.mxu0 %vm61_vm1, %v156_v5 }
  0xd1   :  { %v99_v7 = vpop.f32.mrf.mxu0 }
  0xd2   :  { %v100_v8 = vadd.f32 %v122_v6, %v99_v7 }
  0xd3   :  { %v148_v9 = vpop.f32.mrf.mxu0 }
  0xd4   :  { %v131_v10 = vpack.c.bf16 %v100_v8, %v100_v8 }
  0xd5   :  { %v102_v11 = vpop.f32.mrf.mxu0 }
  0xd6   :  { %115 = vst.msk [vmem:[%s206_s3] sm:$0xf] %vm114_vm2, %v131_v10  ;;  %v103_v12 = vadd.f32 %v122_v6, %v102_v11 }
  0xd7   :  { %v149_v13 = vpop.f32.mrf.mxu0 }
  0xd8   :  { %v132_v14 = vpack.c.bf16 %v103_v12, %v103_v12 }
  0xda   :  { %117 = vst.msk [vmem:[%s206_s3 + $0x4] sm:$0x7] %vm116_vm3, %v132_v14 }

// kernel: conformer_encoder_forward.16
= control target key start
LH: loop header
LB: loop body
LE: loop exit
PB: predicated region body
PF: predicated region fallthrough
CT: control target
= control target key end

     0   :  { %vm33_vm0 = vcmask 261120   ;;  %vm37_vm1 = vcmask 259072   ;;  %v378_v16 = vmov 0.0   ;;  %vm379_vm2 = vmmov 0   ;;  %s487_s0 = inlined_call_operand.vmem [shape: bf16[14,32], index: 0, kind: input, shape index: {}]   ;;  %s488_s3 = inlined_call_operand.vmem [shape: bf16[32,128], index: 3, kind: input, shape index: {}]   ;;  %s489_s1 = inlined_call_operand.vmem [shape: f32[1,32], index: 1, kind: input, shape index: {}]   ;;  %s490_s2 = inlined_call_operand.vmem [shape: f32[1,32], index: 2, kind: input, shape index: {}]   ;;  %s491_s5 = inlined_call_operand.vmem [shape: bf16[128,32], index: 5, kind: input, shape index: {}]   ;;  %s492_s4 = inlined_call_operand.vmem [shape: f32[1,128], index: 4, kind: input, shape index: {}]   ;;  %s493_s6 = inlined_call_operand.vmem [shape: f32[1,32], index: 6, kind: input, shape index: {}]   ;;  %s494_s7 = inlined_call_operand.vmem [shape: bf16[14,32], index: 7, kind: output, shape index: {}]  }
   0x1   :  { %v27_v0 = vld [vmem:[%s487_s0] sm:$0xf]  ;;  %v28_v1 = vld [vmem:[%s487_s0 + $0x4] sm:$0x7]  ;;  %326 = vmatprep.subr.bf16.mxu0 %v378_v16  ;;  %v356_v17 = vld [vmem:[%s488_s3 + $0x8] sm:$0xff]   ;;  %330 = vmatprep.mubr.msk.bf16.mxu0 %vm379_vm2, %v378_v16  ;;  %vm285_vm3 = vcmask 257024  }
   0x2   :  { %v426_v2 = vunpack.c.l.bf16 %v27_v0  ;;  %v428_v3 = vunpack.c.l.bf16 %v28_v1  ;;  %334 = vmatprep.subr.bf16.mxu1 %v378_v16  ;;  %350 = vmatprep.mubr.msk.bf16.mxu1 %vm379_vm2, %v378_v16  ;;  %v357_v18 = vld [vmem:[%s488_s3] sm:$0xff]   ;;  %v358_v36 = vld [vmem:[%s491_s5 + $0x38] sm:$0xff]   ;;  %v359_v37 = vld [vmem:[%s491_s5 + $0x30] sm:$0xff]   ;;  %vm287_vm4 = vcmask 256000  }
   0x3   :  { %327 = vmatpush3.bf16.msra.mxu0 %v356_v17  ;;  %v293_v27 = vld [vmem:[%s489_s1] ss:$0 sm:$0xff]  ;;  %335 = vmatpush3.bf16.msra.mxu1 %v358_v36  ;;  %v360_v38 = vld [vmem:[%s491_s5 + $0x28] sm:$0xff]   ;;  %v362_v40 = vld [vmem:[%s491_s5 + $0x18] sm:$0xff]  }
   0x4   :  { %v34_v4 = vsel %vm33_vm0, %v426_v2, 0.0  ;;  %v38_v5 = vsel %vm37_vm1, %v428_v3, 0.0  ;;  %328 = vmatprep.subr.bf16.mxu0 %v378_v16  ;;  %v294_v31 = vld [vmem:[%s490_s2] ss:$0 sm:$0xff]  ;;  %336 = vmatprep.subr.bf16.mxu1 %v378_v16  ;;  %v363_v41 = vld [vmem:[%s491_s5 + $0x10] sm:$0xff]   ;;  %v364_v42 = vld [vmem:[%s491_s5 + $0x8] sm:$0xff]  }
   0x5   :  { %35 = vadd.xlane.f32.xlu0 %v34_v4  ;;  %v361_v39 = vld [vmem:[%s491_s5 + $0x20] sm:$0xff]  }
   0x6   :  { %v365_v43 = vld [vmem:[%s491_s5] sm:$0xff]  }
   0x7   :  { %329 = vmatpush3.bf16.msra.mxu0 %v357_v18  ;;  %337 = vmatpush3.bf16.msra.mxu1 %v359_v37  ;;  %v295_v44 = vld [vmem:[%s492_s4] ss:$0 sm:$0xff] }
   0x8   :  { %338 = vmatprep.subr.bf16.mxu1 %v378_v16  ;;  %v301_v62 = vld [vmem:[%s493_s6] ss:$0 sm:$0xff] }
   0x9   :  { %39 = vadd.xlane.f32.xlu0 %v38_v5 }
   0xb   :  { %339 = vmatpush3.bf16.msra.mxu1 %v360_v38 }
   0xc   :  { %340 = vmatprep.subr.bf16.mxu1 %v378_v16 }
   0xf   :  { %341 = vmatpush3.bf16.msra.mxu1 %v361_v39 }
  0x10   :  { %342 = vmatprep.subr.bf16.mxu1 %v378_v16 }
  0x13   :  { %343 = vmatpush3.bf16.msra.mxu1 %v362_v40 }
  0x14   :  { %344 = vmatprep.subr.bf16.mxu1 %v378_v16 }
  0x17   :  { %345 = vmatpush3.bf16.msra.mxu1 %v363_v41 }
  0x18   :  { %346 = vmatprep.subr.bf16.mxu1 %v378_v16 }
  0x1b   :  { %347 = vmatpush3.bf16.msra.mxu1 %v364_v42 }
  0x1c   :  { %348 = vmatprep.subr.bf16.mxu1 %v378_v16 }
  0x1f   :  { %349 = vmatpush3.bf16.msra.mxu1 %v365_v43 }
  0x8e   :  { %v36_v6 = vpop.xlane.xlu0 %35 }
  0x8f   :  { %v42_v7 = vmul.f32 0.03125, %v36_v6 }
  0x91   :  { %v44_v8 = vsub.f32 %v426_v2, %v42_v7 }
  0x92   :  { %v40_v9 = vpop.xlane.xlu0 %39 }
  0x93   :  { %v43_v10 = vmul.f32 0.03125, %v40_v9  ;;  %v46_v11 = vmul.f32 %v44_v8, %v44_v8 }
  0x95   :  { %v45_v12 = vsub.f32 %v428_v3, %v43_v10  ;;  %v48_v13 = vsel %vm33_vm0, %v46_v11, 0.0 }
  0x96   :  { %49 = vadd.xlane.f32.xlu1 %v48_v13 }
  0x97   :  { %v47_v14 = vmul.f32 %v45_v12, %v45_v12 }
  0x99   :  { %v51_v15 = vsel %vm37_vm1, %v47_v14, 0.0 }
  0x9a   :  { %52 = vadd.xlane.f32.xlu1 %v51_v15 }
 0x11f   :  { %v50_v19 = vpop.xlane.xlu1 %49 }
 0x120   :  { %v54_v20 = vmul.f32 0.03125, %v50_v19 }
 0x122   :  { %v56_v21 = vadd.f32 1e-05, %v54_v20 }
 0x123   :  { %v53_v22 = vpop.xlane.xlu1 %52 }
 0x124   :  { %366 = vrsqrt.f32 %v56_v21  ;;  %v55_v23 = vmul.f32 0.03125, %v53_v22 }
 0x126   :  { %v57_v24 = vadd.f32 1e-05, %v55_v23 }
 0x128   :  { %368 = vrsqrt.f32 %v57_v24 }
 0x131   :  { %v367_v25 = vpop.eup %366 }
 0x132   :  { %v60_v26 = vmul.f32 %v367_v25, %v44_v8 }
 0x134   :  { %v68_v30 = vmul.f32 %v293_v27, %v60_v26 }
 0x135   :  { %v369_v28 = vpop.eup %368 }
 0x136   :  { %v61_v29 = vmul.f32 %v369_v28, %v45_v12  ;;  %v76_v33 = vadd.f32 %v294_v31, %v68_v30 }
 0x138   :  { %v69_v32 = vmul.f32 %v293_v27, %v61_v29 }
 0x13a   :  { %v77_v34 = vadd.f32 %v294_v31, %v69_v32 }
 0x13c   :  { %v78_v35 = vpack.c.bf16 %v77_v34, %v76_v33 }
 0x13e   :  { %331 = vmatmul.mubr.msk.bf16.vlgmr.msra.gmra.mxu0 %vm33_vm0, %v78_v35 }
 0x1fe   :  { %v139_v45 = vpop.f32.mrf.mxu0 }
 0x1ff   :  { %v140_v46 = vadd.f32 %v295_v44, %v139_v45 }
 0x200   :  { %v332_v47 = vpop.f32.mrf.mxu0 }
 0x201   :  { %v299_v48 = vmul.f32 -1.442695, %v140_v46 }
 0x202   :  { %v142_v49 = vpop.f32.mrf.mxu0 }
 0x203   :  { %370 = vpow2.f32 %v299_v48  ;;  %v143_v50 = vadd.f32 %v295_v44, %v142_v49 }
 0x204   :  { %v333_v51 = vpop.f32.mrf.mxu0 }
 0x205   :  { %v300_v52 = vmul.f32 -1.442695, %v143_v50 }
 0x207   :  { %372 = vpow2.f32 %v300_v52 }
 0x210   :  { %v371_v53 = vpop.eup %370 }
 0x211   :  { %v152_v54 = vadd.f32 1.0, %v371_v53 }
 0x213   :  { %374 = vrcp.f32 %v152_v54 }
 0x214   :  { %v373_v55 = vpop.eup %372 }
 0x215   :  { %v153_v56 = vadd.f32 1.0, %v373_v55 }
 0x217   :  { %376 = vrcp.f32 %v153_v56 }
 0x220   :  { %v375_v57 = vpop.eup %374 }
 0x221   :  { %v158_v59 = vmul.f32 %v375_v57, %v140_v46 }
 0x224   :  { %v377_v58 = vpop.eup %376 }
 0x225   :  { %v159_v60 = vmul.f32 %v377_v58, %v143_v50 }
 0x227   :  { %v160_v61 = vpack.c.bf16 %v159_v60, %v158_v59 }
 0x229   :  { %351 = vmatmul.mubr.bf16.vlgmr.msra.gmra.mxu1 %v160_v61 }
 0x2e9   :  { %v266_v63 = vpop.f32.mrf.mxu1 }
 0x2ea   :  { %v267_v0 = vadd.f32 %v301_v62, %v266_v63 }
 0x2eb   :  { %v352_v1 = vpop.f32.mrf.mxu1 }
 0x2ec   :  { %v273_v4 = vmul.f32 0.5, %v267_v0 }
 0x2ed   :  { %v269_v5 = vpop.f32.mrf.mxu1 }
 0x2ee   :  { %v275_v6 = vadd.f32 %v273_v4, %v426_v2  ;;  %v270_v7 = vadd.f32 %v301_v62, %v269_v5 }
 0x2ef   :  { %v353_v8 = vpop.f32.mrf.mxu1 }
 0x2f0   :  { %v312_v9 = vpack.c.bf16 %v275_v6, %v275_v6  ;;  %v274_v10 = vmul.f32 0.5, %v270_v7 }
 0x2f2   :  { %286 = vst.msk [vmem:[%s494_s7] sm:$0xf] %vm285_vm3, %v312_v9  ;;  %v276_v11 = vadd.f32 %v274_v10, %v428_v3 }
 0x2f4   :  { %v313_v12 = vpack.c.bf16 %v276_v11, %v276_v11 }
 0x2f6   :  { %288 = vst.msk [vmem:[%s494_s7 + $0x4] sm:$0x7] %vm287_vm4, %v313_v12 }

// kernel: conformer_encoder_forward.17
= control target key start
LH: loop header
LB: loop body
LE: loop exit
PB: predicated region body
PF: predicated region fallthrough
CT: control target
= control target key end

     0   :  { %s857_s30 = smov 0   ;;  %s859_s10 = smov 0   ;;  %s925_s0 = inlined_call_operand.vmem [shape: bf16[2,7,32], index: 0, kind: input, shape index: {}]   ;;  %s926_s1 = inlined_call_operand.vmem [shape: f32[7,32], index: 1, kind: input, shape index: {}]   ;;  %s927_s2 = inlined_call_operand.vmem [shape: f32[1,32], index: 2, kind: input, shape index: {}]   ;;  %s928_s3 = inlined_call_operand.vmem [shape: f32[1,32], index: 3, kind: input, shape index: {}]   ;;  %s929_s4 = inlined_call_operand.vmem [shape: bf16[32,32], index: 4, kind: input, shape index: {}]   ;;  %s930_s5 = inlined_call_operand.vmem [shape: f32[1,32], index: 5, kind: input, shape index: {}]   ;;  %s931_s6 = inlined_call_operand.vmem [shape: bf16[32,64], index: 6, kind: input, shape index: {}]   ;;  %s932_s7 = inlined_call_operand.vmem [shape: f32[1,64], index: 7, kind: input, shape index: {}]   ;;  %s933_s8 = inlined_call_operand.vmem [shape: bf16[2,7,32], index: 8, kind: output, shape index: {0}]   ;;  %s934_s9 = inlined_call_operand.vmem [shape: bf16[2,7,64], index: 9, kind: output, shape index: {1}]  }
   0x1   :  { %s861_s11 = smov 0  }
   0x2 LB: > { %s32_s12 = sadd.s32 1, %s799_s10  ;;  %p711_p0 = scmp.ge.s32.totalorder %s803_s11, 1  ;;  %s803_s11 = sphi %s861_s11, %s20_s11   ;;  %s799_s10 = sphi %s859_s10, %s936_s10   ;;  %s795_s30 = sphi %s857_s30, %s935_s30  }
   0x3   : > { %p34_p1 = scmp.ge.s32.totalorder %s32_s12, 2  ;;  %p319_p2 = scmp.lt.s32.totalorder %s803_s11, 3 }
   0x5   : > { %s938_s12 = smov (%p34_p1, %s32_s12), 0  ;;  %p320_p3 = pnand %p711_p0, %p319_p2 }
   0x6   : > { %p370_p4 = scmp.lt.s32.totalorder (!%p320_p3), %s795_s30, 1 }
   0x7   : > { %323 = sbr.rel (%p320_p3) target bundleno = 529 (0x211), region = 52 }
   0xc   : > { %s940_s30 = smov (!%p370_p4, %s795_s30), 1  ;;  %vm400_vm0 = vcmask 260096   ;;  %v775_v8 = vld [vmem:[%s929_s4 + $0x8] sm:$0xff]   ;;  %v805_v10 = vmov 0.0   ;;  %v777_v11 = vld [vmem:[%s929_s4] sm:$0xff]   ;;  %vm806_vm1 = vmmov 0  }
   0xd   : > { %s875_s13 = sshll.u32 %s940_s30, 2  ;;  %v776_v9 = vld [vmem:[%s931_s6 + $0x8] sm:$0xff]   ;;  %733 = vmatprep.subr.bf16.mxu0 %v805_v10  ;;  %741 = vmatprep.subr.bf16.mxu1 %v805_v10  ;;  %v778_v12 = vld [vmem:[%s931_s6] sm:$0xff]   ;;  %vm455_vm2 = vcmask 261120   ;;  %vm563_vm3 = vcmask 257024   ;;  %vm570_vm5 = vcmask 519168  }
   0xe   : > { %s376_s16 = scalar_lea.vmem %s925_s0, %s875_s13  ;;  %734 = vmatpush3.bf16.msra.mxu0 %v775_v8  ;;  %742 = vmatpush3.bf16.msra.mxu1 %v776_v9  ;;  %v715_v17 = vld [vmem:[%s927_s2] ss:$0 sm:$0xff]  ;;  %vm564_vm4 = vsmask.f32 3328  ;;  %s387_s20 = scalar_lea.vmem %s933_s8, %s875_s13 }
   0xf   : > { %v396_v0 = vld [vmem:[%s376_s16] sm:$0xf]  ;;  %735 = vmatprep.subr.bf16.mxu0 %v805_v10  ;;  %743 = vmatprep.subr.bf16.mxu1 %v805_v10  ;;  %s394_s23 = scalar_lea.vmem %s934_s9, %s875_s13  ;;  %vm565_vm6 = vmand %vm563_vm3, %vm564_vm4 }
  0x10   : > { %v397_v1 = vunpack.c.l.bf16 %v396_v0  ;;  %737 = vmatprep.mubr.msk.bf16.mxu0 %vm806_vm1, %v805_v10  ;;  %745 = vmatprep.mubr.msk.bf16.mxu1 %vm806_vm1, %v805_v10  ;;  %v716_v19 = vld [vmem:[%s928_s3] ss:$0 sm:$0xff]  ;;  %vm571_vm7 = vmand %vm570_vm5, %vm564_vm4 }
  0x11   : > { %v429_v21 = vld [vmem:[%s926_s1] sm:$0x7f] }
  0x12   : > { %v401_v2 = vsel %vm400_vm0, %v397_v1, 0.0  ;;  %736 = vmatpush3.bf16.msra.mxu0 %v777_v11  ;;  %744 = vmatpush3.bf16.msra.mxu1 %v778_v12  ;;  %v717_v25 = vld [vmem:[%s930_s5] ss:$0 sm:$0xff] }
  0x13   : > { %402 = vadd.xlane.f32.xlu0 %v401_v2  ;;  %v721_v26 = vld [vmem:[%s932_s7] ss:$0 sm:$0xff] }
  0x14   : > { %v566_v31 = vld [vmem:[%s387_s20] sm:$0xf] }
  0x15   : > { %v572_v32 = vld [vmem:[%s394_s23] sm:$0xf] }
  0x9c   : > { %v403_v3 = vpop.xlane.xlu0 %402 }
  0x9d   : > { %v405_v4 = vmul.f32 0.03125, %v403_v3 }
  0x9f   : > { %v406_v5 = vsub.f32 %v397_v1, %v405_v4 }
  0xa1   : > { %v407_v6 = vmul.f32 %v406_v5, %v406_v5 }
  0xa3   : > { %v408_v7 = vsel %vm400_vm0, %v407_v6, 0.0 }
  0xa4   : > { %409 = vadd.xlane.f32.xlu0 %v408_v7 }
 0x12d   : > { %v410_v13 = vpop.xlane.xlu0 %409 }
 0x12e   : > { %v411_v14 = vmul.f32 0.03125, %v410_v13 }
 0x130   : > { %v412_v15 = vadd.f32 1e-05, %v411_v14 }
 0x132   : > { %779 = vrsqrt.f32 %v412_v15 }
 0x13f   : > { %v780_v16 = vpop.eup %779 }
 0x140   : > { %v414_v18 = vmul.f32 %v780_v16, %v406_v5 }
 0x142   : > { %v421_v20 = vmul.f32 %v715_v17, %v414_v18 }
 0x144   : > { %v428_v22 = vadd.f32 %v716_v19, %v421_v20 }
 0x146   : > { %v430_v23 = vadd.f32 %v429_v21, %v428_v22 }
 0x148   : > { %v431_v24 = vpack.c.bf16 %v430_v23, %v430_v23 }
 0x14a   : > { %738 = vmatmul.mubr.msk.bf16.vlgmr.msra.gmra.mxu0 %vm455_vm2, %v431_v24  ;;  %746 = vmatmul.mubr.msk.bf16.vlgmr.msra.gmra.mxu1 %vm455_vm2, %v431_v24 }
 0x20a   : > { %v493_v27 = vpop.f32.mrf.mxu0  ;;  %v556_v28 = vpop.f32.mrf.mxu1 }
 0x20b   : > { %v494_v29 = vadd.f32 %v717_v25, %v493_v27  ;;  %v557_v30 = vadd.f32 %v721_v26, %v556_v28 }
 0x20c   : > { %v739_v33 = vpop.f32.mrf.mxu0  ;;  %v747_v34 = vpop.f32.mrf.mxu1 }
 0x20d   : > { %v562_v35 = vpack.c.bf16 %v494_v29, %v494_v29  ;;  %v569_v36 = vpack.c.bf16 %v557_v30, %v557_v30 }
 0x20e   : > { %v496_v37 = vpop.f32.mrf.mxu0  ;;  %v559_v38 = vpop.f32.mrf.mxu1 }
 0x20f   : > { %v567_v39 = vsel %vm565_vm6, %v562_v35, %v566_v31  ;;  %v573_v40 = vsel %vm571_vm7, %v569_v36, %v572_v32 }
 0x210   : > { %568 = vst [vmem:[%s387_s20] sm:$0xf] %v567_v39  ;;  %574 = vst [vmem:[%s394_s23] sm:$0xf] %v573_v40  ;;  %v740_v41 = vpop.f32.mrf.mxu0  ;;  %v748_v42 = vpop.f32.mrf.mxu1 }
 0x211 PF: > { %s20_s11 = sadd.s32 1, %s803_s11   ;;  %s935_s30 = smov %s799_s10 }
 0x212   : > { %p17_p5 = scmp.ge.s32.totalorder %s20_s11, 4   ;;  %s936_s10 = smov %s938_s12 }
 0x214   :  { %19 = sbr.rel (!%p17_p5) target bundleno = 2 (0x2), region = 97 }

// kernel: conformer_encoder_forward.18
= control target key start
LH: loop header
LB: loop body
LE: loop exit
PB: predicated region body
PF: predicated region fallthrough
CT: control target
= control target key end

     0   :  { %s1303_s18 = smov 0   ;;  %s1305_s19 = smov 0   ;;  %s1454_s0 = inlined_call_operand.vmem [shape: bf16[2,7,32], index: 0, kind: input, shape index: {}]   ;;  %s1455_s1 = inlined_call_operand.vmem [shape: bf16[2,7,64], index: 1, kind: input, shape index: {}]   ;;  %s1456_s2 = inlined_call_operand.vmem [shape: bf16[2,7,32], index: 2, kind: input, shape index: {}]   ;;  %s1457_s3 = inlined_call_operand.vmem [shape: bf16[32,32], index: 3, kind: input, shape index: {}]   ;;  %s1458_s4 = inlined_call_operand.vmem [shape: f32[1,32], index: 4, kind: input, shape index: {}]   ;;  %s1459_s5 = inlined_call_operand.vmem [shape: bf16[2,7,32], index: 5, kind: output, shape index: {}]  }
   0x1   :  { %s1307_s20 = smov 0  }
   0x2 LB: > { %s27_s21 = sadd.s32 1, %s1257_s19  ;;  %p1069_p0 = scmp.ge.s32.totalorder %s1261_s20, 1  ;;  %s1261_s20 = sphi %s1307_s20, %s15_s20   ;;  %s1257_s19 = sphi %s1305_s19, %s1461_s19   ;;  %s1253_s18 = sphi %s1303_s18, %s1460_s18  }
   0x3   : > { %p29_p1 = scmp.ge.s32.totalorder %s27_s21, 2  ;;  %p228_p2 = scmp.lt.s32.totalorder %s1261_s20, 3 }
   0x5   : > { %s1463_s21 = smov (%p29_p1, %s27_s21), 0  ;;  %p229_p3 = pnand %p1069_p0, %p228_p2 }
   0x6   : > { %p271_p4 = scmp.lt.s32.totalorder (!%p229_p3), %s1253_s18, 1  ;;  %s1265_s29 = smov (!%p229_p3), 96  }
   0x7   : > { %232 = sbr.rel (%p229_p3) target bundleno = 2677 (0xa75), region = 40  ;;  %s1266_s30 = smov (!%p229_p3), 120  }
   0x8   : > { %s1268_s6 = smov (!%p229_p3), 88   ;;  %s1269_s9 = smov (!%p229_p3), 112  }
   0x9   : > { %s1270_s12 = smov (!%p229_p3), 80   ;;  %s1271_s13 = smov (!%p229_p3), 104  }
   0xa   : > { %s1272_s16 = smov (!%p229_p3), 72  }
   0xc   : > { %v1263_v0 = vmov 0.0   ;;  %vm1264_vm0 = vmmov 0   ;;  %s1465_s18 = smov (!%p271_p4, %s1253_s18), 1  ;;  %vm299_vm1 = vcmask 64512   ;;  %vm347_vm2 = vcmask 55296  }
   0xd   : > { %1115 = vmatprep.subr.bf16.mxu0 %v1263_v0  ;;  %1117 = vmatprep.mubr.msk.bf16.mxu0 %vm1264_vm0, %v1263_v0  ;;  %s1327_s22 = sshll.u32 %s1465_s18, 2  ;;  %vm369_vm3 = vcmask 1042432   ;;  %vm370_vm4 = vcmask 1043456   ;;  %v1267_v17 = vmov 65535   ;;  %vm365_vm5 = vcmask 56320  }
   0xe   : > { %1121 = vmatprep.subr.bf16.mxu1 %v1263_v0  ;;  %1123 = vmatprep.mubr.msk.bf16.mxu1 %vm1264_vm0, %v1263_v0  ;;  %s281_s25 = scalar_lea.vmem %s1455_s1, %s1327_s22  ;;  %s277_s28 = scalar_lea.vmem %s1454_s0, %s1327_s22  ;;  %v371_v18 = vsel %vm369_vm3, 4294967295, %v1267_v17  ;;  %v533_v46 = vld [vmem:[%s1457_s3 + $0x4] sm:$0xf]  ;;  %v417_v50 = vld [vmem:[%s1457_s3] sm:$0xf]  ;;  %vm958_vm6 = vcmask 257024  }
   0xf   : > { %v298_v1 = vld [vmem:[%s281_s25] sm:$0xf]  ;;  %v1349_v19 = vsel %vm370_vm4, %v371_v18, 0  ;;  %v538_v47 = vsel %vm370_vm4, %v533_v46, 0  ;;  %v584_v53 = vsel %vm370_vm4, %v417_v50, 0  ;;  %s288_s25 = scalar_lea.vmem %s1456_s2, %s1327_s22 }
  0x10   : > { %v304_v2 = vsel %vm299_vm1, %v298_v1, 0  ;;  %v297_v3 = vld [vmem:[%s277_s28] sm:$0xf]  ;;  %v1343_v10 = vcombine.low %v298_v1, %v298_v1  ;;  %vm959_vm7 = vsmask.f32 3328 }
  0x11   : > { %1116 = vmatpush3.bf16.xpose.msra.mxu0 %v304_v2  ;;  %v1353_v21 = vcombine.low %v297_v3, %v297_v3  ;;  %vm960_vm8 = vmand %vm958_vm6, %vm959_vm7 }
  0x12   : > { %1133 = vmatprep.subr.bf16.mxu0 %v1263_v0  ;;  %363 = vrot.lane.b32.xlu1 %v1343_v10, %s1265_s29 }
  0x16   : > { %423 = vrot.lane.b32.xlu1 %v1343_v10, %s1266_s30 }
  0x18   : > { %1118 = vmatmul.mubr.msk.bf16.vlgmr.msra.gmra.mxu0 %vm299_vm1, %v297_v3 }
  0x19   : > { %1135 = vmatprep.mubr.msk.bf16.mxu0 %vm1264_vm0, %v1263_v0 }
  0x84   : > { %v364_v16 = vpop.permute.xlu1 %363 }
  0x85   : > { %v374_v20 = vand.u32 %v1349_v19, %v364_v16 }
  0x87   : > { %1122 = vmatpush3.bf16.msra.mxu1 %v374_v20 }
  0x88   : > { %1127 = vmatprep.subr.bf16.mxu1 %v1263_v0  ;;  %v424_v24 = vpop.permute.xlu1 %423 }
  0x89   : > { %v429_v26 = vsel %vm299_vm1, %v424_v24, 0 }
  0xd8   : > { %v340_v4 = vpop.f32.mrf.mxu0 }
  0xd9   : > { %v346_v5 = vmul.f32 0.35355338, %v340_v4 }
  0xda   : > { %v1119_v6 = vpop.f32.mrf.mxu0 }
  0xdb   : > { %v348_v7 = vsel %vm347_vm2, %v346_v5, -inf }
  0xdc   : > { %349 = vmax.xlane.f32.xlu0 %v348_v7  ;;  %v343_v8 = vpop.f32.mrf.mxu0 }
  0xde   : > { %v1120_v9 = vpop.f32.mrf.mxu0 }
 0x165   : > { %v350_v11 = vpop.xlane.xlu0 %349 }
 0x166   : > { %v351_v12 = vsub.f32 %v346_v5, %v350_v11 }
 0x168   : > { %v352_v13 = vmul.f32 1.442695, %v351_v12 }
 0x16a   : > { %1223 = vpow2.f32 %v352_v13 }
 0x177   : > { %v1224_v14 = vpop.eup %1223 }
 0x178   : > { %v354_v15 = vsel %vm347_vm2, %v1224_v14, 0.0 }
 0x179   : > { %355 = vadd.xlane.f32.xlu0 %v354_v15 }
 0x18f   : > { %421 = vrot.lane.b32.xlu0 %v1353_v21, %s1266_s30  ;;  %s295_s30 = scalar_lea.vmem %s1459_s5, %s1327_s22 }
 0x202   : > { %v356_v22 = vpop.xlane.xlu0 %355 }
 0x203   : > { %1225 = vrcp.f32 %v356_v22 }
 0x206   : > { %v422_v28 = vpop.permute.xlu0 %421 }
 0x210   : > { %v1226_v23 = vpop.eup %1225 }
 0x211   : > { %v358_v25 = vmul.f32 %v1226_v23, %v1224_v14 }
 0x213   : > { %v359_v27 = vpack.c.bf16 %v358_v25, %v358_v25 }
 0x215   : > { %1124 = vmatmul.mubr.msk.bf16.vlgmr.msra.gmra.mxu1 %vm365_vm5, %v359_v27 }
 0x216   : > { %1128 = vmatpush3.bf16.xpose.msra.mxu1 %v429_v26  ;;  %1129 = vmatprep.mubr.msk.bf16.mxu1 %vm1264_vm0, %v1263_v0 }
 0x217   : > { %1139 = vmatprep.subr.bf16.mxu1 %v1263_v0 }
 0x21d   : > { %1130 = vmatmul.mubr.msk.bf16.vlgmr.msra.gmra.mxu1 %vm299_vm1, %v422_v28 }
 0x21e   : > { %1141 = vmatprep.mubr.msk.bf16.mxu1 %vm1264_vm0, %v1263_v0  ;;  %1140 = vmatpush3.bf16.msra.mxu1 %v538_v47 }
 0x21f   : > { %1151 = vmatprep.subr.bf16.mxu1 %v1263_v0 }
 0x2d5   : > { %v410_v29 = vpop.f32.mrf.mxu1 }
 0x2d6   : > { %v416_v54 = vpack.c.bf16 %v410_v29, %v410_v29 }
 0x2d7   : > { %v1125_v30 = vpop.f32.mrf.mxu1 }
 0x2d8   : > { %v738_v30 = vld [vmem:[%s1457_s3 + $0x8] sm:$0xf] }
 0x2d9   : > { %v413_v31 = vpop.f32.mrf.mxu1 }
 0x2da   : > { %v743_v31 = vsel %vm370_vm4, %v738_v30, 0 }
 0x2db   : > { %v1126_v32 = vpop.f32.mrf.mxu1 }
 0x2dd   : > { %v465_v33 = vpop.f32.mrf.mxu1 }
 0x2de   : > { %v471_v34 = vmul.f32 0.35355338, %v465_v33 }
 0x2df   : > { %v1131_v35 = vpop.f32.mrf.mxu1 }
 0x2e0   : > { %v472_v36 = vsel %vm347_vm2, %v471_v34, -inf }
 0x2e1   : > { %473 = vmax.xlane.f32.xlu1 %v472_v36  ;;  %v468_v37 = vpop.f32.mrf.mxu1 }
 0x2e3   : > { %v1132_v38 = vpop.f32.mrf.mxu1 }
 0x2f2   : > { %484 = vrot.lane.b32.xlu1 %v1343_v10, %s1268_s6 }
 0x2f6   : > { %626 = vrot.lane.b32.xlu1 %v1353_v21, %s1269_s9 }
 0x36a   : > { %v474_v39 = vpop.xlane.xlu1 %473 }
 0x36b   : > { %v475_v40 = vsub.f32 %v471_v34, %v474_v39 }
 0x36d   : > { %v476_v41 = vmul.f32 1.442695, %v475_v40 }
 0x36e   : > { %v485_v44 = vpop.permute.xlu1 %484 }
 0x36f   : > { %1227 = vpow2.f32 %v476_v41  ;;  %v490_v45 = vand.u32 %v485_v44, %v1349_v19 }
 0x371   : > { %1134 = vmatpush3.bf16.msra.mxu0 %v490_v45 }
 0x372   : > { %1145 = vmatprep.subr.bf16.mxu0 %v1263_v0  ;;  %v627_v63 = vpop.permute.xlu1 %626 }
 0x37c   : > { %v1228_v42 = vpop.eup %1227 }
 0x37d   : > { %v478_v43 = vsel %vm347_vm2, %v1228_v42, 0.0 }
 0x37e   : > { %479 = vadd.xlane.f32.xlu0 %v478_v43 }
 0x394   : > { %628 = vrot.lane.b32.xlu0 %v1343_v10, %s1269_s9 }
 0x407   : > { %v480_v48 = vpop.xlane.xlu0 %479 }
 0x408   : > { %1229 = vrcp.f32 %v480_v48 }
 0x40b   : > { %v629_v55 = vpop.permute.xlu0 %628 }
 0x40c   : > { %v634_v58 = vsel %vm299_vm1, %v629_v55, 0 }
 0x415   : > { %v1230_v49 = vpop.eup %1229 }
 0x416   : > { %v482_v51 = vmul.f32 %v1230_v49, %v1228_v42 }
 0x418   : > { %v483_v52 = vpack.c.bf16 %v482_v51, %v482_v51 }
 0x41a   : > { %1136 = vmatmul.mubr.msk.bf16.vlgmr.msra.gmra.mxu0 %vm365_vm5, %v483_v52 }
 0x41b   : > { %1146 = vmatpush3.bf16.msra.mxu0 %v584_v53  ;;  %1147 = vmatprep.mubr.msk.bf16.mxu0 %vm1264_vm0, %v1263_v0 }
 0x41c   : > { %1157 = vmatprep.subr.bf16.mxu0 %v1263_v0 }
 0x422   : > { %1148 = vmatmul.mubr.msk.bf16.vlgmr.msra.gmra.mxu0 %vm299_vm1, %v416_v54 }
 0x423   : > { %1159 = vmatprep.mubr.msk.bf16.mxu0 %vm1264_vm0, %v1263_v0 }
 0x4da   : > { %v526_v56 = vpop.f32.mrf.mxu0 }
 0x4db   : > { %v532_v57 = vpack.c.bf16 %v526_v56, %v526_v56 }
 0x4dc   : > { %v1137_v59 = vpop.f32.mrf.mxu0 }
 0x4dd   : > { %1142 = vmatmul.mubr.msk.bf16.vlgmr.msra.gmra.mxu1 %vm299_vm1, %v532_v57 }
 0x4de   : > { %1152 = vmatpush3.bf16.xpose.msra.mxu1 %v634_v58  ;;  %v529_v60 = vpop.f32.mrf.mxu0  ;;  %1153 = vmatprep.mubr.msk.bf16.mxu1 %vm1264_vm0, %v1263_v0 }
 0x4df   : > { %1163 = vmatprep.subr.bf16.mxu1 %v1263_v0 }
 0x4e0   : > { %v1138_v61 = vpop.f32.mrf.mxu0 }
 0x4e2   : > { %v1392_v62 = vpop.f32.mrf.mxu0 }
 0x4e4   : > { %v1149_v1 = vpop.f32.mrf.mxu0 }
 0x4e5   : > { %1154 = vmatmul.mubr.msk.bf16.vlgmr.msra.gmra.mxu1 %vm299_vm1, %v627_v63  ;;  %v954_v1 = vld [vmem:[%s288_s25] sm:$0xf] }
 0x4e6   : > { %v623_v2 = vpop.f32.mrf.mxu0  ;;  %1165 = vmatprep.mubr.msk.bf16.mxu1 %vm1264_vm0, %v1263_v0  ;;  %1164 = vmatpush3.bf16.msra.mxu1 %v743_v31 }
 0x4e7   : > { %1175 = vmatprep.subr.bf16.mxu1 %v1263_v0 }
 0x4e8   : > { %v1150_v3 = vpop.f32.mrf.mxu0 }
 0x4e9   : > { %v1088_v3 = vld [vmem:[%s1458_s4] ss:$0 sm:$0xff] }
 0x59d   : > { %v1397_v4 = vpop.f32.mrf.mxu1 }
 0x59e   : > { %v621_v49 = vadd.f32 %v1392_v62, %v1397_v4 }
 0x59f   : > { %v1143_v5 = vpop.f32.mrf.mxu1 }
 0x5a0   : > { %v955_v5 = vunpack.c.l.bf16 %v954_v1 }
 0x5a1   : > { %v577_v6 = vpop.f32.mrf.mxu1 }
 0x5a3   : > { %v1144_v7 = vpop.f32.mrf.mxu1 }
 0x5a5   : > { %v670_v8 = vpop.f32.mrf.mxu1 }
 0x5a6   : > { %v676_v9 = vmul.f32 0.35355338, %v670_v8 }
 0x5a7   : > { %v1155_v11 = vpop.f32.mrf.mxu1 }
 0x5a8   : > { %v677_v12 = vsel %vm347_vm2, %v676_v9, -inf  ;;  %v961_v11 = vld [vmem:[%s295_s30] sm:$0xf] }
 0x5a9   : > { %678 = vmax.xlane.f32.xlu1 %v677_v12  ;;  %v673_v13 = vpop.f32.mrf.mxu1 }
 0x5ab   : > { %v1156_v14 = vpop.f32.mrf.mxu1 }
 0x5ba   : > { %689 = vrot.lane.b32.xlu1 %v1343_v10, %s1270_s12 }
 0x5be   : > { %786 = vrot.lane.b32.xlu1 %v1353_v21, %s1271_s13 }
 0x632   : > { %v679_v15 = vpop.xlane.xlu1 %678 }
 0x633   : > { %v680_v16 = vsub.f32 %v676_v9, %v679_v15 }
 0x635   : > { %v681_v17 = vmul.f32 1.442695, %v680_v16 }
 0x636   : > { %v690_v22 = vpop.permute.xlu1 %689 }
 0x637   : > { %1231 = vpow2.f32 %v681_v17  ;;  %v695_v23 = vand.u32 %v690_v22, %v1349_v19 }
 0x639   : > { %1158 = vmatpush3.bf16.msra.mxu0 %v695_v23 }
 0x63a   : > { %1169 = vmatprep.subr.bf16.mxu0 %v1263_v0  ;;  %v787_v29 = vpop.permute.xlu1 %786 }
 0x644   : > { %v1232_v18 = vpop.eup %1231 }
 0x645   : > { %v683_v20 = vsel %vm347_vm2, %v1232_v18, 0.0 }
 0x646   : > { %684 = vadd.xlane.f32.xlu0 %v683_v20 }
 0x65c   : > { %788 = vrot.lane.b32.xlu0 %v1343_v10, %s1271_s13 }
 0x6cf   : > { %v685_v24 = vpop.xlane.xlu0 %684 }
 0x6d0   : > { %1233 = vrcp.f32 %v685_v24 }
 0x6d3   : > { %v789_v21 = vpop.permute.xlu0 %788 }
 0x6d4   : > { %v794_v27 = vsel %vm299_vm1, %v789_v21, 0 }
 0x6dd   : > { %v1234_v25 = vpop.eup %1233 }
 0x6de   : > { %v687_v26 = vmul.f32 %v1234_v25, %v1232_v18 }
 0x6e0   : > { %v688_v28 = vpack.c.bf16 %v687_v26, %v687_v26 }
 0x6e2   : > { %1160 = vmatmul.mubr.msk.bf16.vlgmr.msra.gmra.mxu0 %vm365_vm5, %v688_v28 }
 0x6e3   : > { %1170 = vmatpush3.bf16.xpose.msra.mxu0 %v794_v27  ;;  %1171 = vmatprep.mubr.msk.bf16.mxu0 %vm1264_vm0, %v1263_v0 }
 0x6e4   : > { %1181 = vmatprep.subr.bf16.mxu0 %v1263_v0 }
 0x6ea   : > { %1172 = vmatmul.mubr.msk.bf16.vlgmr.msra.gmra.mxu0 %vm299_vm1, %v787_v29 }
 0x6eb   : > { %1183 = vmatprep.mubr.msk.bf16.mxu0 %vm1264_vm0, %v1263_v0 }
 0x7a2   : > { %v731_v32 = vpop.f32.mrf.mxu0 }
 0x7a3   : > { %v737_v33 = vpack.c.bf16 %v731_v32, %v731_v32 }
 0x7a4   : > { %v1161_v34 = vpop.f32.mrf.mxu0 }
 0x7a5   : > { %1166 = vmatmul.mubr.msk.bf16.vlgmr.msra.gmra.mxu1 %vm299_vm1, %v737_v33 }
 0x7a6   : > { %v734_v35 = vpop.f32.mrf.mxu0  ;;  %1177 = vmatprep.mubr.msk.bf16.mxu1 %vm1264_vm0, %v1263_v0 }
 0x7a8   : > { %v1162_v36 = vpop.f32.mrf.mxu0 }
 0x7aa   : > { %v830_v37 = vpop.f32.mrf.mxu0 }
 0x7ab   : > { %v836_v38 = vmul.f32 0.35355338, %v830_v37 }
 0x7ac   : > { %v1173_v39 = vpop.f32.mrf.mxu0 }
 0x7ad   : > { %v837_v40 = vsel %vm347_vm2, %v836_v38, -inf }
 0x7ae   : > { %838 = vmax.xlane.f32.xlu1 %v837_v40  ;;  %v833_v41 = vpop.f32.mrf.mxu0 }
 0x7b0   : > { %v1174_v42 = vpop.f32.mrf.mxu0 }
 0x7bf   : > { %849 = vrot.lane.b32.xlu1 %v1343_v10, %s1272_s16  ;;  %v898_v10 = vld [vmem:[%s1457_s3 + $0xc] sm:$0xf] }
 0x7c0   : > { %v903_v53 = vsel %vm370_vm4, %v898_v10, 0 }
 0x7c1   : > { %1182 = vmatpush3.bf16.msra.mxu0 %v903_v53 }
 0x837   : > { %v839_v43 = vpop.xlane.xlu1 %838 }
 0x838   : > { %v840_v44 = vsub.f32 %v836_v38, %v839_v43 }
 0x83a   : > { %v841_v45 = vmul.f32 1.442695, %v840_v44 }
 0x83b   : > { %v850_v0 = vpop.permute.xlu1 %849 }
 0x83c   : > { %1235 = vpow2.f32 %v841_v45  ;;  %v855_v48 = vand.u32 %v850_v0, %v1349_v19 }
 0x83e   : > { %1176 = vmatpush3.bf16.msra.mxu1 %v855_v48 }
 0x849   : > { %v1236_v46 = vpop.eup %1235 }
 0x84a   : > { %v843_v47 = vsel %vm347_vm2, %v1236_v46, 0.0 }
 0x84b   : > { %844 = vadd.xlane.f32.xlu0 %v843_v47 }
 0x865   : > { %v779_v50 = vpop.f32.mrf.mxu1 }
 0x866   : > { %v785_v51 = vadd.f32 %v779_v50, %v621_v49 }
 0x867   : > { %v1167_v52 = vpop.f32.mrf.mxu1 }
 0x869   : > { %v782_v54 = vpop.f32.mrf.mxu1 }
 0x86b   : > { %v1168_v55 = vpop.f32.mrf.mxu1 }
 0x8d4   : > { %v845_v56 = vpop.xlane.xlu0 %844 }
 0x8d5   : > { %1237 = vrcp.f32 %v845_v56 }
 0x8e2   : > { %v1238_v19 = vpop.eup %1237 }
 0x8e3   : > { %v847_v57 = vmul.f32 %v1238_v19, %v1236_v46 }
 0x8e5   : > { %v848_v58 = vpack.c.bf16 %v847_v57, %v847_v57 }
 0x8e7   : > { %1178 = vmatmul.mubr.msk.bf16.vlgmr.msra.gmra.mxu1 %vm365_vm5, %v848_v58 }
 0x9a7   : > { %v891_v59 = vpop.f32.mrf.mxu1 }
 0x9a8   : > { %v897_v60 = vpack.c.bf16 %v891_v59, %v891_v59 }
 0x9a9   : > { %v1179_v61 = vpop.f32.mrf.mxu1 }
 0x9aa   : > { %1184 = vmatmul.mubr.msk.bf16.vlgmr.msra.gmra.mxu0 %vm299_vm1, %v897_v60 }
 0x9ab   : > { %v894_v62 = vpop.f32.mrf.mxu1 }
 0x9ad   : > { %v1180_v63 = vpop.f32.mrf.mxu1 }
 0xa6a   : > { %v939_v2 = vpop.f32.mrf.mxu0 }
 0xa6b   : > { %v945_v4 = vadd.f32 %v939_v2, %v785_v51 }
 0xa6c   : > { %v1185_v6 = vpop.f32.mrf.mxu0 }
 0xa6d   : > { %v953_v7 = vadd.f32 %v1088_v3, %v945_v4 }
 0xa6e   : > { %v942_v8 = vpop.f32.mrf.mxu0 }
 0xa6f   : > { %v956_v9 = vadd.f32 %v955_v5, %v953_v7 }
 0xa70   : > { %v1186_v12 = vpop.f32.mrf.mxu0 }
 0xa71   : > { %v957_v13 = vpack.c.bf16 %v956_v9, %v956_v9 }
 0xa73   : > { %v962_v14 = vsel %vm960_vm8, %v957_v13, %v961_v11 }
 0xa74   : > { %963 = vst [vmem:[%s295_s30] sm:$0xf] %v962_v14 }
 0xa75 PF: > { %s15_s20 = sadd.s32 1, %s1261_s20   ;;  %s1460_s18 = smov %s1257_s19 }
 0xa76   : > { %p12_p5 = scmp.ge.s32.totalorder %s15_s20, 4   ;;  %s1461_s19 = smov %s1463_s21 }
 0xa78   :  { %14 = sbr.rel (!%p12_p5) target bundleno = 2 (0x2), region = 76 }

// kernel: conformer_encoder_forward.19
= control target key start
LH: loop header
LB: loop body
LE: loop exit
PB: predicated region body
PF: predicated region fallthrough
CT: control target
= control target key end

     0   :  { %vm33_vm0 = vcmask 261120   ;;  %vm37_vm1 = vcmask 259072   ;;  %v296_v16 = vmov 0.0   ;;  %vm297_vm2 = vmmov 0   ;;  %s378_s0 = inlined_call_operand.vmem [shape: bf16[14,32], index: 0, kind: input, shape index: {}]   ;;  %s379_s3 = inlined_call_operand.vmem [shape: bf16[32,32], index: 3, kind: input, shape index: {}]   ;;  %s380_s5 = inlined_call_operand.vmem [shape: bf16[32,32], index: 5, kind: input, shape index: {}]   ;;  %s381_s1 = inlined_call_operand.vmem [shape: f32[1,32], index: 1, kind: input, shape index: {}]   ;;  %s382_s2 = inlined_call_operand.vmem [shape: f32[1,32], index: 2, kind: input, shape index: {}]   ;;  %s383_s6 = inlined_call_operand.vmem [shape: f32[1,32], index: 6, kind: input, shape index: {}]   ;;  %s384_s4 = inlined_call_operand.vmem [shape: f32[1,32], index: 4, kind: input, shape index: {}]   ;;  %s385_s7 = inlined_call_operand.vmem [shape: bf16[14,32], index: 7, kind: output, shape index: {}]  }
   0x1   :  { %v27_v0 = vld [vmem:[%s378_s0] sm:$0xf]  ;;  %v28_v1 = vld [vmem:[%s378_s0 + $0x4] sm:$0x7]  ;;  %262 = vmatprep.subr.bf16.mxu0 %v296_v16  ;;  %270 = vmatprep.subr.bf16.mxu1 %v296_v16  ;;  %v280_v17 = vld [vmem:[%s379_s3 + $0x8] sm:$0xff]   ;;  %vm232_vm3 = vcmask 257024  }
   0x2   :  { %v29_v2 = vunpack.c.l.bf16 %v27_v0  ;;  %v30_v3 = vunpack.c.l.bf16 %v28_v1  ;;  %v281_v18 = vld [vmem:[%s380_s5 + $0x8] sm:$0xff]   ;;  %266 = vmatprep.mubr.msk.bf16.mxu0 %vm297_vm2, %v296_v16  ;;  %274 = vmatprep.mubr.msk.bf16.mxu1 %vm297_vm2, %v296_v16  ;;  %v282_v19 = vld [vmem:[%s379_s3] sm:$0xff]   ;;  %vm234_vm4 = vcmask 256000  }
   0x3   :  { %263 = vmatpush3.bf16.msra.mxu0 %v280_v17  ;;  %271 = vmatpush3.bf16.msra.mxu1 %v281_v18  ;;  %v283_v20 = vld [vmem:[%s380_s5] sm:$0xff]  }
   0x4   :  { %v34_v4 = vsel %vm33_vm0, %v29_v2, 0.0  ;;  %v38_v5 = vsel %vm37_vm1, %v30_v3, 0.0  ;;  %264 = vmatprep.subr.bf16.mxu0 %v296_v16  ;;  %272 = vmatprep.subr.bf16.mxu1 %v296_v16  ;;  %v240_v29 = vld [vmem:[%s381_s1] ss:$0 sm:$0xff] }
   0x5   :  { %35 = vadd.xlane.f32.xlu0 %v34_v4  ;;  %v241_v33 = vld [vmem:[%s382_s2] ss:$0 sm:$0xff] }
   0x6   :  { %v246_v38 = vld [vmem:[%s383_s6] ss:$0 sm:$0xff] }
   0x7   :  { %265 = vmatpush3.bf16.msra.mxu0 %v282_v19  ;;  %273 = vmatpush3.bf16.msra.mxu1 %v283_v20  ;;  %v242_v55 = vld [vmem:[%s384_s4] ss:$0 sm:$0xff] }
   0x9   :  { %39 = vadd.xlane.f32.xlu0 %v38_v5 }
  0x8e   :  { %v36_v6 = vpop.xlane.xlu0 %35 }
  0x8f   :  { %v42_v7 = vmul.f32 0.03125, %v36_v6 }
  0x91   :  { %v44_v8 = vsub.f32 %v29_v2, %v42_v7 }
  0x92   :  { %v40_v9 = vpop.xlane.xlu0 %39 }
  0x93   :  { %v43_v10 = vmul.f32 0.03125, %v40_v9  ;;  %v46_v11 = vmul.f32 %v44_v8, %v44_v8 }
  0x95   :  { %v45_v12 = vsub.f32 %v30_v3, %v43_v10  ;;  %v48_v13 = vsel %vm33_vm0, %v46_v11, 0.0 }
  0x96   :  { %49 = vadd.xlane.f32.xlu1 %v48_v13 }
  0x97   :  { %v47_v14 = vmul.f32 %v45_v12, %v45_v12 }
  0x99   :  { %v51_v15 = vsel %vm37_vm1, %v47_v14, 0.0 }
  0x9a   :  { %52 = vadd.xlane.f32.xlu1 %v51_v15 }
 0x11f   :  { %v50_v21 = vpop.xlane.xlu1 %49 }
 0x120   :  { %v54_v22 = vmul.f32 0.03125, %v50_v21 }
 0x122   :  { %v56_v23 = vadd.f32 1e-05, %v54_v22 }
 0x123   :  { %v53_v24 = vpop.xlane.xlu1 %52 }
 0x124   :  { %284 = vrsqrt.f32 %v56_v23  ;;  %v55_v25 = vmul.f32 0.03125, %v53_v24 }
 0x126   :  { %v57_v26 = vadd.f32 1e-05, %v55_v25 }
 0x128   :  { %286 = vrsqrt.f32 %v57_v26 }
 0x131   :  { %v285_v27 = vpop.eup %284 }
 0x132   :  { %v60_v28 = vmul.f32 %v285_v27, %v44_v8 }
 0x134   :  { %v68_v32 = vmul.f32 %v240_v29, %v60_v28 }
 0x135   :  { %v287_v30 = vpop.eup %286 }
 0x136   :  { %v61_v31 = vmul.f32 %v287_v30, %v45_v12  ;;  %v76_v35 = vadd.f32 %v241_v33, %v68_v32 }
 0x138   :  { %v69_v34 = vmul.f32 %v240_v29, %v61_v31 }
 0x13a   :  { %v77_v36 = vadd.f32 %v241_v33, %v69_v34 }
 0x13c   :  { %v78_v37 = vpack.c.bf16 %v77_v36, %v76_v35 }
 0x13e   :  { %267 = vmatmul.mubr.msk.bf16.vlgmr.msra.gmra.mxu0 %vm33_vm0, %v78_v37  ;;  %275 = vmatmul.mubr.msk.bf16.vlgmr.msra.gmra.mxu1 %vm33_vm0, %v78_v37 }
 0x1fe   :  { %v139_v39 = vpop.f32.mrf.mxu0  ;;  %v203_v40 = vpop.f32.mrf.mxu1 }
 0x1ff   :  { %v204_v41 = vadd.f32 %v246_v38, %v203_v40  ;;  %v140_v56 = vadd.f32 %v242_v55, %v139_v39 }
 0x200   :  { %v268_v42 = vpop.f32.mrf.mxu0  ;;  %v276_v43 = vpop.f32.mrf.mxu1 }
 0x201   :  { %v250_v44 = vmul.f32 -1.442695, %v204_v41 }
 0x202   :  { %v142_v45 = vpop.f32.mrf.mxu0  ;;  %v206_v46 = vpop.f32.mrf.mxu1 }
 0x203   :  { %288 = vpow2.f32 %v250_v44  ;;  %v207_v47 = vadd.f32 %v246_v38, %v206_v46  ;;  %v143_v60 = vadd.f32 %v242_v55, %v142_v45 }
 0x204   :  { %v269_v48 = vpop.f32.mrf.mxu0  ;;  %v277_v49 = vpop.f32.mrf.mxu1 }
 0x205   :  { %v251_v50 = vmul.f32 -1.442695, %v207_v47 }
 0x207   :  { %290 = vpow2.f32 %v251_v50 }
 0x210   :  { %v289_v51 = vpop.eup %288 }
 0x211   :  { %v216_v52 = vadd.f32 1.0, %v289_v51 }
 0x213   :  { %292 = vrcp.f32 %v216_v52 }
 0x214   :  { %v291_v53 = vpop.eup %290 }
 0x215   :  { %v217_v54 = vadd.f32 1.0, %v291_v53 }
 0x217   :  { %294 = vrcp.f32 %v217_v54 }
 0x220   :  { %v293_v57 = vpop.eup %292 }
 0x221   :  { %v222_v58 = vmul.f32 %v293_v57, %v140_v56 }
 0x223   :  { %v254_v59 = vpack.c.bf16 %v222_v58, %v222_v58 }
 0x224   :  { %v295_v61 = vpop.eup %294 }
 0x225   :  { %233 = vst.msk [vmem:[%s385_s7] sm:$0xf] %vm232_vm3, %v254_v59  ;;  %v223_v62 = vmul.f32 %v295_v61, %v143_v60 }
 0x227   :  { %v255_v63 = vpack.c.bf16 %v223_v62, %v223_v62 }
 0x229   :  { %235 = vst.msk [vmem:[%s385_s7 + $0x4] sm:$0x7] %vm234_vm4, %v255_v63 }

// kernel: conformer_encoder_forward.20
= control target key start
LH: loop header
LB: loop body
LE: loop exit
PB: predicated region body
PF: predicated region fallthrough
CT: control target
= control target key end

     0   :  { %s644_s24 = smov 0   ;;  %s693_s0 = inlined_call_operand.vmem [shape: bf16[2,7,32], index: 0, kind: input, shape index: {}]   ;;  %s694_s1 = inlined_call_operand.vmem [shape: bf16[2,7,32], index: 1, kind: input, shape index: {}]   ;;  %s695_s2 = inlined_call_operand.vmem [shape: f32[7,32], index: 2, kind: input, shape index: {}]   ;;  %s696_s3 = inlined_call_operand.vmem [shape: f32[1,32], index: 3, kind: input, shape index: {}]   ;;  %s697_s4 = inlined_call_operand.vmem [shape: f32[1,32], index: 4, kind: input, shape index: {}]   ;;  %s698_s5 = inlined_call_operand.vmem [shape: bf16[32,32], index: 5, kind: input, shape index: {}]   ;;  %s699_s6 = inlined_call_operand.vmem [shape: f32[1,32], index: 6, kind: input, shape index: {}]   ;;  %s700_s7 = inlined_call_operand.vmem [shape: bf16[2,7,32], index: 7, kind: output, shape index: {}]  }
   0x1 LB: > { %s550_s25 = sadd.s32 4294967295, %s600_s24   ;;  %p554_p0 = scmp.ge.s32.totalorder %s600_s24, 1  ;;  %s600_s24 = sphi %s644_s24, %s17_s24  }
   0x2   : > { %p245_p1 = scmp.lt.s32.totalorder %s600_s24, 3 }
   0x4   : > { %p246_p2 = pnand %p554_p0, %p245_p1 }
   0x5   : > { %p279_p3 = scmp.lt.s32.totalorder (!%p246_p2), %s550_s25, 1 }
   0x6   : > { %249 = sbr.rel (%p246_p2) target bundleno = 278 (0x116), region = 48 }
   0xb   : > { %v588_v0 = vld [vmem:[%s698_s5 + $0x8] sm:$0xff]   ;;  %v302_v1 = vlaneseq  ;;  %v602_v2 = vmov 0.0   ;;  %v589_v3 = vld [vmem:[%s698_s5] sm:$0xff]   ;;  %vm603_vm0 = vmmov 0   ;;  %s702_s25 = smov (!%p279_p3, %s550_s25), 1  ;;  %vm297_vm1 = vcmask 1042432  }
   0xc   : > { %570 = vmatprep.subr.bf16.mxu0 %v602_v2  ;;  %574 = vmatprep.mubr.msk.bf16.mxu0 %vm603_vm0, %v602_v2  ;;  %s658_s30 = sshll.u32 %s702_s25, 2  ;;  %v301_v8 = vld [vmem:[%s695_s2] sm:$0x7f]  ;;  %vm299_vm2 = vcmask 1041408   ;;  %vm324_vm3 = vcmask 1045504   ;;  %vm338_vm4 = vcmask 1044480  }
   0xd   : > { %571 = vmatpush3.bf16.msra.mxu0 %v588_v0  ;;  %v303_v4 = vshrl.u32 %v302_v1, 7  ;;  %s282_s10 = scalar_lea.vmem %s693_s0, %s658_s30  ;;  %vm352_vm5 = vcmask 1043456   ;;  %v558_v58 = vld [vmem:[%s696_s3] ss:$0 sm:$0xff]  ;;  %vm431_vm6 = vcmask 261120   ;;  %s286_s19 = scalar_lea.vmem %s694_s1, %s658_s30  ;;  %vm479_vm7 = vcmask 257024  }
   0xe   : > { %572 = vmatprep.subr.bf16.mxu0 %v602_v2  ;;  %v292_v11 = vld [vmem:[%s282_s10] sm:$0xf]  ;;  %s290_s25 = scalar_lea.vmem %s700_s7, %s658_s30  ;;  %vm480_vm8 = vsmask.f32 3328 }
   0xf   : > { %v304_v5 = vsub.s32 0, %v303_v4  ;;  %v309_v6 = vsub.s32 1, %v303_v4  ;;  %v318_v7 = vsub.s32 2, %v303_v4  ;;  %v332_v9 = vsub.s32 3, %v303_v4  ;;  %v559_v60 = vld [vmem:[%s697_s4] ss:$0 sm:$0xff]  ;;  %vm481_vm9 = vmand %vm479_vm7, %vm480_vm8 }
  0x10   : > { %v346_v10 = vsub.s32 4, %v303_v4  ;;  %v360_v12 = vsub.s32 5, %v303_v4  ;;  %v293_v13 = vunpack.c.l.bf16 %v292_v11  ;;  %v373_v14 = vsub.s32 6, %v303_v4 }
  0x11   : > { %573 = vmatpush3.bf16.msra.mxu0 %v589_v3  ;;  %v305_v15 = vrot.slane %v301_v8, %v304_v5  ;;  %v310_v16 = vrot.slane %v301_v8, %v309_v6  ;;  %v319_v17 = vrot.slane %v301_v8, %v318_v7  ;;  %v333_v19 = vrot.slane %v301_v8, %v332_v9  ;;  %v475_v5 = vld [vmem:[%s286_s19] sm:$0xf] }
  0x12   : > { %v295_v18 = vrot.slane %v293_v13, 5  ;;  %v347_v20 = vrot.slane %v301_v8, %v346_v10  ;;  %v361_v21 = vrot.slane %v301_v8, %v360_v12  ;;  %v374_v24 = vrot.slane %v301_v8, %v373_v14  ;;  %v561_v6 = vld [vmem:[%s699_s6] ss:$0 sm:$0xff] }
  0x13   : > { %v476_v7 = vunpack.c.l.bf16 %v475_v5  ;;  %v482_v12 = vld [vmem:[%s290_s25] sm:$0xf] }
  0x14   : > { %v298_v22 = vsel %vm297_vm1, 0.0, %v295_v18  ;;  %v300_v23 = vsel %vm299_vm2, %v295_v18, 0.0 }
  0x15   : > { %v306_v25 = vmul.f32 %v305_v15, %v298_v22  ;;  %v311_v26 = vmul.f32 %v310_v16, %v298_v22  ;;  %v320_v27 = vmul.f32 %v319_v17, %v298_v22  ;;  %v321_v28 = vmul.f32 %v319_v17, %v300_v23 }
  0x16   : > { %v334_v29 = vmul.f32 %v333_v19, %v298_v22  ;;  %v335_v30 = vmul.f32 %v333_v19, %v300_v23  ;;  %v348_v31 = vmul.f32 %v347_v20, %v298_v22  ;;  %v349_v32 = vmul.f32 %v347_v20, %v300_v23 }
  0x17   : > { %v313_v33 = vrot.slane %v311_v26, 1  ;;  %v325_v34 = vrot.slane %v320_v27, 2  ;;  %v326_v35 = vrot.slane %v321_v28, 2  ;;  %v362_v36 = vmul.f32 %v361_v21, %v298_v22 }
  0x18   : > { %v339_v37 = vrot.slane %v334_v29, 3  ;;  %v340_v38 = vrot.slane %v335_v30, 3  ;;  %v353_v39 = vrot.slane %v348_v31, 4  ;;  %v354_v40 = vrot.slane %v349_v32, 4 }
  0x19   : > { %v315_v41 = vadd.f32 %v313_v33, %v306_v25  ;;  %v327_v42 = vsel %vm324_vm3, %v325_v34, %v326_v35  ;;  %v363_v43 = vmul.f32 %v361_v21, %v300_v23  ;;  %v366_v45 = vrot.slane %v362_v36, 5 }
  0x1a   : > { %v341_v44 = vsel %vm338_vm4, %v339_v37, %v340_v38  ;;  %v375_v46 = vmul.f32 %v374_v24, %v298_v22  ;;  %v376_v47 = vmul.f32 %v374_v24, %v300_v23  ;;  %v355_v50 = vsel %vm352_vm5, %v353_v39, %v354_v40 }
  0x1b   : > { %v329_v48 = vadd.f32 %v327_v42, %v315_v41  ;;  %v367_v49 = vrot.slane %v363_v43, 5 }
  0x1c   : > { %v379_v51 = vrot.slane %v375_v46, 6  ;;  %v380_v52 = vrot.slane %v376_v47, 6 }
  0x1d   : > { %v343_v53 = vadd.f32 %v341_v44, %v329_v48  ;;  %v368_v54 = vsel %vm297_vm1, %v366_v45, %v367_v49 }
  0x1e   : > { %v381_v56 = vsel %vm299_vm2, %v379_v51, %v380_v52 }
  0x1f   : > { %v357_v55 = vadd.f32 %v355_v50, %v343_v53 }
  0x21   : > { %v370_v57 = vadd.f32 %v368_v54, %v357_v55 }
  0x23   : > { %v383_v59 = vadd.f32 %v381_v56, %v370_v57 }
  0x25   : > { %v391_v61 = vmul.f32 %v558_v58, %v383_v59 }
  0x27   : > { %v399_v62 = vadd.f32 %v559_v60, %v391_v61 }
  0x29   : > { %v560_v63 = vmul.f32 -1.442695, %v399_v62 }
  0x2b   : > { %590 = vpow2.f32 %v560_v63 }
  0x38   : > { %v591_v0 = vpop.eup %590 }
  0x39   : > { %v403_v1 = vadd.f32 1.0, %v591_v0 }
  0x3b   : > { %592 = vrcp.f32 %v403_v1 }
  0x48   : > { %v593_v2 = vpop.eup %592 }
  0x49   : > { %v406_v3 = vmul.f32 %v593_v2, %v399_v62 }
  0x4b   : > { %v407_v4 = vpack.c.bf16 %v406_v3, %v406_v3 }
  0x4d   : > { %575 = vmatmul.mubr.msk.bf16.vlgmr.msra.gmra.mxu0 %vm431_vm6, %v407_v4 }
 0x10d   : > { %v469_v8 = vpop.f32.mrf.mxu0 }
 0x10e   : > { %v470_v9 = vadd.f32 %v561_v6, %v469_v8 }
 0x10f   : > { %v576_v10 = vpop.f32.mrf.mxu0 }
 0x110   : > { %v477_v11 = vadd.f32 %v476_v7, %v470_v9 }
 0x111   : > { %v472_v13 = vpop.f32.mrf.mxu0 }
 0x112   : > { %v478_v14 = vpack.c.bf16 %v477_v11, %v477_v11 }
 0x113   : > { %v577_v15 = vpop.f32.mrf.mxu0 }
 0x114   : > { %v483_v16 = vsel %vm481_vm9, %v478_v14, %v482_v12 }
 0x115   : > { %484 = vst [vmem:[%s290_s25] sm:$0xf] %v483_v16 }
 0x116 PF: > { %s17_s24 = sadd.s32 1, %s600_s24  }
 0x117   : > { %p14_p4 = scmp.ge.s32.totalorder %s17_s24, 4  }
 0x119   :  { %16 = sbr.rel (!%p14_p4) target bundleno = 1 (0x1), region = 81 }

// kernel: conformer_encoder_forward.21
= control target key start
LH: loop header
LB: loop body
LE: loop exit
PB: predicated region body
PF: predicated region fallthrough
CT: control target
= control target key end

     0   :  { %vm39_vm0 = vcmask 261120   ;;  %vm43_vm1 = vcmask 259072   ;;  %v434_v16 = vmov 0.0   ;;  %vm435_vm2 = vmmov 0   ;;  %s565_s0 = inlined_call_operand.vmem [shape: bf16[14,32], index: 0, kind: input, shape index: {}]   ;;  %s566_s3 = inlined_call_operand.vmem [shape: bf16[32,128], index: 3, kind: input, shape index: {}]   ;;  %s567_s1 = inlined_call_operand.vmem [shape: f32[1,32], index: 1, kind: input, shape index: {}]   ;;  %s568_s2 = inlined_call_operand.vmem [shape: f32[1,32], index: 2, kind: input, shape index: {}]   ;;  %s569_s5 = inlined_call_operand.vmem [shape: bf16[128,32], index: 5, kind: input, shape index: {}]   ;;  %s570_s4 = inlined_call_operand.vmem [shape: f32[1,128], index: 4, kind: input, shape index: {}]   ;;  %s571_s6 = inlined_call_operand.vmem [shape: f32[1,32], index: 6, kind: input, shape index: {}]   ;;  %s572_s7 = inlined_call_operand.vmem [shape: f32[1,32], index: 7, kind: input, shape index: {}]   ;;  %s573_s8 = inlined_call_operand.vmem [shape: f32[1,32], index: 8, kind: input, shape index: {}]   ;;  %s574_s9 = inlined_call_operand.vmem [shape: bf16[14,32], index: 9, kind: output, shape index: {}]  }
   0x1   :  { %v33_v0 = vld [vmem:[%s565_s0] sm:$0xf]  ;;  %v34_v1 = vld [vmem:[%s565_s0 + $0x4] sm:$0x7]  ;;  %378 = vmatprep.subr.bf16.mxu0 %v434_v16  ;;  %v408_v17 = vld [vmem:[%s566_s3 + $0x8] sm:$0xff]   ;;  %382 = vmatprep.mubr.msk.bf16.mxu0 %vm435_vm2, %v434_v16  ;;  %vm335_vm3 = vcmask 257024  }
   0x2   :  { %v492_v2 = vunpack.c.l.bf16 %v33_v0  ;;  %v494_v3 = vunpack.c.l.bf16 %v34_v1  ;;  %386 = vmatprep.subr.bf16.mxu1 %v434_v16  ;;  %402 = vmatprep.mubr.msk.bf16.mxu1 %vm435_vm2, %v434_v16  ;;  %v409_v18 = vld [vmem:[%s566_s3] sm:$0xff]   ;;  %v410_v36 = vld [vmem:[%s569_s5 + $0x38] sm:$0xff]   ;;  %v411_v37 = vld [vmem:[%s569_s5 + $0x30] sm:$0xff]   ;;  %vm337_vm4 = vcmask 256000  }
   0x3   :  { %379 = vmatpush3.bf16.msra.mxu0 %v408_v17  ;;  %v343_v27 = vld [vmem:[%s567_s1] ss:$0 sm:$0xff]  ;;  %387 = vmatpush3.bf16.msra.mxu1 %v410_v36  ;;  %v412_v38 = vld [vmem:[%s569_s5 + $0x28] sm:$0xff]   ;;  %v414_v40 = vld [vmem:[%s569_s5 + $0x18] sm:$0xff]  }
   0x4   :  { %v40_v4 = vsel %vm39_vm0, %v492_v2, 0.0  ;;  %v44_v5 = vsel %vm43_vm1, %v494_v3, 0.0  ;;  %380 = vmatprep.subr.bf16.mxu0 %v434_v16  ;;  %v344_v31 = vld [vmem:[%s568_s2] ss:$0 sm:$0xff]  ;;  %388 = vmatprep.subr.bf16.mxu1 %v434_v16  ;;  %v415_v41 = vld [vmem:[%s569_s5 + $0x10] sm:$0xff]   ;;  %v416_v42 = vld [vmem:[%s569_s5 + $0x8] sm:$0xff]  }
   0x5   :  { %41 = vadd.xlane.f32.xlu0 %v40_v4  ;;  %v413_v39 = vld [vmem:[%s569_s5 + $0x20] sm:$0xff]  }
   0x6   :  { %v417_v43 = vld [vmem:[%s569_s5] sm:$0xff]  }
   0x7   :  { %381 = vmatpush3.bf16.msra.mxu0 %v409_v18  ;;  %389 = vmatpush3.bf16.msra.mxu1 %v411_v37  ;;  %v345_v44 = vld [vmem:[%s570_s4] ss:$0 sm:$0xff] }
   0x8   :  { %390 = vmatprep.subr.bf16.mxu1 %v434_v16  ;;  %v351_v62 = vld [vmem:[%s571_s6] ss:$0 sm:$0xff] }
   0x9   :  { %45 = vadd.xlane.f32.xlu0 %v44_v5 }
   0xb   :  { %391 = vmatpush3.bf16.msra.mxu1 %v412_v38 }
   0xc   :  { %392 = vmatprep.subr.bf16.mxu1 %v434_v16 }
   0xf   :  { %393 = vmatpush3.bf16.msra.mxu1 %v413_v39 }
  0x10   :  { %394 = vmatprep.subr.bf16.mxu1 %v434_v16 }
  0x13   :  { %395 = vmatpush3.bf16.msra.mxu1 %v414_v40 }
  0x14   :  { %396 = vmatprep.subr.bf16.mxu1 %v434_v16 }
  0x17   :  { %397 = vmatpush3.bf16.msra.mxu1 %v415_v41 }
  0x18   :  { %398 = vmatprep.subr.bf16.mxu1 %v434_v16 }
  0x1b   :  { %399 = vmatpush3.bf16.msra.mxu1 %v416_v42 }
  0x1c   :  { %400 = vmatprep.subr.bf16.mxu1 %v434_v16 }
  0x1f   :  { %401 = vmatpush3.bf16.msra.mxu1 %v417_v43 }
  0x8e   :  { %v42_v6 = vpop.xlane.xlu0 %41 }
  0x8f   :  { %v48_v7 = vmul.f32 0.03125, %v42_v6 }
  0x91   :  { %v50_v8 = vsub.f32 %v492_v2, %v48_v7 }
  0x92   :  { %v46_v9 = vpop.xlane.xlu0 %45 }
  0x93   :  { %v49_v10 = vmul.f32 0.03125, %v46_v9  ;;  %v52_v11 = vmul.f32 %v50_v8, %v50_v8 }
  0x95   :  { %v51_v12 = vsub.f32 %v494_v3, %v49_v10  ;;  %v54_v13 = vsel %vm39_vm0, %v52_v11, 0.0 }
  0x96   :  { %55 = vadd.xlane.f32.xlu1 %v54_v13 }
  0x97   :  { %v53_v14 = vmul.f32 %v51_v12, %v51_v12 }
  0x99   :  { %v57_v15 = vsel %vm43_vm1, %v53_v14, 0.0 }
  0x9a   :  { %58 = vadd.xlane.f32.xlu1 %v57_v15 }
 0x11f   :  { %v56_v19 = vpop.xlane.xlu1 %55 }
 0x120   :  { %v60_v20 = vmul.f32 0.03125, %v56_v19 }
 0x122   :  { %v62_v21 = vadd.f32 1e-05, %v60_v20 }
 0x123   :  { %v59_v22 = vpop.xlane.xlu1 %58 }
 0x124   :  { %418 = vrsqrt.f32 %v62_v21  ;;  %v61_v23 = vmul.f32 0.03125, %v59_v22 }
 0x126   :  { %v63_v24 = vadd.f32 1e-05, %v61_v23 }
 0x128   :  { %420 = vrsqrt.f32 %v63_v24 }
 0x131   :  { %v419_v25 = vpop.eup %418 }
 0x132   :  { %v66_v26 = vmul.f32 %v419_v25, %v50_v8 }
 0x134   :  { %v74_v30 = vmul.f32 %v343_v27, %v66_v26 }
 0x135   :  { %v421_v28 = vpop.eup %420 }
 0x136   :  { %v67_v29 = vmul.f32 %v421_v28, %v51_v12  ;;  %v82_v33 = vadd.f32 %v344_v31, %v74_v30  ;;  %v360_v28 = vld [vmem:[%s572_s7] ss:$0 sm:$0xff] }
 0x137   :  { %v361_v30 = vld [vmem:[%s573_s8] ss:$0 sm:$0xff] }
 0x138   :  { %v75_v32 = vmul.f32 %v343_v27, %v67_v29 }
 0x13a   :  { %v83_v34 = vadd.f32 %v344_v31, %v75_v32 }
 0x13c   :  { %v84_v35 = vpack.c.bf16 %v83_v34, %v82_v33 }
 0x13e   :  { %383 = vmatmul.mubr.msk.bf16.vlgmr.msra.gmra.mxu0 %vm39_vm0, %v84_v35 }
 0x1fe   :  { %v145_v45 = vpop.f32.mrf.mxu0 }
 0x1ff   :  { %v146_v46 = vadd.f32 %v345_v44, %v145_v45 }
 0x200   :  { %v384_v47 = vpop.f32.mrf.mxu0 }
 0x201   :  { %v349_v48 = vmul.f32 -1.442695, %v146_v46 }
 0x202   :  { %v148_v49 = vpop.f32.mrf.mxu0 }
 0x203   :  { %422 = vpow2.f32 %v349_v48  ;;  %v149_v50 = vadd.f32 %v345_v44, %v148_v49 }
 0x204   :  { %v385_v51 = vpop.f32.mrf.mxu0 }
 0x205   :  { %v350_v52 = vmul.f32 -1.442695, %v149_v50 }
 0x207   :  { %424 = vpow2.f32 %v350_v52 }
 0x210   :  { %v423_v53 = vpop.eup %422 }
 0x211   :  { %v158_v54 = vadd.f32 1.0, %v423_v53 }
 0x213   :  { %426 = vrcp.f32 %v158_v54 }
 0x214   :  { %v425_v55 = vpop.eup %424 }
 0x215   :  { %v159_v56 = vadd.f32 1.0, %v425_v55 }
 0x217   :  { %428 = vrcp.f32 %v159_v56 }
 0x220   :  { %v427_v57 = vpop.eup %426 }
 0x221   :  { %v164_v59 = vmul.f32 %v427_v57, %v146_v46 }
 0x224   :  { %v429_v58 = vpop.eup %428 }
 0x225   :  { %v165_v60 = vmul.f32 %v429_v58, %v149_v50 }
 0x227   :  { %v166_v61 = vpack.c.bf16 %v165_v60, %v164_v59 }
 0x229   :  { %403 = vmatmul.mubr.bf16.vlgmr.msra.gmra.mxu1 %v166_v61 }
 0x2e9   :  { %v272_v63 = vpop.f32.mrf.mxu1 }
 0x2ea   :  { %v273_v0 = vadd.f32 %v351_v62, %v272_v63 }
 0x2eb   :  { %v404_v1 = vpop.f32.mrf.mxu1 }
 0x2ec   :  { %v279_v4 = vmul.f32 0.5, %v273_v0 }
 0x2ed   :  { %v275_v5 = vpop.f32.mrf.mxu1 }
 0x2ee   :  { %v276_v6 = vadd.f32 %v351_v62, %v275_v5  ;;  %v281_v7 = vadd.f32 %v279_v4, %v492_v2 }
 0x2ef   :  { %v405_v8 = vpop.f32.mrf.mxu1 }
 0x2f0   :  { %v280_v9 = vmul.f32 0.5, %v276_v6  ;;  %v285_v10 = vsel %vm39_vm0, %v281_v7, 0.0 }
 0x2f1   :  { %286 = vadd.xlane.f32.xlu0 %v285_v10 }
 0x2f2   :  { %v282_v11 = vadd.f32 %v280_v9, %v494_v3 }
 0x2f4   :  { %v288_v12 = vsel %vm43_vm1, %v282_v11, 0.0 }
 0x2f5   :  { %289 = vadd.xlane.f32.xlu1 %v288_v12 }
 0x37a   :  { %v287_v13 = vpop.xlane.xlu0 %286 }
 0x37b   :  { %v291_v14 = vmul.f32 0.03125, %v287_v13 }
 0x37d   :  { %v293_v15 = vsub.f32 %v281_v7, %v291_v14 }
 0x37e   :  { %v290_v16 = vpop.xlane.xlu1 %289 }
 0x37f   :  { %v292_v17 = vmul.f32 0.03125, %v290_v16  ;;  %v295_v18 = vmul.f32 %v293_v15, %v293_v15 }
 0x381   :  { %v294_v19 = vsub.f32 %v282_v11, %v292_v17  ;;  %v297_v20 = vsel %vm39_vm0, %v295_v18, 0.0 }
 0x382   :  { %298 = vadd.xlane.f32.xlu0 %v297_v20 }
 0x383   :  { %v296_v2 = vmul.f32 %v294_v19, %v294_v19 }
 0x385   :  { %v300_v21 = vsel %vm43_vm1, %v296_v2, 0.0 }
 0x386   :  { %301 = vadd.xlane.f32.xlu1 %v300_v21 }
 0x40b   :  { %v299_v22 = vpop.xlane.xlu0 %298 }
 0x40c   :  { %v303_v23 = vmul.f32 0.03125, %v299_v22 }
 0x40e   :  { %v305_v3 = vadd.f32 1e-05, %v303_v23 }
 0x40f   :  { %v302_v24 = vpop.xlane.xlu1 %301 }
 0x410   :  { %430 = vrsqrt.f32 %v305_v3  ;;  %v304_v25 = vmul.f32 0.03125, %v302_v24 }
 0x412   :  { %v306_v26 = vadd.f32 1e-05, %v304_v25 }
 0x414   :  { %432 = vrsqrt.f32 %v306_v26 }
 0x41d   :  { %v431_v27 = vpop.eup %430 }
 0x41e   :  { %v309_v29 = vmul.f32 %v431_v27, %v293_v15 }
 0x420   :  { %v317_v31 = vmul.f32 %v360_v28, %v309_v29 }
 0x421   :  { %v433_v32 = vpop.eup %432 }
 0x422   :  { %v325_v33 = vadd.f32 %v361_v30, %v317_v31  ;;  %v310_v34 = vmul.f32 %v433_v32, %v294_v19 }
 0x424   :  { %v364_v35 = vpack.c.bf16 %v325_v33, %v325_v33  ;;  %v318_v36 = vmul.f32 %v360_v28, %v310_v34 }
 0x426   :  { %336 = vst.msk [vmem:[%s574_s9] sm:$0xf] %vm335_vm3, %v364_v35  ;;  %v326_v37 = vadd.f32 %v361_v30, %v318_v36 }
 0x428   :  { %v365_v38 = vpack.c.bf16 %v326_v37, %v326_v37 }
 0x42a   :  { %338 = vst.msk [vmem:[%s574_s9 + $0x4] sm:$0x7] %vm337_vm4, %v365_v38 }

</bundles_post_ra>
